<compile_context>
chip_gen: v6e
topology: v6e:2x2x1
jax: 0.10.0
libtpu: 0.0.40
codegen_flags: <defaults>
</compile_context>

<pallas_src>
import jax
import jax.numpy as jnp
from jax.experimental import pallas as pl
from jax.experimental.pallas import tpu as pltpu

IN_FEATS = 784        # 1 * 28 * 28
HIDDEN = 200
NUM_CLASSES = 10
HIDDEN_PAD = 256      # MXU-native on v6e/v7x, multiple of 128 everywhere
OUT_PAD = 128         # lane-dense output stores
NEG_BIG = -1e30       # "minus infinity" bias for padded classes
DEFAULT_TILE_B = 1024 # fits comfortably in v5e's 16 MiB scoped VMEM default


def _round_up(n, m):
    return ((n + m - 1) // m) * m


def _mlp_softmax_kernel(x_ref, w1_ref, b1_ref, w2_ref, b2_ref,
                        w3_ref, b3_ref, o_ref):
    # x tile: (TILE_B, 784) bf16; weights bf16; biases f32.
    x = x_ref[...]

    # fc1 + ReLU  (bf16 MXU, f32 accumulate / elementwise)
    h1 = jnp.dot(x, w1_ref[...], preferred_element_type=jnp.float32)
    h1 = jnp.maximum(h1 + b1_ref[...], 0.0)                  # (TILE_B, 256) f32

    # fc2 + ReLU
    h2 = jnp.dot(h1.astype(jnp.bfloat16), w2_ref[...],
                 preferred_element_type=jnp.float32)
    h2 = jnp.maximum(h2 + b2_ref[...], 0.0)                  # (TILE_B, 256) f32

    # fc3 (padded classes receive a -1e30 bias -> exp() == 0)
    logits = jnp.dot(h2.astype(jnp.bfloat16), w3_ref[...],
                     preferred_element_type=jnp.float32)
    logits = logits + b3_ref[...]                            # (TILE_B, 128) f32

    # softmax over the class dimension, numerically stabilized
    m = jnp.max(logits, axis=1, keepdims=True)
    e = jnp.exp(logits - m)
    denom = jnp.sum(e, axis=1, keepdims=True)
    o_ref[...] = (e * pl.reciprocal(denom, approx=True)).astype(o_ref.dtype)


def _pad2(a, shape, fill=0.0, dtype=None):
    dtype = a.dtype if dtype is None else dtype
    out = jnp.full(shape, fill, dtype)
    return out.at[:a.shape[0], :a.shape[1]].set(a.astype(dtype))


def model_e_forward(x_nchw, params, tile_b=DEFAULT_TILE_B):
    """x_nchw: (B, 1, 28, 28) float32. Returns (B, 10) softmax probabilities."""
    w1, b1, w2, b2, w3, b3 = params
    B = x_nchw.shape[0]
    x = x_nchw.reshape(B, -1).astype(jnp.float32)            # x.view(B, -1)

    # Batch tiling: multiple of 256 (MXU M-dim on v6e/v7x), capped at tile_b.
    tile_b = min(tile_b, _round_up(max(B, 1), 256))
    Bp = _round_up(B, tile_b)
    grid = (Bp // tile_b,)

    # Pad batch with zero rows (sliced off after the kernel), cast to bf16.
    xp = jnp.zeros((Bp, IN_FEATS), jnp.bfloat16).at[:B].set(x.astype(jnp.bfloat16))

    # Pad weights/biases to MXU-friendly dims. Zero padding is exact for
    # matmul + bias + ReLU; padded classes get a -1e30 bias so softmax ignores
    # them.
    w1p = _pad2(w1, (IN_FEATS, HIDDEN_PAD), 0.0, jnp.bfloat16)
    b1p = _pad2(b1, (1, HIDDEN_PAD), 0.0, jnp.float32)
    w2p = _pad2(w2, (HIDDEN_PAD, HIDDEN_PAD), 0.0, jnp.bfloat16)
    b2p = _pad2(b2, (1, HIDDEN_PAD), 0.0, jnp.float32)
    w3p = _pad2(w3, (HIDDEN_PAD, OUT_PAD), 0.0, jnp.bfloat16)
    b3p = _pad2(b3, (1, OUT_PAD), NEG_BIG, jnp.float32)

    const_map = lambda i: (0, 0)
    in_specs = [
        pl.BlockSpec((tile_b, IN_FEATS), lambda i: (i, 0)),          # x (batch-tiled)
        pl.BlockSpec((IN_FEATS, HIDDEN_PAD), const_map),             # w1 (resident)
        pl.BlockSpec((1, HIDDEN_PAD), const_map),                    # b1
        pl.BlockSpec((HIDDEN_PAD, HIDDEN_PAD), const_map),           # w2
        pl.BlockSpec((1, HIDDEN_PAD), const_map),                    # b2
        pl.BlockSpec((HIDDEN_PAD, OUT_PAD), const_map),              # w3
        pl.BlockSpec((1, OUT_PAD), const_map),                       # b3
    ]
    out_spec = pl.BlockSpec((tile_b, OUT_PAD), lambda i: (i, 0))

    flops = 2 * Bp * (IN_FEATS * HIDDEN_PAD + HIDDEN_PAD * HIDDEN_PAD
                      + HIDDEN_PAD * OUT_PAD)
    bytes_accessed = (xp.size * 2                                     # x (bf16)
                      + (w1p.size + w2p.size + w3p.size) * 2          # weights (bf16)
                      + (b1p.size + b2p.size + b3p.size) * 4          # biases (f32)
                      + Bp * OUT_PAD * 4)                             # output (f32)
    cost = pl.CostEstimate(flops=flops,
                           transcendentals=Bp * (OUT_PAD + 1),
                           bytes_accessed=bytes_accessed)

    out_padded = pl.pallas_call(
        _mlp_softmax_kernel,
        grid=grid,
        in_specs=in_specs,
        out_specs=out_spec,
        out_shape=jax.ShapeDtypeStruct((Bp, OUT_PAD), jnp.float32),
        compiler_params=pltpu.CompilerParams(
            dimension_semantics=("parallel",)),
        cost_estimate=cost,
    )(xp, w1p, b1p, w2p, b2p, w3p, b3p)

    return out_padded[:B, :NUM_CLASSES]


def init_params(key):
    """Deterministic parameter init matching nn.Linear shapes.

    PyTorch stores weights as (out, in); we store the transpose (in, out)
    so the kernel can do x @ W directly. Biases are (1, out) rows.
    """
    k1, k2, k3, k4, k5, k6 = jax.random.split(key, 6)

    def uniform_init(k, shape, fan_in):
        bound = 1.0 / jnp.sqrt(fan_in)
        return jax.random.uniform(k, shape, jnp.float32, -bound, bound)

    w1 = uniform_init(k1, (IN_FEATS, HIDDEN), IN_FEATS)
    b1 = uniform_init(k2, (1, HIDDEN), IN_FEATS)
    w2 = uniform_init(k3, (HIDDEN, HIDDEN), HIDDEN)
    b2 = uniform_init(k4, (1, HIDDEN), HIDDEN)
    w3 = uniform_init(k5, (HIDDEN, NUM_CLASSES), HIDDEN)
    b3 = uniform_init(k6, (1, NUM_CLASSES), HIDDEN)
    return (w1, b1, w2, b2, w3, b3)


def reference_forward_f32(x_nchw, params):
    """Pure-f32 JAX reference (matches the PyTorch module exactly)."""
    w1, b1, w2, b2, w3, b3 = params
    x = x_nchw.reshape(x_nchw.shape[0], -1).astype(jnp.float32)
    h1 = jnp.maximum(x @ w1 + b1, 0.0)
    h2 = jnp.maximum(h1 @ w2 + b2, 0.0)
    logits = h2 @ w3 + b3
    return jax.nn.softmax(logits, axis=1)


def reference_forward_bf16(x_nchw, params):
    """Reference mimicking the kernel's precision (bf16 dot inputs, f32 acc)."""
    w1, b1, w2, b2, w3, b3 = params
    bf = jnp.bfloat16
    x = x_nchw.reshape(x_nchw.shape[0], -1).astype(bf)
    h1 = jnp.maximum(jnp.dot(x, w1.astype(bf),
                             preferred_element_type=jnp.float32) + b1, 0.0)
    h2 = jnp.maximum(jnp.dot(h1.astype(bf), w2.astype(bf),
                             preferred_element_type=jnp.float32) + b2, 0.0)
    logits = jnp.dot(h2.astype(bf), w3.astype(bf),
                     preferred_element_type=jnp.float32) + b3
    return jax.nn.softmax(logits, axis=1)


if __name__ == "__main__":
    key = jax.random.PRNGKey(0)
    k_params, k_x = jax.random.split(key)

    params = init_params(k_params)
    x = jax.random.normal(k_x, (2, 1, 28, 28), dtype=jnp.float32)

    out = model_e_forward(x, params)
    out = jax.block_until_ready(out)

    ref32 = reference_forward_f32(x, params)
    ref16 = reference_forward_bf16(x, params)

    assert out.shape == (2, NUM_CLASSES)
    # Probabilities sum to ~1 (approx reciprocal -> loose tolerance).
    assert jnp.allclose(jnp.sum(out, axis=1), 1.0, atol=1e-2)
    # Tight against the bf16-precision reference, looser against pure f32.
    assert jnp.allclose(out, ref16, atol=2e-2), jnp.max(jnp.abs(out - ref16))
    assert jnp.allclose(out, ref32, atol=5e-2), jnp.max(jnp.abs(out - ref32))

    print("KERNEL_OK")
</pallas_src>

<mosaic_0001>
module attributes {stable_mosaic.version = 11 : i64} {
  func.func @_mlp_softmax_kernel(%arg0: i32, %arg1: memref<256x784xbf16, #tpu.memory_space<vmem>>, %arg2: memref<784x256xbf16, #tpu.memory_space<vmem>>, %arg3: memref<1x256xf32, #tpu.memory_space<vmem>>, %arg4: memref<256x256xbf16, #tpu.memory_space<vmem>>, %arg5: memref<1x256xf32, #tpu.memory_space<vmem>>, %arg6: memref<256x128xbf16, #tpu.memory_space<vmem>>, %arg7: memref<1x128xf32, #tpu.memory_space<vmem>>, %arg8: memref<256x128xf32, #tpu.memory_space<vmem>>) attributes {dimension_semantics = [#tpu.dimension_semantics<parallel>], iteration_bounds = array<i64: 1>, scalar_prefetch = 0 : i64, scratch_operands = 0 : i64, tpu.core_type = #tpu.core_type<tc>, window_params = [{transform_indices = @transform_0, window_bounds = array<i64: 256, 784>}, {pipeline_mode = #tpu.pipeline_mode<synchronous>, transform_indices = @transform_1, window_bounds = array<i64: 784, 256>}, {pipeline_mode = #tpu.pipeline_mode<synchronous>, transform_indices = @transform_2, window_bounds = array<i64: 1, 256>}, {pipeline_mode = #tpu.pipeline_mode<synchronous>, transform_indices = @transform_3, window_bounds = array<i64: 256, 256>}, {pipeline_mode = #tpu.pipeline_mode<synchronous>, transform_indices = @transform_4, window_bounds = array<i64: 1, 256>}, {pipeline_mode = #tpu.pipeline_mode<synchronous>, transform_indices = @transform_5, window_bounds = array<i64: 256, 128>}, {pipeline_mode = #tpu.pipeline_mode<synchronous>, transform_indices = @transform_6, window_bounds = array<i64: 1, 128>}, {transform_indices = @transform_7, window_bounds = array<i64: 256, 128>}]} {
    %c0 = arith.constant 0 : index
    %c0_0 = arith.constant 0 : index
    %0 = vector.load %arg1[%c0, %c0_0] : memref<256x784xbf16, #tpu.memory_space<vmem>>, vector<256x784xbf16>
    %c0_1 = arith.constant 0 : index
    %c0_2 = arith.constant 0 : index
    %1 = vector.load %arg2[%c0_1, %c0_2] : memref<784x256xbf16, #tpu.memory_space<vmem>>, vector<784x256xbf16>
    %cst = arith.constant dense<0.000000e+00> : vector<256x256xf32>
    %2 = tpu.matmul %0, %1, %cst {dimension_numbers = #tpu.dot_dimension_numbers<[1], [0], [0], [1], [0, 0, 1, 1], [], []>} : vector<256x784xbf16>, vector<784x256xbf16>, vector<256x256xf32> -> vector<256x256xf32>
    %c0_3 = arith.constant 0 : index
    %c0_4 = arith.constant 0 : index
    %3 = vector.load %arg3[%c0_3, %c0_4] : memref<1x256xf32, #tpu.memory_space<vmem>>, vector<1x256xf32>
    %4 = vector.broadcast %3 : vector<1x256xf32> to vector<256x256xf32>
    %5 = arith.addf %2, %4 : vector<256x256xf32>
    %cst_5 = arith.constant 0.000000e+00 : f32
    %6 = vector.broadcast %cst_5 : f32 to vector<256x256xf32>
    %7 = arith.maximumf %5, %6 : vector<256x256xf32>
    %8 = arith.truncf %7 : vector<256x256xf32> to vector<256x256xbf16>
    %c0_6 = arith.constant 0 : index
    %c0_7 = arith.constant 0 : index
    %9 = vector.load %arg4[%c0_6, %c0_7] : memref<256x256xbf16, #tpu.memory_space<vmem>>, vector<256x256xbf16>
    %cst_8 = arith.constant dense<0.000000e+00> : vector<256x256xf32>
    %10 = tpu.matmul %8, %9, %cst_8 {dimension_numbers = #tpu.dot_dimension_numbers<[1], [0], [0], [1], [0, 0, 1, 1], [], []>} : vector<256x256xbf16>, vector<256x256xbf16>, vector<256x256xf32> -> vector<256x256xf32>
    %c0_9 = arith.constant 0 : index
    %c0_10 = arith.constant 0 : index
    %11 = vector.load %arg5[%c0_9, %c0_10] : memref<1x256xf32, #tpu.memory_space<vmem>>, vector<1x256xf32>
    %12 = vector.broadcast %11 : vector<1x256xf32> to vector<256x256xf32>
    %13 = arith.addf %10, %12 : vector<256x256xf32>
    %cst_11 = arith.constant 0.000000e+00 : f32
    %14 = vector.broadcast %cst_11 : f32 to vector<256x256xf32>
    %15 = arith.maximumf %13, %14 : vector<256x256xf32>
    %16 = arith.truncf %15 : vector<256x256xf32> to vector<256x256xbf16>
    %c0_12 = arith.constant 0 : index
    %c0_13 = arith.constant 0 : index
    %17 = vector.load %arg6[%c0_12, %c0_13] : memref<256x128xbf16, #tpu.memory_space<vmem>>, vector<256x128xbf16>
    %cst_14 = arith.constant dense<0.000000e+00> : vector<256x128xf32>
    %18 = tpu.matmul %16, %17, %cst_14 {dimension_numbers = #tpu.dot_dimension_numbers<[1], [0], [0], [1], [0, 0, 1, 1], [], []>} : vector<256x256xbf16>, vector<256x128xbf16>, vector<256x128xf32> -> vector<256x128xf32>
    %c0_15 = arith.constant 0 : index
    %c0_16 = arith.constant 0 : index
    %19 = vector.load %arg7[%c0_15, %c0_16] : memref<1x128xf32, #tpu.memory_space<vmem>>, vector<1x128xf32>
    %20 = vector.broadcast %19 : vector<1x128xf32> to vector<256x128xf32>
    %21 = arith.addf %18, %20 : vector<256x128xf32>
    %cst_17 = arith.constant dense<0xFF800000> : vector<256xf32>
    %22 = vector.multi_reduction <maximumf>, %21, %cst_17 [1] : vector<256x128xf32> to vector<256xf32>
    %23 = vector.shape_cast %22 : vector<256xf32> to vector<256x1xf32>
    %24 = vector.broadcast %23 : vector<256x1xf32> to vector<256x128xf32>
    %25 = arith.subf %21, %24 : vector<256x128xf32>
    %26 = math.exp %25 : vector<256x128xf32>
    %cst_18 = arith.constant dense<0.000000e+00> : vector<256xf32>
    %27 = vector.multi_reduction <add>, %26, %cst_18 [1] : vector<256x128xf32> to vector<256xf32>
    %28 = vector.shape_cast %27 : vector<256xf32> to vector<256x1xf32>
    %29 = tpu.reciprocal %28 {approx = true} : vector<256x1xf32> -> vector<256x1xf32>
    %30 = vector.broadcast %29 : vector<256x1xf32> to vector<256x128xf32>
    %31 = arith.mulf %26, %30 : vector<256x128xf32>
    %c0_19 = arith.constant 0 : index
    %c0_20 = arith.constant 0 : index
    %32 = vector.load %arg8[%c0_19, %c0_20] : memref<256x128xf32, #tpu.memory_space<vmem>>, vector<256x128xf32>
    tpu.vector_store %arg8[%c0_19, %c0_20], %31 {strides = array<i32>} : memref<256x128xf32, #tpu.memory_space<vmem>>, vector<256x128xf32>,
    return
  }
  func.func @transform_0(%arg0: i32) -> (i32, i32) {
    %c0_i32 = arith.constant 0 : i32
    %c0_i32_0 = arith.constant 0 : i32
    return %arg0, %c0_i32 : i32, i32
  }
  func.func @transform_1(%arg0: i32) -> (i32, i32) {
    %c0_i32 = arith.constant 0 : i32
    %c0_i32_0 = arith.constant 0 : i32
    %c0_i32_1 = arith.constant 0 : i32
    return %c0_i32, %c0_i32_0 : i32, i32
  }
  func.func @transform_2(%arg0: i32) -> (i32, i32) {
    %c0_i32 = arith.constant 0 : i32
    %c0_i32_0 = arith.constant 0 : i32
    %c0_i32_1 = arith.constant 0 : i32
    return %c0_i32, %c0_i32_0 : i32, i32
  }
  func.func @transform_3(%arg0: i32) -> (i32, i32) {
    %c0_i32 = arith.constant 0 : i32
    %c0_i32_0 = arith.constant 0 : i32
    %c0_i32_1 = arith.constant 0 : i32
    return %c0_i32, %c0_i32_0 : i32, i32
  }
  func.func @transform_4(%arg0: i32) -> (i32, i32) {
    %c0_i32 = arith.constant 0 : i32
    %c0_i32_0 = arith.constant 0 : i32
    %c0_i32_1 = arith.constant 0 : i32
    return %c0_i32, %c0_i32_0 : i32, i32
  }
  func.func @transform_5(%arg0: i32) -> (i32, i32) {
    %c0_i32 = arith.constant 0 : i32
    %c0_i32_0 = arith.constant 0 : i32
    %c0_i32_1 = arith.constant 0 : i32
    return %c0_i32, %c0_i32_0 : i32, i32
  }
  func.func @transform_6(%arg0: i32) -> (i32, i32) {
    %c0_i32 = arith.constant 0 : i32
    %c0_i32_0 = arith.constant 0 : i32
    %c0_i32_1 = arith.constant 0 : i32
    return %c0_i32, %c0_i32_0 : i32, i32
  }
  func.func @transform_7(%arg0: i32) -> (i32, i32) {
    %c0_i32 = arith.constant 0 : i32
    %c0_i32_0 = arith.constant 0 : i32
    return %arg0, %c0_i32 : i32, i32
  }
}

</mosaic_0001>

<bundles_post_ra>
// kernel: tpu_custom_call.1
= control target key start
LH: loop header
LB: loop body
LE: loop exit
PB: predicated region body
PF: predicated region fallthrough
CT: control target
= control target key end

     0   :  { %s5798_s0 = inlined_call_operand.vmem [shape: bf16[256,784], index: 0, kind: input, shape index: {}]   ;;  %s5799_s1 = inlined_call_operand.vmem [shape: bf16[784,256], index: 1, kind: input, shape index: {}]   ;;  %s5800_s2 = inlined_call_operand.vmem [shape: f32[1,256], index: 2, kind: input, shape index: {}]   ;;  %s5801_s3 = inlined_call_operand.vmem [shape: bf16[256,256], index: 3, kind: input, shape index: {}]   ;;  %s5802_s4 = inlined_call_operand.vmem [shape: f32[1,256], index: 4, kind: input, shape index: {}]   ;;  %s5803_s5 = inlined_call_operand.vmem [shape: bf16[256,128], index: 5, kind: input, shape index: {}]   ;;  %s5804_s6 = inlined_call_operand.vmem [shape: f32[1,128], index: 6, kind: input, shape index: {}]   ;;  %s5805_s7 = inlined_call_operand.hbm [shape: f32[256,128], index: 7, kind: output, shape index: {}]  }
   0x1   :  { %v3749_v0 = vld [vmem:[%s5799_s1 + $0x74] ss:$8 sps:$4 sm:$0xff]   ;;  %v3753_v2 = vld [vmem:[%s5799_s1 + $0x70] ss:$8 sps:$4 sm:$0xff]   ;;  %v3755_v4 = vld [vmem:[%s5799_s1 + $0x64] ss:$8 sps:$4 sm:$0xff]  }
   0x2   :  { %v3751_v1 = vld [vmem:[%s5799_s1 + $0x174] ss:$8 sps:$4 sm:$0xff]   ;;  %1365 = vmatprep.subr.bf16.mxu0 %v3749_v0  ;;  %v3754_v3 = vld [vmem:[%s5799_s1 + $0x170] ss:$8 sps:$4 sm:$0xff]   ;;  %v3757_v5 = vld [vmem:[%s5799_s1 + $0x164] ss:$8 sps:$4 sm:$0xff]  }
   0x3   :  { %1558 = vmatprep.subr.bf16.mxu1 %v3751_v1  ;;  %1366 = vmatpush1.bf16.msra.mxu0 %v3753_v2  ;;  %v3759_v6 = vld [vmem:[%s5799_s1 + $0x60] ss:$8 sps:$4 sm:$0xff]   ;;  %v3761_v8 = vld [vmem:[%s5799_s1 + $0x54] ss:$8 sps:$4 sm:$0xff]   ;;  %v3765_v10 = vld [vmem:[%s5799_s1 + $0x50] ss:$8 sps:$4 sm:$0xff]  }
   0x4   :  { %1559 = vmatpush1.bf16.msra.mxu1 %v3754_v3  ;;  %1367 = vmatprep.subr.bf16.mxu0 %v3755_v4  ;;  %v3760_v7 = vld [vmem:[%s5799_s1 + $0x160] ss:$8 sps:$4 sm:$0xff]   ;;  %v3763_v9 = vld [vmem:[%s5799_s1 + $0x154] ss:$8 sps:$4 sm:$0xff]   ;;  %v3766_v11 = vld [vmem:[%s5799_s1 + $0x150] ss:$8 sps:$4 sm:$0xff]  }
   0x5   :  { %1560 = vmatprep.subr.bf16.mxu1 %v3757_v5  ;;  %v3767_v12 = vld [vmem:[%s5799_s1 + $0x44] ss:$8 sps:$4 sm:$0xff]   ;;  %v3771_v14 = vld [vmem:[%s5799_s1 + $0x40] ss:$8 sps:$4 sm:$0xff]   ;;  %v3773_v16 = vld [vmem:[%s5799_s1 + $0x34] ss:$8 sps:$4 sm:$0xff]  }
   0x6   :  { %v3769_v13 = vld [vmem:[%s5799_s1 + $0x144] ss:$8 sps:$4 sm:$0xff]   ;;  %v3772_v15 = vld [vmem:[%s5799_s1 + $0x140] ss:$8 sps:$4 sm:$0xff]   ;;  %v3775_v17 = vld [vmem:[%s5799_s1 + $0x134] ss:$8 sps:$4 sm:$0xff]  }
   0x7   :  { %1368 = vmatpush1.bf16.msra.mxu0 %v3759_v6  ;;  %v3777_v18 = vld [vmem:[%s5799_s1 + $0x30] ss:$8 sps:$4 sm:$0xff]   ;;  %v3779_v20 = vld [vmem:[%s5799_s1 + $0x24] ss:$8 sps:$4 sm:$0xff]   ;;  %v3783_v22 = vld [vmem:[%s5799_s1 + $0x20] ss:$8 sps:$4 sm:$0xff]  }
   0x8   :  { %1561 = vmatpush1.bf16.msra.mxu1 %v3760_v7  ;;  %1369 = vmatprep.subr.bf16.mxu0 %v3761_v8  ;;  %v3778_v19 = vld [vmem:[%s5799_s1 + $0x130] ss:$8 sps:$4 sm:$0xff]   ;;  %v3781_v21 = vld [vmem:[%s5799_s1 + $0x124] ss:$8 sps:$4 sm:$0xff]   ;;  %v3784_v23 = vld [vmem:[%s5799_s1 + $0x120] ss:$8 sps:$4 sm:$0xff]  }
   0x9   :  { %1562 = vmatprep.subr.bf16.mxu1 %v3763_v9  ;;  %v3785_v24 = vld [vmem:[%s5799_s1 + $0x14] ss:$8 sps:$4 sm:$0xff]   ;;  %v3789_v26 = vld [vmem:[%s5799_s1 + $0x10] ss:$8 sps:$4 sm:$0xff]   ;;  %v3791_v28 = vld [vmem:[%s5799_s1 + $0x4] ss:$8 sps:$4 sm:$0xff]  }
   0xa   :  { %v3787_v25 = vld [vmem:[%s5799_s1 + $0x114] ss:$8 sps:$4 sm:$0xff]   ;;  %v3790_v27 = vld [vmem:[%s5799_s1 + $0x110] ss:$8 sps:$4 sm:$0xff]   ;;  %v3793_v29 = vld [vmem:[%s5799_s1 + $0x104] ss:$8 sps:$4 sm:$0xff]  }
   0xb   :  { %1370 = vmatpush1.bf16.msra.mxu0 %v3765_v10  ;;  %v3795_v30 = vld [vmem:[%s5799_s1] ss:$8 sps:$4 sm:$0xff]   ;;  %v3797_v32 = vld [vmem:[%s5799_s1 + $0xf4] ss:$8 sps:$4 sm:$0xff]   ;;  %v3801_v34 = vld [vmem:[%s5799_s1 + $0xf0] ss:$8 sps:$4 sm:$0xff]  }
   0xc   :  { %1563 = vmatpush1.bf16.msra.mxu1 %v3766_v11  ;;  %1371 = vmatprep.subr.bf16.mxu0 %v3767_v12  ;;  %v3796_v31 = vld [vmem:[%s5799_s1 + $0x100] ss:$8 sps:$4 sm:$0xff]   ;;  %v3799_v33 = vld [vmem:[%s5799_s1 + $0x1f4] ss:$8 sps:$4 sm:$0xff]   ;;  %v3802_v35 = vld [vmem:[%s5799_s1 + $0x1f0] ss:$8 sps:$4 sm:$0xff]  }
   0xd   :  { %1564 = vmatprep.subr.bf16.mxu1 %v3769_v13  ;;  %v3803_v36 = vld [vmem:[%s5799_s1 + $0xe4] ss:$8 sps:$4 sm:$0xff]   ;;  %v3807_v38 = vld [vmem:[%s5799_s1 + $0xe0] ss:$8 sps:$4 sm:$0xff]   ;;  %v3809_v40 = vld [vmem:[%s5799_s1 + $0xd4] ss:$8 sps:$4 sm:$0xff]  }
   0xe   :  { %v3805_v37 = vld [vmem:[%s5799_s1 + $0x1e4] ss:$8 sps:$4 sm:$0xff]   ;;  %v3808_v39 = vld [vmem:[%s5799_s1 + $0x1e0] ss:$8 sps:$4 sm:$0xff]   ;;  %v3811_v41 = vld [vmem:[%s5799_s1 + $0x1d4] ss:$8 sps:$4 sm:$0xff]  }
   0xf   :  { %1372 = vmatpush1.bf16.msra.mxu0 %v3771_v14  ;;  %v3813_v42 = vld [vmem:[%s5799_s1 + $0xd0] ss:$8 sps:$4 sm:$0xff]   ;;  %v3815_v44 = vld [vmem:[%s5799_s1 + $0xc4] ss:$8 sps:$4 sm:$0xff]   ;;  %v3819_v46 = vld [vmem:[%s5799_s1 + $0xc0] ss:$8 sps:$4 sm:$0xff]  }
  0x10   :  { %1565 = vmatpush1.bf16.msra.mxu1 %v3772_v15  ;;  %1373 = vmatprep.subr.bf16.mxu0 %v3773_v16  ;;  %v3814_v43 = vld [vmem:[%s5799_s1 + $0x1d0] ss:$8 sps:$4 sm:$0xff]   ;;  %v3817_v45 = vld [vmem:[%s5799_s1 + $0x1c4] ss:$8 sps:$4 sm:$0xff]   ;;  %v3820_v47 = vld [vmem:[%s5799_s1 + $0x1c0] ss:$8 sps:$4 sm:$0xff]  }
  0x11   :  { %1566 = vmatprep.subr.bf16.mxu1 %v3775_v17  ;;  %v3821_v48 = vld [vmem:[%s5799_s1 + $0xb4] ss:$8 sps:$4 sm:$0xff]   ;;  %v3847_v49 = vld [vmem:[%s5798_s0 + $0x4] ss:$28 sps:$4 sm:$0xff]   ;;  %v3850_v51 = vld [vmem:[%s5798_s0 + $0xc] ss:$28 sps:$4 sm:$0xff]  }
  0x12   :  { %v3823_v50 = vld [vmem:[%s5799_s1 + $0x1b4] ss:$8 sps:$4 sm:$0xff]   ;;  %1397 = vmatprep.mubr.bf16.mxu0 %v3847_v49  ;;  %v3825_v52 = vld [vmem:[%s5799_s1 + $0xb0] ss:$8 sps:$4 sm:$0xff]   ;;  %1590 = vmatprep.mubr.bf16.mxu1 %v3850_v51  ;;  %v3827_v54 = vld [vmem:[%s5799_s1 + $0xa4] ss:$8 sps:$4 sm:$0xff]  }
  0x13   :  { %1374 = vmatpush1.bf16.msra.mxu0 %v3777_v18  ;;  %v3826_v53 = vld [vmem:[%s5799_s1 + $0x1b0] ss:$8 sps:$4 sm:$0xff]   ;;  %v3829_v55 = vld [vmem:[%s5799_s1 + $0x1a4] ss:$8 sps:$4 sm:$0xff]   ;;  %v3831_v56 = vld [vmem:[%s5799_s1 + $0xa0] ss:$8 sps:$4 sm:$0xff]  }
  0x14   :  { %1567 = vmatpush1.bf16.msra.mxu1 %v3778_v19  ;;  %1375 = vmatprep.subr.bf16.mxu0 %v3779_v20  ;;  %v3832_v57 = vld [vmem:[%s5799_s1 + $0x1a0] ss:$8 sps:$4 sm:$0xff]   ;;  %v3833_v58 = vld [vmem:[%s5799_s1 + $0x94] ss:$8 sps:$4 sm:$0xff]   ;;  %v3837_v60 = vld [vmem:[%s5799_s1 + $0x90] ss:$8 sps:$4 sm:$0xff]  }
  0x15   :  { %1568 = vmatprep.subr.bf16.mxu1 %v3781_v21  ;;  %v3835_v59 = vld [vmem:[%s5799_s1 + $0x194] ss:$8 sps:$4 sm:$0xff]   ;;  %v3838_v61 = vld [vmem:[%s5799_s1 + $0x190] ss:$8 sps:$4 sm:$0xff]   ;;  %v3839_v62 = vld [vmem:[%s5799_s1 + $0x84] ss:$8 sps:$4 sm:$0xff]  }
  0x16   :  { %v3841_v63 = vld [vmem:[%s5799_s1 + $0x184] ss:$8 sps:$4 sm:$0xff]   ;;  %v3843_v0 = vld [vmem:[%s5799_s1 + $0x80] ss:$8 sps:$4 sm:$0xff]   ;;  %v3853_v2 = vld [vmem:[%s5799_s1 + $0x274] ss:$8 sps:$4 sm:$0xff]  }
  0x17   :  { %1376 = vmatpush1.bf16.msra.mxu0 %v3783_v22  ;;  %v3844_v1 = vld [vmem:[%s5799_s1 + $0x180] ss:$8 sps:$4 sm:$0xff]   ;;  %v3856_v3 = vld [vmem:[%s5799_s1 + $0x304] ss:$8 sps:$4 sm:$0xff]   ;;  %v3851_v6 = vld [vmem:[%s5799_s1 + $0x270] ss:$8 sps:$4 sm:$0xff]  }
  0x18   :  { %1569 = vmatpush1.bf16.msra.mxu1 %v3784_v23  ;;  %1377 = vmatprep.subr.bf16.mxu0 %v3785_v24  ;;  %v3845_v4 = vld [vmem:[%s5798_s0] ss:$28 sps:$4 sm:$0xff]   ;;  %v3848_v5 = vld [vmem:[%s5798_s0 + $0x8] ss:$28 sps:$4 sm:$0xff]   ;;  %v3861_v13 = vld [vmem:[%s5798_s0 + $0x38] ss:$28 sps:$4 sm:$0xff]  }
  0x19   :  { %1570 = vmatprep.subr.bf16.mxu1 %v3787_v25  ;;  %v3854_v7 = vld [vmem:[%s5799_s1 + $0x300] ss:$8 sps:$4 sm:$0xff]   ;;  %v3857_v8 = vld [vmem:[%s5798_s0 + $0x3c] ss:$28 sps:$4 sm:$0xff]   ;;  %v3865_v10 = vld [vmem:[%s5799_s1 + $0x264] ss:$8 sps:$4 sm:$0xff]  }
  0x1a   :  { %v3859_v9 = vld [vmem:[%s5798_s0 + $0x44] ss:$28 sps:$4 sm:$0xff]   ;;  %v3874_v12 = vld [vmem:[%s5799_s1 + $0x254] ss:$8 sps:$4 sm:$0xff]   ;;  %v3872_v17 = vld [vmem:[%s5799_s1 + $0x250] ss:$8 sps:$4 sm:$0xff]  }
  0x1b   :  { %1378 = vmatpush1.bf16.msra.mxu0 %v3789_v26  ;;  %v3863_v11 = vld [vmem:[%s5799_s1 + $0x260] ss:$8 sps:$4 sm:$0xff]   ;;  %v3866_v15 = vld [vmem:[%s5798_s0 + $0x74] ss:$28 sps:$4 sm:$0xff]   ;;  %v3868_v16 = vld [vmem:[%s5798_s0 + $0x7c] ss:$28 sps:$4 sm:$0xff]  }
  0x1c   :  { %1571 = vmatpush1.bf16.msra.mxu1 %v3790_v27  ;;  %1379 = vmatprep.subr.bf16.mxu0 %v3791_v28  ;;  %v3862_v14 = vld [vmem:[%s5798_s0 + $0x40] ss:$28 sps:$4 sm:$0xff]   ;;  %v3883_v18 = vld [vmem:[%s5799_s1 + $0x244] ss:$8 sps:$4 sm:$0xff]   ;;  %v3871_v22 = vld [vmem:[%s5798_s0 + $0x78] ss:$28 sps:$4 sm:$0xff]  }
  0x1d   :  { %1572 = vmatprep.subr.bf16.mxu1 %v3793_v29  ;;  %v3881_v19 = vld [vmem:[%s5799_s1 + $0x240] ss:$8 sps:$4 sm:$0xff]   ;;  %v3870_v20 = vld [vmem:[%s5798_s0 + $0x70] ss:$28 sps:$4 sm:$0xff]   ;;  %v3892_v21 = vld [vmem:[%s5799_s1 + $0x234] ss:$8 sps:$4 sm:$0xff]  }
  0x1e   :  { %v3875_v23 = vld [vmem:[%s5798_s0 + $0xac] ss:$28 sps:$4 sm:$0xff]   ;;  %v3877_v24 = vld [vmem:[%s5798_s0 + $0xb4] ss:$28 sps:$4 sm:$0xff]  }
  0x1f   :  { %1380 = vmatpush1.bf16.msra.mxu0 %v3795_v30  ;;  %v3890_v25 = vld [vmem:[%s5799_s1 + $0x230] ss:$8 sps:$4 sm:$0xff]   ;;  %v3901_v26 = vld [vmem:[%s5799_s1 + $0x224] ss:$8 sps:$4 sm:$0xff]   ;;  %v3899_v27 = vld [vmem:[%s5799_s1 + $0x220] ss:$8 sps:$4 sm:$0xff]  }
  0x20   :  { %1573 = vmatpush1.bf16.msra.mxu1 %v3796_v31  ;;  %1381 = vmatprep.subr.bf16.mxu0 %v3797_v32  ;;  %v3879_v28 = vld [vmem:[%s5798_s0 + $0xa8] ss:$28 sps:$4 sm:$0xff]   ;;  %v3910_v29 = vld [vmem:[%s5799_s1 + $0x214] ss:$8 sps:$4 sm:$0xff]   ;;  %v3880_v30 = vld [vmem:[%s5798_s0 + $0xb0] ss:$28 sps:$4 sm:$0xff]  }
  0x21   :  { %1574 = vmatprep.subr.bf16.mxu1 %v3799_v33  ;;  %v3884_v31 = vld [vmem:[%s5798_s0 + $0xe4] ss:$28 sps:$4 sm:$0xff]   ;;  %v3886_v32 = vld [vmem:[%s5798_s0 + $0xec] ss:$28 sps:$4 sm:$0xff]   ;;  %v3908_v33 = vld [vmem:[%s5799_s1 + $0x210] ss:$8 sps:$4 sm:$0xff]  }
  0x22   :  { %v3944_v49 = vld [vmem:[%s5799_s1 + $0x2d0] ss:$8 sps:$4 sm:$0xff]  }
  0x23   :  { %1382 = vmatpush2.bf16.msra.mxu0 %v3801_v34  ;;  %v3919_v34 = vld [vmem:[%s5799_s1 + $0x204] ss:$8 sps:$4 sm:$0xff]  }
  0x24   :  { %1575 = vmatpush2.bf16.msra.mxu1 %v3802_v35  ;;  %1383 = vmatprep.subr.bf16.mxu0 %v3803_v36  ;;  %v3917_v35 = vld [vmem:[%s5799_s1 + $0x200] ss:$8 sps:$4 sm:$0xff]   ;;  %v3906_v51 = vld [vmem:[%s5798_s0 + $0x150] ss:$28 sps:$4 sm:$0xff]  }
  0x25   :  { %1576 = vmatprep.subr.bf16.mxu1 %v3805_v37  ;;  %v3888_v36 = vld [vmem:[%s5798_s0 + $0xe0] ss:$28 sps:$4 sm:$0xff]  }
  0x26   :  { %v3928_v37 = vld [vmem:[%s5799_s1 + $0x2f4] ss:$8 sps:$4 sm:$0xff]  }
  0x27   :  { %1384 = vmatpush2.bf16.msra.mxu0 %v3807_v38  ;;  %v3889_v38 = vld [vmem:[%s5798_s0 + $0xe8] ss:$28 sps:$4 sm:$0xff]  }
  0x28   :  { %1577 = vmatpush2.bf16.msra.mxu1 %v3808_v39  ;;  %1385 = vmatprep.subr.bf16.mxu0 %v3809_v40  ;;  %v3893_v39 = vld [vmem:[%s5798_s0 + $0x11c] ss:$28 sps:$4 sm:$0xff]   ;;  %v3895_v40 = vld [vmem:[%s5798_s0 + $0x124] ss:$28 sps:$4 sm:$0xff]  }
  0x29   :  { %1578 = vmatprep.subr.bf16.mxu1 %v3811_v41  ;;  %v3926_v41 = vld [vmem:[%s5799_s1 + $0x2f0] ss:$8 sps:$4 sm:$0xff]  }
  0x2b   :  { %1386 = vmatpush2.bf16.msra.mxu0 %v3813_v42  ;;  %v3937_v42 = vld [vmem:[%s5799_s1 + $0x2e4] ss:$8 sps:$4 sm:$0xff]  }
  0x2c   :  { %1579 = vmatpush2.bf16.msra.mxu1 %v3814_v43  ;;  %1387 = vmatprep.subr.bf16.mxu0 %v3815_v44  ;;  %v3935_v43 = vld [vmem:[%s5799_s1 + $0x2e0] ss:$8 sps:$4 sm:$0xff]   ;;  %v3897_v44 = vld [vmem:[%s5798_s0 + $0x118] ss:$28 sps:$4 sm:$0xff]  }
  0x2d   :  { %1580 = vmatprep.subr.bf16.mxu1 %v3817_v45  ;;  %v3946_v45 = vld [vmem:[%s5799_s1 + $0x2d4] ss:$8 sps:$4 sm:$0xff]  }
  0x2f   :  { %1388 = vmatpush2.bf16.msra.mxu0 %v3819_v46  ;;  %v3898_v46 = vld [vmem:[%s5798_s0 + $0x120] ss:$28 sps:$4 sm:$0xff]  }
  0x30   :  { %1581 = vmatpush2.bf16.msra.mxu1 %v3820_v47  ;;  %1389 = vmatprep.subr.bf16.mxu0 %v3821_v48  ;;  %v3902_v47 = vld [vmem:[%s5798_s0 + $0x154] ss:$28 sps:$4 sm:$0xff]   ;;  %v3904_v48 = vld [vmem:[%s5798_s0 + $0x15c] ss:$28 sps:$4 sm:$0xff]  }
  0x31   :  { %1582 = vmatprep.subr.bf16.mxu1 %v3823_v50  ;;  %v3955_v50 = vld [vmem:[%s5799_s1 + $0x2c4] ss:$8 sps:$4 sm:$0xff]  }
  0x33   :  { %1390 = vmatpush2.bf16.msra.mxu0 %v3825_v52  ;;  %v3953_v52 = vld [vmem:[%s5799_s1 + $0x2c0] ss:$8 sps:$4 sm:$0xff]  }
  0x34   :  { %1583 = vmatpush2.bf16.msra.mxu1 %v3826_v53  ;;  %1391 = vmatprep.subr.bf16.mxu0 %v3827_v54  ;;  %v3964_v53 = vld [vmem:[%s5799_s1 + $0x2b4] ss:$8 sps:$4 sm:$0xff]  }
  0x35   :  { %1584 = vmatprep.subr.bf16.mxu1 %v3829_v55  ;;  %v3907_v54 = vld [vmem:[%s5798_s0 + $0x158] ss:$28 sps:$4 sm:$0xff]   ;;  %v3911_v55 = vld [vmem:[%s5798_s0 + $0x18c] ss:$28 sps:$4 sm:$0xff]  }
  0x37   :  { %1392 = vmatpush2.bf16.msra.mxu0 %v3831_v56  ;;  %v3913_v56 = vld [vmem:[%s5798_s0 + $0x194] ss:$28 sps:$4 sm:$0xff]  }
  0x38   :  { %1585 = vmatpush2.bf16.msra.mxu1 %v3832_v57  ;;  %1393 = vmatprep.subr.bf16.mxu0 %v3833_v58  ;;  %v3962_v57 = vld [vmem:[%s5799_s1 + $0x2b0] ss:$8 sps:$4 sm:$0xff]   ;;  %v3973_v58 = vld [vmem:[%s5799_s1 + $0x2a4] ss:$8 sps:$4 sm:$0xff]  }
  0x39   :  { %1586 = vmatprep.subr.bf16.mxu1 %v3835_v59  ;;  %v3971_v59 = vld [vmem:[%s5799_s1 + $0x2a0] ss:$8 sps:$4 sm:$0xff]  }
  0x3b   :  { %1394 = vmatpush2.bf16.msra.mxu0 %v3837_v60  ;;  %v3915_v60 = vld [vmem:[%s5798_s0 + $0x188] ss:$28 sps:$4 sm:$0xff]  }
  0x3c   :  { %1587 = vmatpush2.bf16.msra.mxu1 %v3838_v61  ;;  %1395 = vmatprep.subr.bf16.mxu0 %v3839_v62  ;;  %v3982_v61 = vld [vmem:[%s5799_s1 + $0x294] ss:$8 sps:$4 sm:$0xff]   ;;  %v3916_v62 = vld [vmem:[%s5798_s0 + $0x190] ss:$28 sps:$4 sm:$0xff]  }
  0x3d   :  { %1588 = vmatprep.subr.bf16.mxu1 %v3841_v63  ;;  %v3920_v63 = vld [vmem:[%s5798_s0 + $0x1c4] ss:$28 sps:$4 sm:$0xff]  }
  0x3f   :  { %1396 = vmatpush2.bf16.msra.mxu0 %v3843_v0  ;;  %v3922_v0 = vld [vmem:[%s5798_s0 + $0x1cc] ss:$28 sps:$4 sm:$0xff]  }
  0x40   :  { %1589 = vmatpush2.bf16.msra.mxu1 %v3844_v1  ;;  %1751 = vmatprep.subr.bf16.mxu0 %v3853_v2  ;;  %v3980_v1 = vld [vmem:[%s5799_s1 + $0x290] ss:$8 sps:$4 sm:$0xff]   ;;  %v3991_v2 = vld [vmem:[%s5799_s1 + $0x284] ss:$8 sps:$4 sm:$0xff]  }
  0x41   :  { %1958 = vmatprep.subr.bf16.mxu1 %v3856_v3  ;;  %v3924_v3 = vld [vmem:[%s5798_s0 + $0x1c0] ss:$28 sps:$4 sm:$0xff]  }
  0x42   :  { %1398 = vmatmul.mubr.bf16.vlgmr.msra.gmra.mxu0 %v3845_v4  ;;  %v3989_v4 = vld [vmem:[%s5799_s1 + $0x280] ss:$8 sps:$4 sm:$0xff]  }
  0x43   :  { %1591 = vmatmul.mubr.bf16.vlgmr.msra.gmra.mxu1 %v3848_v5  ;;  %1752 = vmatpush1.bf16.msra.mxu0 %v3851_v6  ;;  %v3925_v5 = vld [vmem:[%s5798_s0 + $0x1c8] ss:$28 sps:$4 sm:$0xff]   ;;  %v3929_v6 = vld [vmem:[%s5798_s0 + $0x1fc] ss:$28 sps:$4 sm:$0xff]  }
  0x44   :  { %1959 = vmatpush1.bf16.msra.mxu1 %v3854_v7  ;;  %1407 = vmatprep.mubr.bf16.mxu0 %v3857_v8  ;;  %v3931_v7 = vld [vmem:[%s5798_s0 + $0x204] ss:$28 sps:$4 sm:$0xff]   ;;  %v3933_v8 = vld [vmem:[%s5798_s0 + $0x1f8] ss:$28 sps:$4 sm:$0xff]  }
  0x45   :  { %1600 = vmatprep.mubr.bf16.mxu1 %v3859_v9  ;;  %1753 = vmatprep.subr.bf16.mxu0 %v3865_v10  ;;  %v3934_v9 = vld [vmem:[%s5798_s0 + $0x200] ss:$28 sps:$4 sm:$0xff]   ;;  %v3938_v10 = vld [vmem:[%s5798_s0 + $0x234] ss:$28 sps:$4 sm:$0xff]  }
  0x47   :  { %1754 = vmatpush1.bf16.msra.mxu0 %v3863_v11  ;;  %v3940_v11 = vld [vmem:[%s5798_s0 + $0x23c] ss:$28 sps:$4 sm:$0xff]  }
  0x48   :  { %1755 = vmatprep.subr.bf16.mxu0 %v3874_v12  ;;  %v3942_v12 = vld [vmem:[%s5798_s0 + $0x230] ss:$28 sps:$4 sm:$0xff]  }
  0x4a   :  { %1408 = vmatmul.mubr.bf16.gmra.mxu0 %v3861_v13  ;;  %v3943_v13 = vld [vmem:[%s5798_s0 + $0x238] ss:$28 sps:$4 sm:$0xff]  }
  0x4b   :  { %1601 = vmatmul.mubr.bf16.gmra.mxu1 %v3862_v14  ;;  %1417 = vmatprep.mubr.bf16.mxu0 %v3866_v15  ;;  %v3947_v14 = vld [vmem:[%s5798_s0 + $0x26c] ss:$28 sps:$4 sm:$0xff]   ;;  %v3949_v15 = vld [vmem:[%s5798_s0 + $0x274] ss:$28 sps:$4 sm:$0xff]  }
  0x4c   :  { %1610 = vmatprep.mubr.bf16.mxu1 %v3868_v16  ;;  %1756 = vmatpush1.bf16.msra.mxu0 %v3872_v17  ;;  %v3951_v16 = vld [vmem:[%s5798_s0 + $0x268] ss:$28 sps:$4 sm:$0xff]   ;;  %v3952_v17 = vld [vmem:[%s5798_s0 + $0x270] ss:$28 sps:$4 sm:$0xff]  }
  0x4d   :  { %1757 = vmatprep.subr.bf16.mxu0 %v3883_v18  ;;  %v3956_v18 = vld [vmem:[%s5798_s0 + $0x2a4] ss:$28 sps:$4 sm:$0xff]  }
  0x50   :  { %1758 = vmatpush1.bf16.msra.mxu0 %v3881_v19  ;;  %v4038_v19 = vld [vmem:[%s5801_s3 + $0x74] ss:$8 sps:$4 sm:$0xff]  }
  0x51   :  { %1759 = vmatprep.subr.bf16.mxu0 %v3892_v21  ;;  %v3960_v21 = vld [vmem:[%s5798_s0 + $0x2a0] ss:$28 sps:$4 sm:$0xff]  }
  0x52   :  { %1418 = vmatmul.mubr.bf16.gmra.mxu0 %v3870_v20  ;;  %v3958_v20 = vld [vmem:[%s5798_s0 + $0x2ac] ss:$28 sps:$4 sm:$0xff]  }
  0x53   :  { %1611 = vmatmul.mubr.bf16.gmra.mxu1 %v3871_v22  ;;  %1427 = vmatprep.mubr.bf16.mxu0 %v3875_v23  ;;  %v3961_v22 = vld [vmem:[%s5798_s0 + $0x2a8] ss:$28 sps:$4 sm:$0xff]   ;;  %v3965_v23 = vld [vmem:[%s5798_s0 + $0x2dc] ss:$28 sps:$4 sm:$0xff]  }
  0x54   :  { %1620 = vmatprep.mubr.bf16.mxu1 %v3877_v24  ;;  %1760 = vmatpush1.bf16.msra.mxu0 %v3890_v25  ;;  %v3967_v24 = vld [vmem:[%s5798_s0 + $0x2e4] ss:$28 sps:$4 sm:$0xff]  }
  0x55   :  { %1761 = vmatprep.subr.bf16.mxu0 %v3901_v26 }
  0x58   :  { %1762 = vmatpush1.bf16.msra.mxu0 %v3899_v27 }
  0x59   :  { %1763 = vmatprep.subr.bf16.mxu0 %v3910_v29 }
  0x5a   :  { %1428 = vmatmul.mubr.bf16.gmra.mxu0 %v3879_v28 }
  0x5b   :  { %1621 = vmatmul.mubr.bf16.gmra.mxu1 %v3880_v30  ;;  %1437 = vmatprep.mubr.bf16.mxu0 %v3884_v31 }
  0x5c   :  { %1630 = vmatprep.mubr.bf16.mxu1 %v3886_v32  ;;  %1764 = vmatpush1.bf16.msra.mxu0 %v3908_v33 }
  0x5d   :  { %1765 = vmatprep.subr.bf16.mxu0 %v3919_v34 }
  0x60   :  { %1766 = vmatpush1.bf16.msra.mxu0 %v3917_v35 }
  0x61   :  { %1767 = vmatprep.subr.bf16.mxu0 %v3928_v37 }
  0x62   :  { %1438 = vmatmul.mubr.bf16.gmra.mxu0 %v3888_v36 }
  0x63   :  { %1631 = vmatmul.mubr.bf16.gmra.mxu1 %v3889_v38  ;;  %1447 = vmatprep.mubr.bf16.mxu0 %v3893_v39 }
  0x64   :  { %1640 = vmatprep.mubr.bf16.mxu1 %v3895_v40  ;;  %1768 = vmatpush2.bf16.msra.mxu0 %v3926_v41 }
  0x65   :  { %1769 = vmatprep.subr.bf16.mxu0 %v3937_v42 }
  0x68   :  { %1770 = vmatpush2.bf16.msra.mxu0 %v3935_v43 }
  0x69   :  { %1771 = vmatprep.subr.bf16.mxu0 %v3946_v45 }
  0x6a   :  { %1448 = vmatmul.mubr.bf16.gmra.mxu0 %v3897_v44 }
  0x6b   :  { %1641 = vmatmul.mubr.bf16.gmra.mxu1 %v3898_v46  ;;  %1457 = vmatprep.mubr.bf16.mxu0 %v3902_v47 }
  0x6c   :  { %1650 = vmatprep.mubr.bf16.mxu1 %v3904_v48  ;;  %1772 = vmatpush2.bf16.msra.mxu0 %v3944_v49 }
  0x6d   :  { %1773 = vmatprep.subr.bf16.mxu0 %v3955_v50 }
  0x70   :  { %1774 = vmatpush2.bf16.msra.mxu0 %v3953_v52 }
  0x71   :  { %1775 = vmatprep.subr.bf16.mxu0 %v3964_v53 }
  0x72   :  { %1458 = vmatmul.mubr.bf16.gmra.mxu0 %v3906_v51 }
  0x73   :  { %1651 = vmatmul.mubr.bf16.gmra.mxu1 %v3907_v54  ;;  %1467 = vmatprep.mubr.bf16.mxu0 %v3911_v55 }
  0x74   :  { %1660 = vmatprep.mubr.bf16.mxu1 %v3913_v56  ;;  %1776 = vmatpush2.bf16.msra.mxu0 %v3962_v57 }
  0x75   :  { %1777 = vmatprep.subr.bf16.mxu0 %v3973_v58 }
  0x78   :  { %1778 = vmatpush2.bf16.msra.mxu0 %v3971_v59 }
  0x79   :  { %1779 = vmatprep.subr.bf16.mxu0 %v3982_v61 }
  0x7a   :  { %1468 = vmatmul.mubr.bf16.gmra.mxu0 %v3915_v60 }
  0x7b   :  { %1661 = vmatmul.mubr.bf16.gmra.mxu1 %v3916_v62  ;;  %1477 = vmatprep.mubr.bf16.mxu0 %v3920_v63 }
  0x7c   :  { %1670 = vmatprep.mubr.bf16.mxu1 %v3922_v0  ;;  %1780 = vmatpush2.bf16.msra.mxu0 %v3980_v1 }
  0x7d   :  { %1781 = vmatprep.subr.bf16.mxu0 %v3991_v2 }
  0x80   :  { %1782 = vmatpush2.bf16.msra.mxu0 %v3989_v4 }
  0x81   :  { %2437 = vmatprep.subr.bf16.mxu0 %v4038_v19 }
  0x82   :  { %1478 = vmatmul.mubr.bf16.gmra.mxu0 %v3924_v3 }
  0x83   :  { %1671 = vmatmul.mubr.bf16.gmra.mxu1 %v3925_v5  ;;  %1487 = vmatprep.mubr.bf16.mxu0 %v3929_v6 }
  0x84   :  { %1680 = vmatprep.mubr.bf16.mxu1 %v3931_v7 }
  0x8a   :  { %1488 = vmatmul.mubr.bf16.gmra.mxu0 %v3933_v8 }
  0x8b   :  { %1681 = vmatmul.mubr.bf16.gmra.mxu1 %v3934_v9  ;;  %1497 = vmatprep.mubr.bf16.mxu0 %v3938_v10 }
  0x8c   :  { %1690 = vmatprep.mubr.bf16.mxu1 %v3940_v11 }
  0x92   :  { %1498 = vmatmul.mubr.bf16.gmra.mxu0 %v3942_v12 }
  0x93   :  { %1691 = vmatmul.mubr.bf16.gmra.mxu1 %v3943_v13  ;;  %1507 = vmatprep.mubr.bf16.mxu0 %v3947_v14 }
  0x94   :  { %1700 = vmatprep.mubr.bf16.mxu1 %v3949_v15 }
  0x9a   :  { %1508 = vmatmul.mubr.bf16.gmra.mxu0 %v3951_v16 }
  0x9b   :  { %1701 = vmatmul.mubr.bf16.gmra.mxu1 %v3952_v17  ;;  %1517 = vmatprep.mubr.bf16.mxu0 %v3956_v18 }
  0x9c   :  { %1710 = vmatprep.mubr.bf16.mxu1 %v3958_v20 }
  0xa2   :  { %1518 = vmatmul.mubr.bf16.gmra.mxu0 %v3960_v21 }
  0xa3   :  { %1711 = vmatmul.mubr.bf16.gmra.mxu1 %v3961_v22  ;;  %1527 = vmatprep.mubr.bf16.mxu0 %v3965_v23 }
  0xa4   :  { %1720 = vmatprep.mubr.bf16.mxu1 %v3967_v24 }
  0xa5   :  { %12 = vsyncpa [#allocation3], 0  ;;  %v3969_v25 = vld [vmem:[%s5798_s0 + $0x2d8] ss:$28 sps:$4 sm:$0xff]   ;;  %v3970_v26 = vld [vmem:[%s5798_s0 + $0x2e0] ss:$28 sps:$4 sm:$0xff]   ;;  %v256_v17 = vlaneseq }
  0xa6   :  { %v3974_v27 = vld [vmem:[%s5798_s0 + $0x314] ss:$28 sps:$4 sm:$0xff]   ;;  %v3976_v28 = vld [vmem:[%s5798_s0 + $0x31c] ss:$28 sps:$4 sm:$0xff]   ;;  %v3983_v31 = vld [vmem:[%s5798_s0 + $0x34c] ss:$28 sps:$4 sm:$0xff]  }
  0xa7   :  { %v3978_v29 = vld [vmem:[%s5798_s0 + $0x310] ss:$28 sps:$4 sm:$0xff]   ;;  %v3979_v30 = vld [vmem:[%s5798_s0 + $0x318] ss:$28 sps:$4 sm:$0xff]   ;;  %v3987_v33 = vld [vmem:[%s5798_s0 + $0x348] ss:$28 sps:$4 sm:$0xff]  }
  0xa8   :  { %v3985_v32 = vld [vmem:[%s5798_s0 + $0x354] ss:$28 sps:$4 sm:$0xff]   ;;  %v4270_v36 = vmov 0   ;;  %vm1316_vm0 = vcmask 130048   ;;  %v3996_v39 = vld [vmem:[%s5798_s0 + $0x4c] ss:$28 sps:$4 sm:$0xff]  }
  0xa9   :  { %v3988_v34 = vld [vmem:[%s5798_s0 + $0x350] ss:$28 sps:$4 sm:$0xff]   ;;  %v3995_v38 = vld [vmem:[%s5798_s0 + $0x18] ss:$28 sps:$4 sm:$0xff]   ;;  %v4043_v42 = vld [vmem:[%s5801_s3 + $0x60] ss:$8 sps:$4 sm:$0xff]  }
  0xaa   :  { %1528 = vmatmul.mubr.bf16.gmra.mxu0 %v3969_v25  ;;  %v3994_v35 = vld [vmem:[%s5798_s0 + $0x14] ss:$28 sps:$4 sm:$0xff]   ;;  %v4045_v41 = vld [vmem:[%s5801_s3 + $0x64] ss:$8 sps:$4 sm:$0xff]   ;;  %v4057_v49 = vld [vmem:[%s5801_s3 + $0x40] ss:$8 sps:$4 sm:$0xff]  }
  0xab   :  { %1721 = vmatmul.mubr.bf16.gmra.mxu1 %v3970_v26  ;;  %1537 = vmatprep.mubr.bf16.mxu0 %v3974_v27  ;;  %v3992_v37 = vld [vmem:[%s5798_s0 + $0x10] ss:$28 sps:$4 sm:$0xff]   ;;  %v4052_v43 = vld [vmem:[%s5801_s3 + $0x54] ss:$8 sps:$4 sm:$0xff]   ;;  %v3998_v44 = vld [vmem:[%s5798_s0 + $0x48] ss:$28 sps:$4 sm:$0xff]  }
  0xac   :  { %1730 = vmatprep.mubr.bf16.mxu1 %v3976_v28  ;;  %v4036_v40 = vld [vmem:[%s5801_s3 + $0x70] ss:$8 sps:$4 sm:$0xff]   ;;  %v4000_v46 = vld [vmem:[%s5798_s0 + $0x84] ss:$28 sps:$4 sm:$0xff]   ;;  %v4066_v50 = vld [vmem:[%s5801_s3 + $0x34] ss:$8 sps:$4 sm:$0xff]  }
  0xad   :  { %v3999_v45 = vld [vmem:[%s5798_s0 + $0x50] ss:$28 sps:$4 sm:$0xff]   ;;  %v4002_v51 = vld [vmem:[%s5798_s0 + $0x80] ss:$28 sps:$4 sm:$0xff]   ;;  %v4003_v52 = vld [vmem:[%s5798_s0 + $0x88] ss:$28 sps:$4 sm:$0xff]  }
  0xae   :  { %v4050_v47 = vld [vmem:[%s5801_s3 + $0x50] ss:$8 sps:$4 sm:$0xff]   ;;  %v4059_v48 = vld [vmem:[%s5801_s3 + $0x44] ss:$8 sps:$4 sm:$0xff]   ;;  %v4071_v56 = vld [vmem:[%s5801_s3 + $0x20] ss:$8 sps:$4 sm:$0xff]  }
  0xaf   :  { %v4004_v53 = vld [vmem:[%s5798_s0 + $0xbc] ss:$28 sps:$4 sm:$0xff]   ;;  %v4073_v55 = vld [vmem:[%s5801_s3 + $0x24] ss:$8 sps:$4 sm:$0xff]   ;;  %v4008_v60 = vld [vmem:[%s5798_s0 + $0xf4] ss:$28 sps:$4 sm:$0xff]  }
  0xb0   :  { %v4064_v54 = vld [vmem:[%s5801_s3 + $0x30] ss:$8 sps:$4 sm:$0xff]   ;;  %v4076_v57 = vld [vmem:[%s5801_s3 + $0x14] ss:$8 sps:$4 sm:$0xff]   ;;  %v4079_v62 = vld [vmem:[%s5801_s3 + $0x4] ss:$8 sps:$4 sm:$0xff]  }
  0xb1   :  { %v4006_v58 = vld [vmem:[%s5798_s0 + $0xb8] ss:$28 sps:$4 sm:$0xff]   ;;  %v4007_v59 = vld [vmem:[%s5798_s0 + $0xc0] ss:$28 sps:$4 sm:$0xff]   ;;  %v4010_v1 = vld [vmem:[%s5798_s0 + $0xf0] ss:$28 sps:$4 sm:$0xff]  }
  0xb2   :  { %1538 = vmatmul.mubr.bf16.gmra.mxu0 %v3978_v29  ;;  %v4074_v61 = vld [vmem:[%s5801_s3 + $0x10] ss:$8 sps:$4 sm:$0xff]   ;;  %v4077_v63 = vld [vmem:[%s5801_s3] ss:$8 sps:$4 sm:$0xff]   ;;  %v4082_v0 = vld [vmem:[%s5801_s3 + $0xf4] ss:$8 sps:$4 sm:$0xff]  }
  0xb3   :  { %1731 = vmatmul.mubr.bf16.gmra.mxu1 %v3979_v30  ;;  %1547 = vmatprep.mubr.bf16.mxu0 %v3983_v31  ;;  %v4011_v2 = vld [vmem:[%s5798_s0 + $0xf8] ss:$28 sps:$4 sm:$0xff]   ;;  %v4012_v3 = vld [vmem:[%s5798_s0 + $0x12c] ss:$28 sps:$4 sm:$0xff]   ;;  %v4016_v10 = vld [vmem:[%s5798_s0 + $0x164] ss:$28 sps:$4 sm:$0xff]  }
  0xb4   :  { %1740 = vmatprep.mubr.bf16.mxu1 %v3985_v32  ;;  %v4080_v4 = vld [vmem:[%s5801_s3 + $0xf0] ss:$8 sps:$4 sm:$0xff]   ;;  %v4085_v5 = vld [vmem:[%s5801_s3 + $0xe4] ss:$8 sps:$4 sm:$0xff]   ;;  %v4083_v6 = vld [vmem:[%s5801_s3 + $0xe0] ss:$8 sps:$4 sm:$0xff]  }
  0xb5   :  { %v4088_v7 = vld [vmem:[%s5801_s3 + $0xd4] ss:$8 sps:$4 sm:$0xff]   ;;  %v4014_v8 = vld [vmem:[%s5798_s0 + $0x128] ss:$28 sps:$4 sm:$0xff]   ;;  %v4015_v9 = vld [vmem:[%s5798_s0 + $0x130] ss:$28 sps:$4 sm:$0xff]  }
  0xb6   :  { %v4086_v11 = vld [vmem:[%s5801_s3 + $0xd0] ss:$8 sps:$4 sm:$0xff]   ;;  %v4089_v12 = vld [vmem:[%s5801_s3 + $0xc0] ss:$8 sps:$4 sm:$0xff]   ;;  %v4091_v13 = vld [vmem:[%s5801_s3 + $0xc4] ss:$8 sps:$4 sm:$0xff]  }
  0xb7   :  { %v4018_v14 = vld [vmem:[%s5798_s0 + $0x160] ss:$28 sps:$4 sm:$0xff]   ;;  %v4019_v15 = vld [vmem:[%s5798_s0 + $0x168] ss:$28 sps:$4 sm:$0xff]   ;;  %v4092_v18 = vld [vmem:[%s5801_s3 + $0xb0] ss:$8 sps:$4 sm:$0xff]  }
  0xb8   :  { %v4020_v16 = vld [vmem:[%s5798_s0 + $0x19c] ss:$28 sps:$4 sm:$0xff]   ;;  %v4024_v22 = vld [vmem:[%s5798_s0 + $0x1d4] ss:$28 sps:$4 sm:$0xff]   ;;  %v4968_v23 = vshrl.u32 %v256_v17, 7 }
  0xb9   :  { %v4094_v19 = vld [vmem:[%s5801_s3 + $0xb4] ss:$8 sps:$4 sm:$0xff]   ;;  %v254_v25 = vld [vmem:[%s5800_s2] sm:$0x3]  ;;  %v4097_v28 = vld [vmem:[%s5801_s3 + $0xa4] ss:$8 sps:$4 sm:$0xff]  }
  0xba   :  { %1548 = vmatmul.mubr.bf16.gmra.mxu0 %v3987_v33  ;;  %v4022_v20 = vld [vmem:[%s5798_s0 + $0x198] ss:$28 sps:$4 sm:$0xff]   ;;  %v4023_v21 = vld [vmem:[%s5798_s0 + $0x1a0] ss:$28 sps:$4 sm:$0xff]   ;;  %5810 = vst [vmem:[#allocation5_spill] sm:$0xff] %v4968_v23  ;;  %v5806_v24 = vsub.s32 0, %v4968_v23 }
  0xbb   :  { %1741 = vmatmul.mubr.bf16.gmra.mxu1 %v3988_v34  ;;  %1783 = vmatprep.mubr.bf16.mxu0 %v3994_v35  ;;  %v5807_v26 = vsub.s32 1, %v4968_v23  ;;  %v4095_v27 = vld [vmem:[%s5801_s3 + $0xa0] ss:$8 sps:$4 sm:$0xff]   ;;  %v4026_v29 = vld [vmem:[%s5798_s0 + $0x1d0] ss:$28 sps:$4 sm:$0xff]  }
  0xbc   :  { %1976 = vmatprep.mubr.bf16.mxu1 %v4270_v36  ;;  %v4027_v30 = vld [vmem:[%s5798_s0 + $0x1d8] ss:$28 sps:$4 sm:$0xff]   ;;  %v4991_v31 = vrot.slane %v254_v25, %v5806_v24  ;;  %v4028_v32 = vld [vmem:[%s5798_s0 + $0x20c] ss:$28 sps:$4 sm:$0xff]  }
  0xbd   :  { %v4998_v33 = vrot.slane %v254_v25, %v5807_v26  ;;  %v4042_v25 = vld [vmem:[%s5798_s0 + $0x280] ss:$28 sps:$4 sm:$0xff]  }
  0xc2   :  { %1784 = vmatmul.mubr.bf16.vlgmr.msra.gmra.mxu0 %v3992_v37 }
  0xc3   :  { %3568 = vmatmul.mubr.msk.bf16.vlgmr.msra.gmra.mxu1 %vm1316_vm0, %v3995_v38  ;;  %1793 = vmatprep.mubr.bf16.mxu0 %v3996_v39 }
  0xc4   :  { %1986 = vmatprep.mubr.bf16.mxu1 %v4270_v36  ;;  %2438 = vmatpush1.bf16.msra.mxu0 %v4036_v40 }
  0xc5   :  { %2439 = vmatprep.subr.bf16.mxu0 %v4045_v41 }
  0xc8   :  { %2440 = vmatpush1.bf16.msra.mxu0 %v4043_v42 }
  0xc9   :  { %2441 = vmatprep.subr.bf16.mxu0 %v4052_v43 }
  0xca   :  { %1794 = vmatmul.mubr.bf16.gmra.mxu0 %v3998_v44  ;;  %v4030_v44 = vld [vmem:[%s5798_s0 + $0x208] ss:$28 sps:$4 sm:$0xff]  }
  0xcb   :  { %3569 = vmatmul.mubr.msk.bf16.gmra.mxu1 %vm1316_vm0, %v3999_v45  ;;  %1803 = vmatprep.mubr.bf16.mxu0 %v4000_v46  ;;  %v4031_v45 = vld [vmem:[%s5798_s0 + $0x210] ss:$28 sps:$4 sm:$0xff]  }
  0xcc   :  { %1996 = vmatprep.mubr.bf16.mxu1 %v4270_v36  ;;  %2442 = vmatpush1.bf16.msra.mxu0 %v4050_v47 }
  0xcd   :  { %2443 = vmatprep.subr.bf16.mxu0 %v4059_v48  ;;  %v4032_v48 = vld [vmem:[%s5798_s0 + $0x244] ss:$28 sps:$4 sm:$0xff]  }
  0xd0   :  { %2444 = vmatpush1.bf16.msra.mxu0 %v4057_v49  ;;  %v4100_v49 = vld [vmem:[%s5801_s3 + $0x94] ss:$8 sps:$4 sm:$0xff]  }
  0xd1   :  { %2445 = vmatprep.subr.bf16.mxu0 %v4066_v50 }
  0xd2   :  { %1804 = vmatmul.mubr.bf16.gmra.mxu0 %v4002_v51 }
  0xd3   :  { %3570 = vmatmul.mubr.msk.bf16.gmra.mxu1 %vm1316_vm0, %v4003_v52  ;;  %1813 = vmatprep.mubr.bf16.mxu0 %v4004_v53  ;;  %v4098_v52 = vld [vmem:[%s5801_s3 + $0x90] ss:$8 sps:$4 sm:$0xff]  }
  0xd4   :  { %2006 = vmatprep.mubr.bf16.mxu1 %v4270_v36  ;;  %2446 = vmatpush1.bf16.msra.mxu0 %v4064_v54 }
  0xd5   :  { %2447 = vmatprep.subr.bf16.mxu0 %v4073_v55 }
  0xd8   :  { %2448 = vmatpush1.bf16.msra.mxu0 %v4071_v56 }
  0xd9   :  { %2449 = vmatprep.subr.bf16.mxu0 %v4076_v57 }
  0xda   :  { %1814 = vmatmul.mubr.bf16.gmra.mxu0 %v4006_v58 }
  0xdb   :  { %3571 = vmatmul.mubr.msk.bf16.gmra.mxu1 %vm1316_vm0, %v4007_v59  ;;  %1823 = vmatprep.mubr.bf16.mxu0 %v4008_v60 }
  0xdc   :  { %2016 = vmatprep.mubr.bf16.mxu1 %v4270_v36  ;;  %2450 = vmatpush1.bf16.msra.mxu0 %v4074_v61  ;;  %v4103_v61 = vld [vmem:[%s5801_s3 + $0x84] ss:$8 sps:$4 sm:$0xff]  }
  0xdd   :  { %2451 = vmatprep.subr.bf16.mxu0 %v4079_v62 }
  0xe0   :  { %2452 = vmatpush1.bf16.msra.mxu0 %v4077_v63 }
  0xe1   :  { %2453 = vmatprep.subr.bf16.mxu0 %v4082_v0  ;;  %v4101_v0 = vld [vmem:[%s5801_s3 + $0x80] ss:$8 sps:$4 sm:$0xff]  }
  0xe2   :  { %1824 = vmatmul.mubr.bf16.gmra.mxu0 %v4010_v1 }
  0xe3   :  { %3572 = vmatmul.mubr.msk.bf16.gmra.mxu1 %vm1316_vm0, %v4011_v2  ;;  %1833 = vmatprep.mubr.bf16.mxu0 %v4012_v3  ;;  %v4034_v3 = vld [vmem:[%s5798_s0 + $0x240] ss:$28 sps:$4 sm:$0xff]  }
  0xe4   :  { %2026 = vmatprep.mubr.bf16.mxu1 %v4270_v36  ;;  %2454 = vmatpush2.bf16.msra.mxu0 %v4080_v4  ;;  %v4035_v4 = vld [vmem:[%s5798_s0 + $0x248] ss:$28 sps:$4 sm:$0xff]  }
  0xe5   :  { %2455 = vmatprep.subr.bf16.mxu0 %v4085_v5 }
  0xe8   :  { %2456 = vmatpush2.bf16.msra.mxu0 %v4083_v6 }
  0xe9   :  { %2457 = vmatprep.subr.bf16.mxu0 %v4088_v7  ;;  %v4039_v7 = vld [vmem:[%s5798_s0 + $0x27c] ss:$28 sps:$4 sm:$0xff]  }
  0xea   :  { %1834 = vmatmul.mubr.bf16.gmra.mxu0 %v4014_v8 }
  0xeb   :  { %3573 = vmatmul.mubr.msk.bf16.gmra.mxu1 %vm1316_vm0, %v4015_v9  ;;  %1843 = vmatprep.mubr.bf16.mxu0 %v4016_v10 }
  0xec   :  { %2036 = vmatprep.mubr.bf16.mxu1 %v4270_v36  ;;  %2458 = vmatpush2.bf16.msra.mxu0 %v4086_v11 }
  0xed   :  { %2459 = vmatprep.subr.bf16.mxu0 %v4091_v13 }
  0xf0   :  { %2460 = vmatpush2.bf16.msra.mxu0 %v4089_v12 }
  0xf1   :  { %2461 = vmatprep.subr.bf16.mxu0 %v4094_v19 }
  0xf2   :  { %1844 = vmatmul.mubr.bf16.gmra.mxu0 %v4018_v14 }
  0xf3   :  { %3574 = vmatmul.mubr.msk.bf16.gmra.mxu1 %vm1316_vm0, %v4019_v15  ;;  %1853 = vmatprep.mubr.bf16.mxu0 %v4020_v16 }
  0xf4   :  { %2046 = vmatprep.mubr.bf16.mxu1 %v4270_v36  ;;  %2462 = vmatpush2.bf16.msra.mxu0 %v4092_v18 }
  0xf5   :  { %2463 = vmatprep.subr.bf16.mxu0 %v4097_v28 }
  0xf8   :  { %2464 = vmatpush2.bf16.msra.mxu0 %v4095_v27 }
  0xf9   :  { %2465 = vmatprep.subr.bf16.mxu0 %v4100_v49  ;;  %v4046_v49 = vld [vmem:[%s5798_s0 + $0x2b0] ss:$28 sps:$4 sm:$0xff]  }
  0xfa   :  { %1854 = vmatmul.mubr.bf16.gmra.mxu0 %v4022_v20 }
  0xfb   :  { %3575 = vmatmul.mubr.msk.bf16.gmra.mxu1 %vm1316_vm0, %v4023_v21  ;;  %1863 = vmatprep.mubr.bf16.mxu0 %v4024_v22  ;;  %v4041_v22 = vld [vmem:[%s5798_s0 + $0x278] ss:$28 sps:$4 sm:$0xff]  }
  0xfc   :  { %2056 = vmatprep.mubr.bf16.mxu1 %v4270_v36  ;;  %2466 = vmatpush2.bf16.msra.mxu0 %v4098_v52 }
  0xfd   :  { %2467 = vmatprep.subr.bf16.mxu0 %v4103_v61 }
 0x100   :  { %2468 = vmatpush2.bf16.msra.mxu0 %v4101_v0 }
 0x102   :  { %v1399_v34 = vpop.f32.mrf.mxu0  ;;  %1864 = vmatmul.mubr.bf16.gmra.mxu0 %v4026_v29  ;;  %v4048_v29 = vld [vmem:[%s5798_s0 + $0x2b4] ss:$28 sps:$4 sm:$0xff]  }
 0x103   :  { %v1592_v35 = vpop.f32.mrf.mxu1  ;;  %3576 = vmatmul.mubr.msk.bf16.gmra.mxu1 %vm1316_vm0, %v4027_v30  ;;  %v1400_v37 = vadd.f32 %v1399_v34, %v4991_v31  ;;  %1873 = vmatprep.mubr.bf16.mxu0 %v4028_v32 }
 0x104   :  { %2066 = vmatprep.mubr.bf16.mxu1 %v4270_v36  ;;  %v1401_v38 = vpop.f32.mrf.mxu0 }
 0x105   :  { %v1594_v39 = vpop.f32.mrf.mxu1  ;;  %v5003_v40 = vadd.f32 %v1592_v35, %v1400_v37  ;;  %v1402_v41 = vadd.f32 %v1401_v38, %v4998_v33 }
 0x106   :  { %v1403_v42 = vpop.f32.mrf.mxu0 }
 0x107   :  { %v1596_v43 = vpop.f32.mrf.mxu1  ;;  %v5012_v46 = vadd.f32 %v1594_v39, %v1402_v41  ;;  %v1404_v47 = vadd.f32 %v1403_v42, %v4991_v31 }
 0x108   :  { %v1405_v50 = vpop.f32.mrf.mxu0 }
 0x109   :  { %v1598_v51 = vpop.f32.mrf.mxu1  ;;  %v5024_v53 = vadd.f32 %v1596_v43, %v1404_v47  ;;  %v1406_v54 = vadd.f32 %v1405_v50, %v4998_v33  ;;  %v4049_v50 = vld [vmem:[%s5798_s0 + $0x2b8] ss:$28 sps:$4 sm:$0xff]  }
 0x10a   :  { %v1409_v55 = vpop.f32.mrf.mxu0  ;;  %1874 = vmatmul.mubr.bf16.gmra.mxu0 %v4030_v44 }
 0x10b   :  { %v1602_v56 = vpop.f32.mrf.mxu1  ;;  %3577 = vmatmul.mubr.msk.bf16.gmra.mxu1 %vm1316_vm0, %v4031_v45  ;;  %v5028_v57 = vadd.f32 %v1598_v51, %v1406_v54  ;;  %v1410_v58 = vadd.f32 %v1409_v55, %v4991_v31  ;;  %1883 = vmatprep.mubr.bf16.mxu0 %v4032_v48  ;;  %v4055_v54 = vld [vmem:[%s5798_s0 + $0x2ec] ss:$28 sps:$4 sm:$0xff]  }
 0x10c   :  { %2076 = vmatprep.mubr.bf16.mxu1 %v4270_v36  ;;  %v1411_v59 = vpop.f32.mrf.mxu0 }
 0x10d   :  { %v1604_v60 = vpop.f32.mrf.mxu1  ;;  %v5035_v62 = vadd.f32 %v1602_v56, %v1410_v58  ;;  %v1412_v63 = vadd.f32 %v1411_v59, %v4998_v33 }
 0x10e   :  { %v1413_v1 = vpop.f32.mrf.mxu0 }
 0x10f   :  { %v1606_v2 = vpop.f32.mrf.mxu1  ;;  %v5047_v5 = vadd.f32 %v1604_v60, %v1412_v63  ;;  %v1414_v6 = vadd.f32 %v1413_v1, %v4991_v31 }
 0x110   :  { %v1415_v8 = vpop.f32.mrf.mxu0 }
 0x111   :  { %v1608_v9 = vpop.f32.mrf.mxu1  ;;  %v5053_v10 = vadd.f32 %v1606_v2, %v1414_v6  ;;  %v1416_v11 = vadd.f32 %v1415_v8, %v4998_v33  ;;  %v4053_v8 = vld [vmem:[%s5798_s0 + $0x2e8] ss:$28 sps:$4 sm:$0xff]  }
 0x112   :  { %v1419_v12 = vpop.f32.mrf.mxu0  ;;  %1884 = vmatmul.mubr.bf16.gmra.mxu0 %v4034_v3 }
 0x113   :  { %v1612_v13 = vpop.f32.mrf.mxu1  ;;  %3578 = vmatmul.mubr.msk.bf16.gmra.mxu1 %vm1316_vm0, %v4035_v4  ;;  %v5057_v14 = vadd.f32 %v1608_v9, %v1416_v11  ;;  %v1420_v15 = vadd.f32 %v1419_v12, %v4991_v31  ;;  %1893 = vmatprep.mubr.bf16.mxu0 %v4039_v7  ;;  %v4056_v9 = vld [vmem:[%s5798_s0 + $0x2f0] ss:$28 sps:$4 sm:$0xff]  }
 0x114   :  { %2086 = vmatprep.mubr.bf16.mxu1 %v4270_v36  ;;  %v1421_v16 = vpop.f32.mrf.mxu0 }
 0x115   :  { %v1614_v17 = vpop.f32.mrf.mxu1  ;;  %v5061_v18 = vadd.f32 %v1612_v13, %v1420_v15  ;;  %v1422_v19 = vadd.f32 %v1421_v16, %v4998_v33  ;;  %v4062_v13 = vld [vmem:[%s5798_s0 + $0x324] ss:$28 sps:$4 sm:$0xff]  }
 0x116   :  { %v1423_v20 = vpop.f32.mrf.mxu0 }
 0x117   :  { %v1616_v21 = vpop.f32.mrf.mxu1  ;;  %v5070_v27 = vadd.f32 %v1614_v17, %v1422_v19  ;;  %v1424_v28 = vadd.f32 %v1423_v20, %v4991_v31 }
 0x118   :  { %v1425_v30 = vpop.f32.mrf.mxu0 }
 0x119   :  { %v1618_v32 = vpop.f32.mrf.mxu1  ;;  %v5076_v34 = vadd.f32 %v1616_v21, %v1424_v28  ;;  %v1426_v35 = vadd.f32 %v1425_v30, %v4998_v33 }
 0x11a   :  { %v1429_v37 = vpop.f32.mrf.mxu0  ;;  %1894 = vmatmul.mubr.bf16.gmra.mxu0 %v4041_v22 }
 0x11b   :  { %v1622_v38 = vpop.f32.mrf.mxu1  ;;  %3579 = vmatmul.mubr.msk.bf16.gmra.mxu1 %vm1316_vm0, %v4042_v25  ;;  %v5080_v39 = vadd.f32 %v1618_v32, %v1426_v35  ;;  %v1430_v41 = vadd.f32 %v1429_v37, %v4991_v31  ;;  %1903 = vmatprep.mubr.bf16.mxu0 %v4048_v29  ;;  %v4060_v35 = vld [vmem:[%s5798_s0 + $0x320] ss:$28 sps:$4 sm:$0xff]   ;;  %v4063_v37 = vld [vmem:[%s5798_s0 + $0x328] ss:$28 sps:$4 sm:$0xff]  }
 0x11c   :  { %2096 = vmatprep.mubr.bf16.mxu1 %v4270_v36  ;;  %v1431_v42 = vpop.f32.mrf.mxu0 }
 0x11d   :  { %v1624_v43 = vpop.f32.mrf.mxu1  ;;  %v5084_v44 = vadd.f32 %v1622_v38, %v1430_v41  ;;  %v1432_v45 = vadd.f32 %v1431_v42, %v4998_v33  ;;  %v4069_v42 = vld [vmem:[%s5798_s0 + $0x35c] ss:$28 sps:$4 sm:$0xff]  }
 0x11e   :  { %v1433_v47 = vpop.f32.mrf.mxu0 }
 0x11f   :  { %v1626_v48 = vpop.f32.mrf.mxu1  ;;  %v5093_v51 = vadd.f32 %v1624_v43, %v1432_v45  ;;  %v1434_v52 = vadd.f32 %v1433_v47, %v4991_v31 }
 0x120   :  { %v1435_v55 = vpop.f32.mrf.mxu0 }
 0x121   :  { %v1628_v56 = vpop.f32.mrf.mxu1  ;;  %v5099_v58 = vadd.f32 %v1626_v48, %v1434_v52  ;;  %v1436_v59 = vadd.f32 %v1435_v55, %v4998_v33 }
 0x122   :  { %v1439_v60 = vpop.f32.mrf.mxu0  ;;  %1904 = vmatmul.mubr.bf16.gmra.mxu0 %v4046_v49 }
 0x123   :  { %v1632_v61 = vpop.f32.mrf.mxu1  ;;  %3580 = vmatmul.mubr.msk.bf16.gmra.mxu1 %vm1316_vm0, %v4049_v50  ;;  %v5103_v63 = vadd.f32 %v1628_v56, %v1436_v59  ;;  %v1440_v0 = vadd.f32 %v1439_v60, %v4991_v31  ;;  %1913 = vmatprep.mubr.bf16.mxu0 %v4055_v54 }
 0x124   :  { %2106 = vmatprep.mubr.bf16.mxu1 %v4270_v36  ;;  %v1441_v1 = vpop.f32.mrf.mxu0 }
 0x125   :  { %v1634_v2 = vpop.f32.mrf.mxu1  ;;  %v5107_v3 = vadd.f32 %v1632_v61, %v1440_v0  ;;  %v1442_v4 = vadd.f32 %v1441_v1, %v4998_v33  ;;  %v4067_v61 = vld [vmem:[%s5798_s0 + $0x358] ss:$28 sps:$4 sm:$0xff]   ;;  %v4070_v0 = vld [vmem:[%s5798_s0 + $0x360] ss:$28 sps:$4 sm:$0xff]  }
 0x126   :  { %v1443_v6 = vpop.f32.mrf.mxu0 }
 0x127   :  { %v1636_v7 = vpop.f32.mrf.mxu1  ;;  %v5116_v11 = vadd.f32 %v1634_v2, %v1442_v4  ;;  %v1444_v12 = vadd.f32 %v1443_v6, %v4991_v31 }
 0x128   :  { %v5122_v15 = vpop.f32.mrf.mxu0 }
 0x129   :  { %v5124_v16 = vpop.f32.mrf.mxu1  ;;  %v5126_v17 = vadd.f32 %v1636_v7, %v1444_v12 }
 0x12a   :  { %v1449_v19 = vpop.f32.mrf.mxu0  ;;  %1914 = vmatmul.mubr.bf16.gmra.mxu0 %v4053_v8 }
 0x12b   :  { %v1642_v20 = vpop.f32.mrf.mxu1  ;;  %3581 = vmatmul.mubr.msk.bf16.gmra.mxu1 %vm1316_vm0, %v4056_v9  ;;  %v1450_v21 = vadd.f32 %v1449_v19, %v4991_v31  ;;  %1923 = vmatprep.mubr.bf16.mxu0 %v4062_v13 }
 0x12c   :  { %2116 = vmatprep.mubr.bf16.mxu1 %v4270_v36  ;;  %v1451_v22 = vpop.f32.mrf.mxu0 }
 0x12d   :  { %v1644_v25 = vpop.f32.mrf.mxu1  ;;  %v5131_v28 = vadd.f32 %v1642_v20, %v1450_v21  ;;  %v1452_v29 = vadd.f32 %v1451_v22, %v4998_v33 }
 0x12e   :  { %v1453_v30 = vpop.f32.mrf.mxu0 }
 0x12f   :  { %v1646_v32 = vpop.f32.mrf.mxu1  ;;  %v5140_v38 = vadd.f32 %v1644_v25, %v1452_v29  ;;  %v1454_v41 = vadd.f32 %v1453_v30, %v4991_v31 }
 0x130   :  { %v5146_v43 = vpop.f32.mrf.mxu0 }
 0x131   :  { %v5148_v45 = vpop.f32.mrf.mxu1  ;;  %v5150_v47 = vadd.f32 %v1646_v32, %v1454_v41 }
 0x132   :  { %v1459_v48 = vpop.f32.mrf.mxu0  ;;  %1924 = vmatmul.mubr.bf16.gmra.mxu0 %v4060_v35 }
 0x133   :  { %v1652_v49 = vpop.f32.mrf.mxu1  ;;  %3582 = vmatmul.mubr.msk.bf16.gmra.mxu1 %vm1316_vm0, %v4063_v37  ;;  %v1460_v50 = vadd.f32 %v1459_v48, %v4991_v31  ;;  %1933 = vmatprep.mubr.bf16.mxu0 %v4069_v42 }
 0x134   :  { %2126 = vmatprep.mubr.bf16.mxu1 %v4270_v36  ;;  %v1461_v52 = vpop.f32.mrf.mxu0 }
 0x135   :  { %v1654_v54 = vpop.f32.mrf.mxu1  ;;  %v5155_v55 = vadd.f32 %v1652_v49, %v1460_v50  ;;  %v1462_v56 = vadd.f32 %v1461_v52, %v4998_v33 }
 0x136   :  { %v1463_v59 = vpop.f32.mrf.mxu0 }
 0x137   :  { %v1656_v60 = vpop.f32.mrf.mxu1  ;;  %v5164_v1 = vadd.f32 %v1654_v54, %v1462_v56  ;;  %v1464_v36 = vadd.f32 %v1463_v59, %v4991_v31 }
 0x138   :  { %v5167_v2 = vpop.f32.mrf.mxu0 }
 0x139   :  { %v5169_v4 = vpop.f32.mrf.mxu1  ;;  %v5171_v6 = vadd.f32 %v1656_v60, %v1464_v36 }
 0x13a   :  { %v1469_v7 = vpop.f32.mrf.mxu0  ;;  %1934 = vmatmul.mubr.bf16.gmra.mxu0 %v4067_v61 }
 0x13b   :  { %v1662_v8 = vpop.f32.mrf.mxu1  ;;  %3583 = vmatmul.mubr.msk.bf16.gmra.mxu1 %vm1316_vm0, %v4070_v0  ;;  %v1470_v9 = vadd.f32 %v1469_v7, %v4991_v31 }
 0x13c   :  { %v1471_v12 = vpop.f32.mrf.mxu0 }
 0x13d   :  { %v1664_v13 = vpop.f32.mrf.mxu1  ;;  %v5175_v19 = vadd.f32 %v1662_v8, %v1470_v9  ;;  %v1472_v20 = vadd.f32 %v1471_v12, %v4998_v33 }
 0x13e   :  { %v1473_v21 = vpop.f32.mrf.mxu0 }
 0x13f   :  { %v1666_v22 = vpop.f32.mrf.mxu1  ;;  %v5178_v25 = vadd.f32 %v1664_v13, %v1472_v20  ;;  %v1474_v29 = vadd.f32 %v1473_v21, %v4991_v31 }
 0x140   :  { %v5181_v30 = vpop.f32.mrf.mxu0 }
 0x141   :  { %v5183_v32 = vpop.f32.mrf.mxu1  ;;  %v5185_v35 = vadd.f32 %v1666_v22, %v1474_v29 }
 0x142   :  { %v1479_v37 = vpop.f32.mrf.mxu0 }
 0x143   :  { %v1672_v41 = vpop.f32.mrf.mxu1  ;;  %v1480_v42 = vadd.f32 %v1479_v37, %v4991_v31 }
 0x144   :  { %v1481_v48 = vpop.f32.mrf.mxu0 }
 0x145   :  { %v1674_v49 = vpop.f32.mrf.mxu1  ;;  %v5188_v50 = vadd.f32 %v1672_v41, %v1480_v42  ;;  %v1482_v52 = vadd.f32 %v1481_v48, %v4998_v33 }
 0x146   :  { %v1483_v54 = vpop.f32.mrf.mxu0 }
 0x147   :  { %v1676_v56 = vpop.f32.mrf.mxu1  ;;  %v5191_v59 = vadd.f32 %v1674_v49, %v1482_v52  ;;  %v1484_v60 = vadd.f32 %v1483_v54, %v4991_v31 }
 0x148   :  { %v5194_v61 = vpop.f32.mrf.mxu0 }
 0x149   :  { %v5196_v0 = vpop.f32.mrf.mxu1  ;;  %v5198_v36 = vadd.f32 %v1676_v56, %v1484_v60 }
 0x14a   :  { %v1489_v7 = vpop.f32.mrf.mxu0 }
 0x14b   :  { %v1682_v8 = vpop.f32.mrf.mxu1  ;;  %v1490_v9 = vadd.f32 %v1489_v7, %v4991_v31 }
 0x14c   :  { %v1491_v12 = vpop.f32.mrf.mxu0 }
 0x14d   :  { %v1684_v13 = vpop.f32.mrf.mxu1  ;;  %v5201_v20 = vadd.f32 %v1682_v8, %v1490_v9  ;;  %v1492_v21 = vadd.f32 %v1491_v12, %v4998_v33 }
 0x14e   :  { %v1493_v22 = vpop.f32.mrf.mxu0 }
 0x14f   :  { %v1686_v29 = vpop.f32.mrf.mxu1  ;;  %v5204_v37 = vadd.f32 %v1684_v13, %v1492_v21  ;;  %v1494_v41 = vadd.f32 %v1493_v22, %v4991_v31 }
 0x150   :  { %v5207_v42 = vpop.f32.mrf.mxu0 }
 0x151   :  { %v5209_v48 = vpop.f32.mrf.mxu1  ;;  %v5211_v49 = vadd.f32 %v1686_v29, %v1494_v41 }
 0x152   :  { %v1499_v52 = vpop.f32.mrf.mxu0 }
 0x153   :  { %5811 = vst [vmem:[#allocation6_spill] sm:$0xff] %v5211_v49  ;;  %v1692_v54 = vpop.f32.mrf.mxu1  ;;  %v1500_v56 = vadd.f32 %v1499_v52, %v4991_v31 }
 0x154   :  { %v1501_v60 = vpop.f32.mrf.mxu0 }
 0x155   :  { %v1694_v7 = vpop.f32.mrf.mxu1  ;;  %v5214_v8 = vadd.f32 %v1692_v54, %v1500_v56  ;;  %v1502_v9 = vadd.f32 %v1501_v60, %v4998_v33 }
 0x156   :  { %v1503_v12 = vpop.f32.mrf.mxu0 }
 0x157   :  { %5812 = vst [vmem:[#allocation7_spill] sm:$0xff] %v5214_v8  ;;  %v1696_v13 = vpop.f32.mrf.mxu1  ;;  %v5217_v21 = vadd.f32 %v1694_v7, %v1502_v9  ;;  %v1504_v22 = vadd.f32 %v1503_v12, %v4991_v31 }
 0x158   :  { %v5220_v24 = vpop.f32.mrf.mxu0 }
 0x159   :  { %5813 = vst [vmem:[#allocation8_spill] sm:$0xff] %v5217_v21  ;;  %5814 = vst [vmem:[#allocation9_spill] sm:$0xff] %v5220_v24  ;;  %v5222_v29 = vpop.f32.mrf.mxu1  ;;  %v5224_v41 = vadd.f32 %v1696_v13, %v1504_v22 }
 0x15a   :  { %5815 = vst [vmem:[#allocation10_spill] sm:$0xff] %v5222_v29  ;;  %v1509_v26 = vpop.f32.mrf.mxu0 }
 0x15b   :  { %5816 = vst [vmem:[#allocation11_spill] sm:$0xff] %v5224_v41  ;;  %v1702_v52 = vpop.f32.mrf.mxu1  ;;  %v1510_v23 = vadd.f32 %v1509_v26, %v4991_v31 }
 0x15c   :  { %v1511_v54 = vpop.f32.mrf.mxu0 }
 0x15d   :  { %v1704_v56 = vpop.f32.mrf.mxu1  ;;  %v5227_v8 = vadd.f32 %v1702_v52, %v1510_v23  ;;  %v1512_v60 = vadd.f32 %v1511_v54, %v4998_v33 }
 0x15e   :  { %v1513_v7 = vpop.f32.mrf.mxu0 }
 0x15f   :  { %5817 = vst [vmem:[#allocation12_spill] sm:$0xff] %v5227_v8  ;;  %v1706_v9 = vpop.f32.mrf.mxu1  ;;  %v5230_v21 = vadd.f32 %v1704_v56, %v1512_v60  ;;  %v1514_v12 = vadd.f32 %v1513_v7, %v4991_v31 }
 0x160   :  { %v5233_v24 = vpop.f32.mrf.mxu0 }
 0x161   :  { %5818 = vst [vmem:[#allocation13_spill] sm:$0xff] %v5230_v21  ;;  %5819 = vst [vmem:[#allocation14_spill] sm:$0xff] %v5233_v24  ;;  %v5235_v13 = vpop.f32.mrf.mxu1  ;;  %v5237_v22 = vadd.f32 %v1706_v9, %v1514_v12  ;;  %v4104_v9 = vld [vmem:[%s5803_s5 + $0x78] sm:$0xff]  }
 0x162   :  { %5820 = vst [vmem:[#allocation15_spill] sm:$0xff] %v5235_v13  ;;  %v1519_v41 = vpop.f32.mrf.mxu0  ;;  %3633 = vmatprep.subr.bf16.mxu1 %v4104_v9 }
 0x163   :  { %5821 = vst [vmem:[#allocation16_spill] sm:$0xff] %v5237_v22  ;;  %v1712_v26 = vpop.f32.mrf.mxu1  ;;  %v1520_v29 = vadd.f32 %v1519_v41, %v4991_v31  ;;  %v4105_v41 = vld [vmem:[%s5803_s5 + $0x38] sm:$0xff]  }
 0x164   :  { %v1521_v23 = vpop.f32.mrf.mxu0  ;;  %3634 = vmatpush3.bf16.msra.mxu1 %v4105_v41 }
 0x165   :  { %v1714_v52 = vpop.f32.mrf.mxu1  ;;  %v5240_v8 = vadd.f32 %v1712_v26, %v1520_v29  ;;  %v1522_v54 = vadd.f32 %v1521_v23, %v4998_v33 }
 0x166   :  { %v1523_v56 = vpop.f32.mrf.mxu0 }
 0x167   :  { %5822 = vst [vmem:[#allocation17_spill] sm:$0xff] %v5240_v8  ;;  %v1716_v60 = vpop.f32.mrf.mxu1  ;;  %v5243_v21 = vadd.f32 %v1714_v52, %v1522_v54  ;;  %v1524_v7 = vadd.f32 %v1523_v56, %v4991_v31 }
 0x168   :  { %v5252_v12 = vpop.f32.mrf.mxu0 }
 0x169   :  { %5823 = vst [vmem:[#allocation18_spill] sm:$0xff] %v5243_v21  ;;  %5824 = vst [vmem:[#allocation19_spill] sm:$0xff] %v5252_v12  ;;  %v5254_v29 = vpop.f32.mrf.mxu1  ;;  %v5256_v26 = vadd.f32 %v1716_v60, %v1524_v7 }
 0x16a   :  { %5825 = vst [vmem:[#allocation20_spill] sm:$0xff] %v5254_v29  ;;  %v1529_v23 = vpop.f32.mrf.mxu0 }
 0x16b   :  { %5826 = vst [vmem:[#allocation21_spill] sm:$0xff] %v5256_v26  ;;  %v1722_v52 = vpop.f32.mrf.mxu1  ;;  %v1530_v54 = vadd.f32 %v1529_v23, %v4991_v31 }
 0x16c   :  { %v1531_v56 = vpop.f32.mrf.mxu0 }
 0x16d   :  { %v1724_v21 = vpop.f32.mrf.mxu1  ;;  %v5259_v8 = vadd.f32 %v1722_v52, %v1530_v54  ;;  %v1532_v22 = vadd.f32 %v1531_v56, %v4998_v33 }
 0x16e   :  { %v1533_v13 = vpop.f32.mrf.mxu0 }
 0x16f   :  { %5827 = vst [vmem:[#allocation22_spill] sm:$0xff] %v5259_v8  ;;  %v1726_v24 = vpop.f32.mrf.mxu1  ;;  %v5262_v49 = vadd.f32 %v1724_v21, %v1532_v22  ;;  %v1534_v29 = vadd.f32 %v1533_v13, %v4991_v31 }
 0x170   :  { %v5265_v60 = vpop.f32.mrf.mxu0 }
 0x171   :  { %5828 = vst [vmem:[#allocation23_spill] sm:$0xff] %v5262_v49  ;;  %5829 = vst [vmem:[#allocation24_spill] sm:$0xff] %v5265_v60  ;;  %v5267_v7 = vpop.f32.mrf.mxu1  ;;  %v5269_v9 = vadd.f32 %v1726_v24, %v1534_v29  ;;  %v4106_v24 = vld [vmem:[%s5803_s5 + $0x70] sm:$0xff]  }
 0x172   :  { %5830 = vst [vmem:[#allocation25_spill] sm:$0xff] %v5267_v7  ;;  %v1539_v41 = vpop.f32.mrf.mxu0  ;;  %v4107_v29 = vld [vmem:[%s5803_s5 + $0x30] sm:$0xff]   ;;  %3635 = vmatprep.subr.bf16.mxu1 %v4106_v24 }
 0x173   :  { %5831 = vst [vmem:[#allocation26_spill] sm:$0xff] %v5269_v9  ;;  %v1732_v23 = vpop.f32.mrf.mxu1  ;;  %v1540_v26 = vadd.f32 %v1539_v41, %v4991_v31  ;;  %3636 = vmatpush3.bf16.msra.mxu1 %v4107_v29 }
 0x174   :  { %v1541_v52 = vpop.f32.mrf.mxu0 }
 0x175   :  { %v1734_v54 = vpop.f32.mrf.mxu1  ;;  %v5272_v8 = vadd.f32 %v1732_v23, %v1540_v26  ;;  %v1542_v56 = vadd.f32 %v1541_v52, %v4998_v33 }
 0x176   :  { %v1543_v21 = vpop.f32.mrf.mxu0 }
 0x177   :  { %5832 = vst [vmem:[#allocation27_spill] sm:$0xff] %v5272_v8  ;;  %v1736_v22 = vpop.f32.mrf.mxu1  ;;  %v5275_v49 = vadd.f32 %v1734_v54, %v1542_v56  ;;  %v1544_v13 = vadd.f32 %v1543_v21, %v4991_v31 }
 0x178   :  { %v5284_v41 = vpop.f32.mrf.mxu0 }
 0x179   :  { %5833 = vst [vmem:[#allocation28_spill] sm:$0xff] %v5275_v49  ;;  %5834 = vst [vmem:[#allocation29_spill] sm:$0xff] %v5284_v41  ;;  %v5286_v26 = vpop.f32.mrf.mxu1  ;;  %v5288_v23 = vadd.f32 %v1736_v22, %v1544_v13 }
 0x17a   :  { %5835 = vst [vmem:[#allocation30_spill] sm:$0xff] %v5286_v26  ;;  %v1549_v52 = vpop.f32.mrf.mxu0 }
 0x17b   :  { %5836 = vst [vmem:[#allocation31_spill] sm:$0xff] %v5288_v23  ;;  %v1742_v54 = vpop.f32.mrf.mxu1  ;;  %v1550_v56 = vadd.f32 %v1549_v52, %v4991_v31 }
 0x17c   :  { %v1551_v21 = vpop.f32.mrf.mxu0 }
 0x17d   :  { %v1744_v49 = vpop.f32.mrf.mxu1  ;;  %v5291_v8 = vadd.f32 %v1742_v54, %v1550_v56  ;;  %v1552_v9 = vadd.f32 %v1551_v21, %v4998_v33 }
 0x17e   :  { %v1553_v7 = vpop.f32.mrf.mxu0 }
 0x17f   :  { %5837 = vst [vmem:[#allocation32_spill] sm:$0xff] %v5291_v8  ;;  %v1746_v60 = vpop.f32.mrf.mxu1  ;;  %v5294_v12 = vadd.f32 %v1744_v49, %v1552_v9  ;;  %v1554_v26 = vadd.f32 %v1553_v7, %v4991_v31  ;;  %v4108_v31 = vld [vmem:[%s5803_s5 + $0x68] sm:$0xff]  }
 0x180   :  { %v5297_v22 = vpop.f32.mrf.mxu0  ;;  %3637 = vmatprep.subr.bf16.mxu1 %v4108_v31 }
 0x181   :  { %5838 = vst [vmem:[#allocation33_spill] sm:$0xff] %v5294_v12  ;;  %5839 = vst [vmem:[#allocation34_spill] sm:$0xff] %v5297_v22  ;;  %v5299_v13 = vpop.f32.mrf.mxu1  ;;  %v5301_v24 = vadd.f32 %v1746_v60, %v1554_v26  ;;  %v4109_v60 = vld [vmem:[%s5803_s5 + $0x28] sm:$0xff]  }
 0x182   :  { %5840 = vst [vmem:[#allocation35_spill] sm:$0xff] %v5299_v13  ;;  %v1785_v29 = vpop.f32.mrf.mxu0  ;;  %3638 = vmatpush3.bf16.msra.mxu1 %v4109_v60 }
 0x183   :  { %5841 = vst [vmem:[#allocation36_spill] sm:$0xff] %v5301_v24  ;;  %v1978_v52 = vpop.f32.mrf.mxu1  ;;  %v1786_v23 = vadd.f32 %v1785_v29, %v5003_v40 }
 0x184   :  { %v1787_v54 = vpop.f32.mrf.mxu0 }
 0x185   :  { %v1980_v56 = vpop.f32.mrf.mxu1  ;;  %v1788_v21 = vadd.f32 %v1787_v54, %v5012_v46  ;;  %v1979_v49 = vadd.f32 %v1978_v52, %v1786_v23 }
 0x186   :  { %v1789_v8 = vpop.f32.mrf.mxu0 }
 0x187   :  { %v1982_v41 = vpop.f32.mrf.mxu1  ;;  %v1790_v9 = vadd.f32 %v1789_v8, %v5024_v53  ;;  %v1981_v40 = vadd.f32 %v1980_v56, %v1788_v21  ;;  %v4110_v53 = vld [vmem:[%s5803_s5 + $0x60] sm:$0xff]   ;;  %v2137_v23 = vmax.f32 %v1979_v49, 0.0 }
 0x188   :  { %v1791_v7 = vpop.f32.mrf.mxu0  ;;  %v4111_v8 = vld [vmem:[%s5803_s5 + $0x20] sm:$0xff]   ;;  %3639 = vmatprep.subr.bf16.mxu1 %v4110_v53 }
 0x189   :  { %v1984_v26 = vpop.f32.mrf.mxu1  ;;  %v1983_v29 = vadd.f32 %v1982_v41, %v1790_v9  ;;  %v1792_v24 = vadd.f32 %v1791_v7, %v5028_v57  ;;  %v4112_v57 = vld [vmem:[%s5803_s5 + $0x58] sm:$0xff]   ;;  %v2138_v9 = vmax.f32 %v1981_v40, 0.0  ;;  %3640 = vmatpush3.bf16.msra.mxu1 %v4111_v8  ;;  %v4114_v40 = vld [vmem:[%s5803_s5 + $0x50] sm:$0xff]  }
 0x18a   :  { %v1795_v46 = vpop.f32.mrf.mxu0  ;;  %3641 = vmatprep.subr.bf16.mxu1 %v4112_v57 }
 0x18b   :  { %v1988_v54 = vpop.f32.mrf.mxu1  ;;  %v2139_v52 = vmax.f32 %v1983_v29, 0.0  ;;  %v1985_v13 = vadd.f32 %v1984_v26, %v1792_v24  ;;  %v1796_v56 = vadd.f32 %v1795_v46, %v5035_v62  ;;  %v4113_v24 = vld [vmem:[%s5803_s5 + $0x18] sm:$0xff]  }
 0x18c   :  { %v1797_v41 = vpop.f32.mrf.mxu0 }
 0x18d   :  { %v1990_v21 = vpop.f32.mrf.mxu1  ;;  %v2201_v31 = vpack.c.bf16 %v2139_v52, %v2137_v23  ;;  %v2140_v60 = vmax.f32 %v1985_v13, 0.0  ;;  %v1798_v7 = vadd.f32 %v1797_v41, %v5047_v5  ;;  %v1989_v62 = vadd.f32 %v1988_v54, %v1796_v56  ;;  %3642 = vmatpush3.bf16.msra.mxu1 %v4113_v24  ;;  %v4117_v24 = vld [vmem:[%s5803_s5 + $0x8] sm:$0xff]  }
 0x18e   :  { %v1799_v12 = vpop.f32.mrf.mxu0  ;;  %3643 = vmatprep.subr.bf16.mxu1 %v4114_v40 }
 0x18f   :  { %v1992_v22 = vpop.f32.mrf.mxu1  ;;  %v1800_v49 = vadd.f32 %v1799_v12, %v5053_v10  ;;  %v2202_v26 = vpack.c.bf16 %v2140_v60, %v2138_v9  ;;  %v1991_v46 = vadd.f32 %v1990_v21, %v1798_v7  ;;  %v4115_v10 = vld [vmem:[%s5803_s5 + $0x10] sm:$0xff]   ;;  %v2141_v12 = vmax.f32 %v1989_v62, 0.0 }
 0x190   :  { %v1801_v29 = vpop.f32.mrf.mxu0 }
 0x191   :  { %v1994_v13 = vpop.f32.mrf.mxu1  ;;  %v1993_v5 = vadd.f32 %v1992_v22, %v1800_v49  ;;  %v1802_v53 = vadd.f32 %v1801_v29, %v5057_v14  ;;  %2469 = vmatprep.mubr.bf16.mxu0 %v2202_v26  ;;  %v4116_v22 = vld [vmem:[%s5803_s5 + $0x48] sm:$0xff]   ;;  %v2142_v41 = vmax.f32 %v1991_v46, 0.0  ;;  %3644 = vmatpush3.bf16.msra.mxu1 %v4115_v10  ;;  %v4118_v26 = vld [vmem:[%s5803_s5 + $0x40] sm:$0xff]  }
 0x192   :  { %v1805_v8 = vpop.f32.mrf.mxu0  ;;  %2470 = vmatmul.mubr.bf16.vlgmr.msra.gmra.mxu0 %v2201_v31  ;;  %3645 = vmatprep.subr.bf16.mxu1 %v4116_v22 }
 0x193   :  { %v1998_v23 = vpop.f32.mrf.mxu1  ;;  %v2143_v54 = vmax.f32 %v1993_v5, 0.0  ;;  %v1995_v52 = vadd.f32 %v1994_v13, %v1802_v53  ;;  %v1806_v56 = vadd.f32 %v1805_v8, %v5061_v18 }
 0x194   :  { %v1807_v14 = vpop.f32.mrf.mxu0 }
 0x195   :  { %v2000_v57 = vpop.f32.mrf.mxu1  ;;  %v2203_v21 = vpack.c.bf16 %v2143_v54, %v2141_v12  ;;  %v2144_v9 = vmax.f32 %v1995_v52, 0.0  ;;  %v1808_v31 = vadd.f32 %v1807_v14, %v5070_v27  ;;  %v1999_v18 = vadd.f32 %v1998_v23, %v1806_v56  ;;  %3646 = vmatpush3.bf16.msra.mxu1 %v4117_v24 }
 0x196   :  { %v1809_v60 = vpop.f32.mrf.mxu0  ;;  %3647 = vmatprep.subr.bf16.mxu1 %v4118_v26 }
 0x197   :  { %v2002_v7 = vpop.f32.mrf.mxu1  ;;  %v1810_v62 = vadd.f32 %v1809_v60, %v5076_v34  ;;  %v2204_v49 = vpack.c.bf16 %v2144_v9, %v2142_v41  ;;  %v2001_v13 = vadd.f32 %v2000_v57, %v1808_v31  ;;  %v4119_v34 = vld [vmem:[%s5803_s5] sm:$0xff]   ;;  %v2145_v8 = vmax.f32 %v1999_v18, 0.0 }
 0x198   :  { %v1811_v40 = vpop.f32.mrf.mxu0 }
 0x199   :  { %v2004_v29 = vpop.f32.mrf.mxu1  ;;  %v2003_v27 = vadd.f32 %v2002_v7, %v1810_v62  ;;  %v1812_v46 = vadd.f32 %v1811_v40, %v5080_v39  ;;  %2479 = vmatprep.mubr.bf16.mxu0 %v2204_v49  ;;  %v2146_v56 = vmax.f32 %v2001_v13, 0.0  ;;  %3648 = vmatpush3.bf16.msra.mxu1 %v4119_v34  ;;  %v1446_v62 = vadd.f32 %v5122_v15, %v4998_v33 }
 0x19a   :  { %v1815_v5 = vpop.f32.mrf.mxu0  ;;  %2480 = vmatmul.mubr.bf16.gmra.mxu0 %v2203_v21 }
 0x19b   :  { %v2008_v53 = vpop.f32.mrf.mxu1  ;;  %v2147_v23 = vmax.f32 %v2003_v27, 0.0  ;;  %v2005_v10 = vadd.f32 %v2004_v29, %v1812_v46  ;;  %v1816_v12 = vadd.f32 %v1815_v5, %v5084_v44 }
 0x19c   :  { %v1817_v54 = vpop.f32.mrf.mxu0 }
 0x19d   :  { %v2010_v52 = vpop.f32.mrf.mxu1  ;;  %v2205_v22 = vpack.c.bf16 %v2147_v23, %v2145_v8  ;;  %v2148_v39 = vmax.f32 %v2005_v10, 0.0  ;;  %v1818_v14 = vadd.f32 %v1817_v54, %v5093_v51  ;;  %v2009_v21 = vadd.f32 %v2008_v53, %v1816_v12 }
 0x19e   :  { %v1819_v57 = vpop.f32.mrf.mxu0  ;;  %v1639_v23 = vadd.f32 %v5124_v16, %v1446_v62 }
 0x19f   :  { %v2012_v41 = vpop.f32.mrf.mxu1  ;;  %v1820_v9 = vadd.f32 %v1819_v57, %v5099_v58  ;;  %v2206_v31 = vpack.c.bf16 %v2148_v39, %v2146_v56  ;;  %v2011_v24 = vadd.f32 %v2010_v52, %v1818_v14  ;;  %v2149_v51 = vmax.f32 %v2009_v21, 0.0 }
 0x1a0   :  { %v1821_v60 = vpop.f32.mrf.mxu0  ;;  %v1456_v39 = vadd.f32 %v5146_v43, %v4998_v33 }
 0x1a1   :  { %v2014_v7 = vpop.f32.mrf.mxu1  ;;  %v2013_v18 = vadd.f32 %v2012_v41, %v1820_v9  ;;  %v1822_v44 = vadd.f32 %v1821_v60, %v5103_v63  ;;  %2489 = vmatprep.mubr.bf16.mxu0 %v2206_v31  ;;  %v2150_v46 = vmax.f32 %v2011_v24, 0.0 }
 0x1a2   :  { %v1825_v49 = vpop.f32.mrf.mxu0  ;;  %2490 = vmatmul.mubr.bf16.gmra.mxu0 %v2205_v22  ;;  %v1649_v62 = vadd.f32 %v5148_v45, %v1456_v39 }
 0x1a3   :  { %v2018_v26 = vpop.f32.mrf.mxu1  ;;  %v2151_v40 = vmax.f32 %v2013_v18, 0.0  ;;  %v2015_v29 = vadd.f32 %v2014_v7, %v1822_v44  ;;  %v1826_v13 = vadd.f32 %v1825_v49, %v5107_v3 }
 0x1a4   :  { %v1827_v58 = vpop.f32.mrf.mxu0 }
 0x1a5   :  { %v2020_v27 = vpop.f32.mrf.mxu1  ;;  %v2207_v5 = vpack.c.bf16 %v2151_v40, %v2149_v51  ;;  %v2152_v53 = vmax.f32 %v2015_v29, 0.0  ;;  %v1828_v34 = vadd.f32 %v1827_v58, %v5116_v11  ;;  %v2019_v15 = vadd.f32 %v2018_v26, %v1826_v13 }
 0x1a6   :  { %v1829_v63 = vpop.f32.mrf.mxu0  ;;  %v1466_v58 = vadd.f32 %v5167_v2, %v4998_v33 }
 0x1a7   :  { %v2022_v8 = vpop.f32.mrf.mxu1  ;;  %v1830_v10 = vadd.f32 %v1829_v63, %v5126_v17  ;;  %v2208_v12 = vpack.c.bf16 %v2152_v53, %v2150_v46  ;;  %v2021_v56 = vadd.f32 %v2020_v27, %v1828_v34  ;;  %v2153_v11 = vmax.f32 %v2019_v15, 0.0 }
 0x1a8   :  { %v1831_v54 = vpop.f32.mrf.mxu0 }
 0x1a9   :  { %v2024_v52 = vpop.f32.mrf.mxu1  ;;  %v2023_v22 = vadd.f32 %v2022_v8, %v1830_v10  ;;  %v1832_v3 = vadd.f32 %v1831_v54, %v1639_v23  ;;  %2499 = vmatprep.mubr.bf16.mxu0 %v2208_v12  ;;  %v2154_v31 = vmax.f32 %v2021_v56, 0.0  ;;  %v1659_v54 = vadd.f32 %v5169_v4, %v1466_v58 }
 0x1aa   :  { %v1835_v14 = vpop.f32.mrf.mxu0  ;;  %2500 = vmatmul.mubr.bf16.gmra.mxu0 %v2207_v5 }
 0x1ab   :  { %v2028_v57 = vpop.f32.mrf.mxu1  ;;  %v2155_v41 = vmax.f32 %v2023_v22, 0.0  ;;  %v2025_v21 = vadd.f32 %v2024_v52, %v1832_v3  ;;  %v1836_v16 = vadd.f32 %v1835_v14, %v5131_v28 }
 0x1ac   :  { %v1837_v9 = vpop.f32.mrf.mxu0 }
 0x1ad   :  { %v2030_v17 = vpop.f32.mrf.mxu1  ;;  %v2209_v60 = vpack.c.bf16 %v2155_v41, %v2153_v11  ;;  %v2156_v7 = vmax.f32 %v2025_v21, 0.0  ;;  %v1838_v24 = vadd.f32 %v1837_v9, %v5140_v38  ;;  %v2029_v49 = vadd.f32 %v2028_v57, %v1836_v16 }
 0x1ae   :  { %v1839_v18 = vpop.f32.mrf.mxu0  ;;  %v1476_v57 = vadd.f32 %v5181_v30, %v4998_v33 }
 0x1af   :  { %v2032_v44 = vpop.f32.mrf.mxu1  ;;  %v2210_v43 = vpack.c.bf16 %v2156_v7, %v2154_v31  ;;  %v1840_v26 = vadd.f32 %v1839_v18, %v5150_v47  ;;  %v2031_v29 = vadd.f32 %v2030_v17, %v1838_v24  ;;  %v2157_v38 = vmax.f32 %v2029_v49, 0.0 }
 0x1b0   :  { %v1841_v51 = vpop.f32.mrf.mxu0 }
 0x1b1   :  { %v2034_v40 = vpop.f32.mrf.mxu1  ;;  %v2033_v13 = vadd.f32 %v2032_v44, %v1840_v26  ;;  %v1842_v28 = vadd.f32 %v1841_v51, %v1649_v62  ;;  %2509 = vmatprep.mubr.bf16.mxu0 %v2210_v43  ;;  %v2158_v47 = vmax.f32 %v2031_v29, 0.0  ;;  %v1669_v44 = vadd.f32 %v5183_v32, %v1476_v57 }
 0x1b2   :  { %v1845_v27 = vpop.f32.mrf.mxu0  ;;  %2510 = vmatmul.mubr.bf16.gmra.mxu0 %v2209_v60  ;;  %v1486_v29 = vadd.f32 %v5194_v61, %v4998_v33 }
 0x1b3   :  { %v2038_v46 = vpop.f32.mrf.mxu1  ;;  %v2159_v5 = vmax.f32 %v2033_v13, 0.0  ;;  %v2035_v53 = vadd.f32 %v2034_v40, %v1842_v28  ;;  %v1846_v45 = vadd.f32 %v1845_v27, %v5155_v55 }
 0x1b4   :  { %v1847_v34 = vpop.f32.mrf.mxu0 }
 0x1b5   :  { %v2040_v63 = vpop.f32.mrf.mxu1  ;;  %v2211_v8 = vpack.c.bf16 %v2159_v5, %v2157_v38  ;;  %v2160_v23 = vmax.f32 %v2035_v53, 0.0  ;;  %v1848_v15 = vadd.f32 %v1847_v34, %v5164_v1  ;;  %v2039_v52 = vadd.f32 %v2038_v46, %v1846_v45 }
 0x1b6   :  { %v1849_v10 = vpop.f32.mrf.mxu0 }
 0x1b7   :  { %v2042_v12 = vpop.f32.mrf.mxu1  ;;  %v2212_v2 = vpack.c.bf16 %v2160_v23, %v2158_v47  ;;  %v1850_v56 = vadd.f32 %v1849_v10, %v5171_v6  ;;  %v2041_v39 = vadd.f32 %v2040_v63, %v1848_v15  ;;  %v2161_v1 = vmax.f32 %v2039_v52, 0.0 }
 0x1b8   :  { %v1851_v22 = vpop.f32.mrf.mxu0  ;;  %v1679_v47 = vadd.f32 %v5196_v0, %v1486_v29  ;;  %v5845_v29 = vld [vmem:[#allocation8_spill] sm:$0xff] }
 0x1b9   :  { %v2044_v3 = vpop.f32.mrf.mxu1  ;;  %v2043_v14 = vadd.f32 %v2042_v12, %v1850_v56  ;;  %v1852_v55 = vadd.f32 %v1851_v22, %v1659_v54  ;;  %2519 = vmatprep.mubr.bf16.mxu0 %v2212_v2  ;;  %v2162_v6 = vmax.f32 %v2041_v39, 0.0  ;;  %v1496_v2 = vadd.f32 %v5207_v42, %v4998_v33 }
 0x1ba   :  { %v1855_v11 = vpop.f32.mrf.mxu0  ;;  %2520 = vmatmul.mubr.bf16.gmra.mxu0 %v2211_v8 }
 0x1bb   :  { %v2048_v41 = vpop.f32.mrf.mxu1  ;;  %v2163_v21 = vmax.f32 %v2043_v14, 0.0  ;;  %v2045_v16 = vadd.f32 %v2044_v3, %v1852_v55  ;;  %v1856_v4 = vadd.f32 %v1855_v11, %v5175_v19 }
 0x1bc   :  { %v1857_v9 = vpop.f32.mrf.mxu0 }
 0x1bd   :  { %v2050_v17 = vpop.f32.mrf.mxu1  ;;  %v2213_v31 = vpack.c.bf16 %v2163_v21, %v2161_v1  ;;  %v2164_v60 = vmax.f32 %v2045_v16, 0.0  ;;  %v1858_v7 = vadd.f32 %v1857_v9, %v5178_v25  ;;  %v2049_v62 = vadd.f32 %v2048_v41, %v1856_v4  ;;  %v5842_v4 = vld [vmem:[#allocation6_spill] sm:$0xff] }
 0x1be   :  { %v1859_v24 = vpop.f32.mrf.mxu0  ;;  %v1689_v21 = vadd.f32 %v5209_v48, %v1496_v2  ;;  %v5844_v48 = vld [vmem:[#allocation7_spill] sm:$0xff] }
 0x1bf   :  { %v2052_v18 = vpop.f32.mrf.mxu1  ;;  %v2214_v30 = vpack.c.bf16 %v2164_v60, %v2162_v6  ;;  %v1860_v43 = vadd.f32 %v1859_v24, %v5185_v35  ;;  %v2051_v51 = vadd.f32 %v2050_v17, %v1858_v7  ;;  %v2165_v25 = vmax.f32 %v2049_v62, 0.0  ;;  %v5843_v7 = vld [vmem:[#allocation9_spill] sm:$0xff] }
 0x1c0   :  { %v1861_v49 = vpop.f32.mrf.mxu0  ;;  %v1506_v24 = vadd.f32 %v5843_v7, %v4998_v33 }
 0x1c1   :  { %v2054_v26 = vpop.f32.mrf.mxu1  ;;  %v2053_v40 = vadd.f32 %v2052_v18, %v1860_v43  ;;  %v1862_v19 = vadd.f32 %v1861_v49, %v1669_v44  ;;  %2529 = vmatprep.mubr.bf16.mxu0 %v2214_v30  ;;  %v2166_v35 = vmax.f32 %v2051_v51, 0.0 }
 0x1c2   :  { %v1865_v13 = vpop.f32.mrf.mxu0  ;;  %2530 = vmatmul.mubr.bf16.gmra.mxu0 %v2213_v31 }
 0x1c3   :  { %v2058_v28 = vpop.f32.mrf.mxu1  ;;  %v2167_v58 = vmax.f32 %v2053_v40, 0.0  ;;  %v2055_v27 = vadd.f32 %v2054_v26, %v1862_v19  ;;  %v1866_v32 = vadd.f32 %v1865_v13, %v5188_v50 }
 0x1c4   :  { %v1867_v46 = vpop.f32.mrf.mxu0 }
 0x1c5   :  { %v2060_v38 = vpop.f32.mrf.mxu1  ;;  %v2215_v5 = vpack.c.bf16 %v2167_v58, %v2165_v25  ;;  %v2168_v53 = vmax.f32 %v2055_v27, 0.0  ;;  %v1868_v45 = vadd.f32 %v1867_v46, %v5191_v59  ;;  %v2059_v8 = vadd.f32 %v2058_v28, %v1866_v32  ;;  %v5846_v58 = vld [vmem:[#allocation10_spill] sm:$0xff] }
 0x1c6   :  { %v1869_v34 = vpop.f32.mrf.mxu0  ;;  %v1699_v27 = vadd.f32 %v5846_v58, %v1506_v24 }
 0x1c7   :  { %v2062_v63 = vpop.f32.mrf.mxu1  ;;  %v2216_v61 = vpack.c.bf16 %v2168_v53, %v2166_v35  ;;  %v1870_v23 = vadd.f32 %v1869_v34, %v5198_v36  ;;  %v2061_v12 = vadd.f32 %v2060_v38, %v1868_v45  ;;  %v2169_v59 = vmax.f32 %v2059_v8, 0.0  ;;  %v5847_v38 = vld [vmem:[#allocation11_spill] sm:$0xff] }
 0x1c8   :  { %v1871_v15 = vpop.f32.mrf.mxu0 }
 0x1c9   :  { %v2064_v10 = vpop.f32.mrf.mxu1  ;;  %v2063_v54 = vadd.f32 %v2062_v63, %v1870_v23  ;;  %v1872_v50 = vadd.f32 %v1871_v15, %v1679_v47  ;;  %2539 = vmatprep.mubr.bf16.mxu0 %v2216_v61  ;;  %v2170_v36 = vmax.f32 %v2061_v12, 0.0  ;;  %v5848_v47 = vld [vmem:[#allocation14_spill] sm:$0xff] }
 0x1ca   :  { %v1875_v52 = vpop.f32.mrf.mxu0  ;;  %2540 = vmatmul.mubr.bf16.gmra.mxu0 %v2215_v5  ;;  %v1516_v61 = vadd.f32 %v5848_v47, %v4998_v33 }
 0x1cb   :  { %v2068_v56 = vpop.f32.mrf.mxu1  ;;  %v2171_v22 = vmax.f32 %v2063_v54, 0.0  ;;  %v2065_v3 = vadd.f32 %v2064_v10, %v1872_v50  ;;  %v1876_v0 = vadd.f32 %v1875_v52, %v5201_v20  ;;  %v5849_v54 = vld [vmem:[#allocation12_spill] sm:$0xff] }
 0x1cc   :  { %v1877_v39 = vpop.f32.mrf.mxu0 }
 0x1cd   :  { %v2070_v14 = vpop.f32.mrf.mxu1  ;;  %v2217_v55 = vpack.c.bf16 %v2171_v22, %v2169_v59  ;;  %v2172_v57 = vmax.f32 %v2065_v3, 0.0  ;;  %v1878_v11 = vadd.f32 %v1877_v39, %v5204_v37  ;;  %v2069_v16 = vadd.f32 %v2068_v56, %v1876_v0  ;;  %v5850_v3 = vld [vmem:[#allocation13_spill] sm:$0xff] }
 0x1ce   :  { %v1879_v41 = vpop.f32.mrf.mxu0 }
 0x1cf   :  { %v2072_v1 = vpop.f32.mrf.mxu1  ;;  %v2218_v42 = vpack.c.bf16 %v2172_v57, %v2170_v36  ;;  %v1880_v9 = vadd.f32 %v1879_v41, %v5842_v4  ;;  %v2071_v31 = vadd.f32 %v2070_v14, %v1878_v11  ;;  %v2173_v37 = vmax.f32 %v2069_v16, 0.0  ;;  %v5851_v36 = vld [vmem:[#allocation15_spill] sm:$0xff]  ;;  %v5852_v41 = vld [vmem:[#allocation16_spill] sm:$0xff] }
 0x1d0   :  { %v1881_v17 = vpop.f32.mrf.mxu0 }
 0x1d1   :  { %v2074_v6 = vpop.f32.mrf.mxu1  ;;  %v2073_v60 = vadd.f32 %v2072_v1, %v1880_v9  ;;  %v1882_v20 = vadd.f32 %v1881_v17, %v1689_v21  ;;  %2549 = vmatprep.mubr.bf16.mxu0 %v2218_v42  ;;  %v2174_v51 = vmax.f32 %v2071_v31, 0.0  ;;  %v5853_v17 = vld [vmem:[#allocation19_spill] sm:$0xff] }
 0x1d2   :  { %v1885_v18 = vpop.f32.mrf.mxu0  ;;  %2550 = vmatmul.mubr.bf16.gmra.mxu0 %v2217_v55  ;;  %v1709_v55 = vadd.f32 %v5851_v36, %v1516_v61 }
 0x1d3   :  { %v2078_v44 = vpop.f32.mrf.mxu1  ;;  %v2175_v30 = vmax.f32 %v2073_v60, 0.0  ;;  %v2075_v62 = vadd.f32 %v2074_v6, %v1882_v20  ;;  %v1886_v43 = vadd.f32 %v1885_v18, %v5844_v48  ;;  %v1526_v6 = vadd.f32 %v5853_v17, %v4998_v33  ;;  %v5854_v18 = vld [vmem:[#allocation17_spill] sm:$0xff] }
 0x1d4   :  { %v1887_v49 = vpop.f32.mrf.mxu0 }
 0x1d5   :  { %v2080_v26 = vpop.f32.mrf.mxu1  ;;  %v2219_v40 = vpack.c.bf16 %v2175_v30, %v2173_v37  ;;  %v2176_v19 = vmax.f32 %v2075_v62, 0.0  ;;  %v1888_v13 = vadd.f32 %v1887_v49, %v5845_v29  ;;  %v2079_v46 = vadd.f32 %v2078_v44, %v1886_v43  ;;  %v5855_v49 = vld [vmem:[#allocation18_spill] sm:$0xff] }
 0x1d6   :  { %v1889_v28 = vpop.f32.mrf.mxu0 }
 0x1d7   :  { %v2082_v25 = vpop.f32.mrf.mxu1  ;;  %v2220_v32 = vpack.c.bf16 %v2176_v19, %v2174_v51  ;;  %v1890_v35 = vadd.f32 %v1889_v28, %v5847_v38  ;;  %v2081_v45 = vadd.f32 %v2080_v26, %v1888_v13  ;;  %v2177_v15 = vmax.f32 %v2079_v46, 0.0  ;;  %v5856_v19 = vld [vmem:[#allocation20_spill] sm:$0xff] }
 0x1d8   :  { %v1891_v5 = vpop.f32.mrf.mxu0  ;;  %v1719_v29 = vadd.f32 %v5856_v19, %v1526_v6 }
 0x1d9   :  { %v2084_v53 = vpop.f32.mrf.mxu1  ;;  %v2083_v34 = vadd.f32 %v2082_v25, %v1890_v35  ;;  %v1892_v63 = vadd.f32 %v1891_v5, %v1699_v27  ;;  %2559 = vmatprep.mubr.bf16.mxu0 %v2220_v32  ;;  %v2178_v56 = vmax.f32 %v2081_v45, 0.0  ;;  %v5857_v25 = vld [vmem:[#allocation21_spill] sm:$0xff]  ;;  %v5858_v5 = vld [vmem:[#allocation24_spill] sm:$0xff] }
 0x1da   :  { %v1895_v8 = vpop.f32.mrf.mxu0  ;;  %2560 = vmatmul.mubr.bf16.gmra.mxu0 %v2219_v40 }
 0x1db   :  { %v2088_v23 = vpop.f32.mrf.mxu1  ;;  %v2179_v10 = vmax.f32 %v2083_v34, 0.0  ;;  %v2085_v12 = vadd.f32 %v2084_v53, %v1892_v63  ;;  %v1896_v50 = vadd.f32 %v1895_v8, %v5849_v54  ;;  %v1536_v53 = vadd.f32 %v5858_v5, %v4998_v33  ;;  %v5859_v8 = vld [vmem:[#allocation22_spill] sm:$0xff] }
 0x1dc   :  { %v1897_v2 = vpop.f32.mrf.mxu0 }
 0x1dd   :  { %v2090_v52 = vpop.f32.mrf.mxu1  ;;  %v2221_v59 = vpack.c.bf16 %v2179_v10, %v2177_v15  ;;  %v2180_v22 = vmax.f32 %v2085_v12, 0.0  ;;  %v1898_v0 = vadd.f32 %v1897_v2, %v5850_v3  ;;  %v2089_v11 = vadd.f32 %v2088_v23, %v1896_v50  ;;  %v5860_v2 = vld [vmem:[#allocation23_spill] sm:$0xff] }
 0x1de   :  { %v1899_v39 = vpop.f32.mrf.mxu0 }
 0x1df   :  { %v2092_v14 = vpop.f32.mrf.mxu1  ;;  %v2222_v57 = vpack.c.bf16 %v2180_v22, %v2178_v56  ;;  %v1900_v1 = vadd.f32 %v1899_v39, %v5852_v41  ;;  %v2091_v16 = vadd.f32 %v2090_v52, %v1898_v0  ;;  %v2181_v20 = vmax.f32 %v2089_v11, 0.0  ;;  %v5861_v22 = vld [vmem:[#allocation25_spill] sm:$0xff] }
 0x1e0   :  { %v1901_v21 = vpop.f32.mrf.mxu0  ;;  %v1729_v3 = vadd.f32 %v5861_v22, %v1536_v53 }
 0x1e1   :  { %v2094_v42 = vpop.f32.mrf.mxu1  ;;  %v2093_v4 = vadd.f32 %v2092_v14, %v1900_v1  ;;  %v1902_v9 = vadd.f32 %v1901_v21, %v1709_v55  ;;  %2569 = vmatprep.mubr.bf16.mxu0 %v2222_v57  ;;  %v2182_v62 = vmax.f32 %v2091_v16, 0.0  ;;  %v5862_v14 = vld [vmem:[#allocation26_spill] sm:$0xff]  ;;  %v5863_v21 = vld [vmem:[#allocation29_spill] sm:$0xff] }
 0x1e2   :  { %v1905_v31 = vpop.f32.mrf.mxu0  ;;  %2570 = vmatmul.mubr.bf16.gmra.mxu0 %v2221_v59 }
 0x1e3   :  { %v2098_v60 = vpop.f32.mrf.mxu1  ;;  %v2183_v7 = vmax.f32 %v2093_v4, 0.0  ;;  %v2095_v24 = vadd.f32 %v2094_v42, %v1902_v9  ;;  %v1906_v44 = vadd.f32 %v1905_v31, %v5854_v18  ;;  %v1546_v42 = vadd.f32 %v5863_v21, %v4998_v33  ;;  %v5864_v31 = vld [vmem:[#allocation27_spill] sm:$0xff] }
 0x1e4   :  { %v1907_v37 = vpop.f32.mrf.mxu0 }
 0x1e5   :  { %v2100_v30 = vpop.f32.mrf.mxu1  ;;  %v2223_v48 = vpack.c.bf16 %v2183_v7, %v2181_v20  ;;  %v2184_v43 = vmax.f32 %v2095_v24, 0.0  ;;  %v1908_v26 = vadd.f32 %v1907_v37, %v5855_v49  ;;  %v2099_v28 = vadd.f32 %v2098_v60, %v1906_v44  ;;  %v5865_v37 = vld [vmem:[#allocation28_spill] sm:$0xff] }
 0x1e6   :  { %v1909_v51 = vpop.f32.mrf.mxu0 }
 0x1e7   :  { %v2102_v40 = vpop.f32.mrf.mxu1  ;;  %v2224_v13 = vpack.c.bf16 %v2184_v43, %v2182_v62  ;;  %v1910_v58 = vadd.f32 %v1909_v51, %v5857_v25  ;;  %v2101_v46 = vadd.f32 %v2100_v30, %v1908_v26  ;;  %v2185_v63 = vmax.f32 %v2099_v28, 0.0  ;;  %v5866_v43 = vld [vmem:[#allocation30_spill] sm:$0xff] }
 0x1e8   :  { %v1911_v27 = vpop.f32.mrf.mxu0  ;;  %v1739_v49 = vadd.f32 %v5866_v43, %v1546_v42  ;;  %v2265_v42 = vld [vmem:[%s5802_s4] sm:$0x3] }
 0x1e9   :  { %v2104_v32 = vpop.f32.mrf.mxu1  ;;  %v2103_v38 = vadd.f32 %v2102_v40, %v1910_v58  ;;  %v1912_v35 = vadd.f32 %v1911_v27, %v1719_v29  ;;  %2579 = vmatprep.mubr.bf16.mxu0 %v2224_v13  ;;  %v2186_v12 = vmax.f32 %v2101_v46, 0.0  ;;  %v5867_v40 = vld [vmem:[#allocation31_spill] sm:$0xff]  ;;  %v5868_v27 = vld [vmem:[#allocation34_spill] sm:$0xff] }
 0x1ea   :  { %v1915_v45 = vpop.f32.mrf.mxu0  ;;  %2580 = vmatmul.mubr.bf16.gmra.mxu0 %v2223_v48 }
 0x1eb   :  { %v2108_v34 = vpop.f32.mrf.mxu1  ;;  %v2187_v47 = vmax.f32 %v2103_v38, 0.0  ;;  %v2105_v61 = vadd.f32 %v2104_v32, %v1912_v35  ;;  %v1916_v23 = vadd.f32 %v1915_v45, %v5859_v8  ;;  %v1556_v32 = vadd.f32 %v5868_v27, %v4998_v33  ;;  %v5869_v45 = vld [vmem:[#allocation32_spill] sm:$0xff] }
 0x1ec   :  { %v1917_v15 = vpop.f32.mrf.mxu0 }
 0x1ed   :  { %v2110_v10 = vpop.f32.mrf.mxu1  ;;  %v2225_v54 = vpack.c.bf16 %v2187_v47, %v2185_v63  ;;  %v2188_v50 = vmax.f32 %v2105_v61, 0.0  ;;  %v1918_v52 = vadd.f32 %v1917_v15, %v5860_v2  ;;  %v2109_v39 = vadd.f32 %v2108_v34, %v1916_v23  ;;  %v5870_v15 = vld [vmem:[#allocation33_spill] sm:$0xff] }
 0x1ee   :  { %v1919_v56 = vpop.f32.mrf.mxu0 }
 0x1ef   :  { %v2112_v59 = vpop.f32.mrf.mxu1  ;;  %v2226_v0 = vpack.c.bf16 %v2188_v50, %v2186_v12  ;;  %v1920_v36 = vadd.f32 %v1919_v56, %v5862_v14  ;;  %v2111_v11 = vadd.f32 %v2110_v10, %v1918_v52  ;;  %v2189_v9 = vmax.f32 %v2109_v39, 0.0  ;;  %v5871_v50 = vld [vmem:[#allocation35_spill] sm:$0xff]  ;;  %v5872_v56 = vld [vmem:[#allocation36_spill] sm:$0xff] }
 0x1f0   :  { %v1921_v55 = vpop.f32.mrf.mxu0  ;;  %v1749_v2 = vadd.f32 %v5871_v50, %v1556_v32 }
 0x1f1   :  { %v2114_v57 = vpop.f32.mrf.mxu1  ;;  %v2113_v41 = vadd.f32 %v2112_v59, %v1920_v36  ;;  %v1922_v1 = vadd.f32 %v1921_v55, %v1729_v3  ;;  %2589 = vmatprep.mubr.bf16.mxu0 %v2226_v0  ;;  %v2190_v24 = vmax.f32 %v2111_v11, 0.0 }
 0x1f2   :  { %v1925_v16 = vpop.f32.mrf.mxu0  ;;  %2590 = vmatmul.mubr.bf16.gmra.mxu0 %v2225_v54 }
 0x1f3   :  { %v2118_v4 = vpop.f32.mrf.mxu1  ;;  %v2191_v17 = vmax.f32 %v2113_v41, 0.0  ;;  %v2115_v6 = vadd.f32 %v2114_v57, %v1922_v1  ;;  %v1926_v60 = vadd.f32 %v1925_v16, %v5864_v31 }
 0x1f4   :  { %v1927_v20 = vpop.f32.mrf.mxu0 }
 0x1f5   :  { %v2120_v7 = vpop.f32.mrf.mxu1  ;;  %v2227_v18 = vpack.c.bf16 %v2191_v17, %v2189_v9  ;;  %v2192_v44 = vmax.f32 %v2115_v6, 0.0  ;;  %v1928_v30 = vadd.f32 %v1927_v20, %v5865_v37  ;;  %v2119_v51 = vadd.f32 %v2118_v4, %v1926_v60  ;;  %v5873_v4 = vld [vmem:[#allocation5_spill] sm:$0xff] }
 0x1f6   :  { %v1929_v62 = vpop.f32.mrf.mxu0  ;;  %v5874_v9 = vsub.s32 1, %v5873_v4  ;;  %v5875_v6 = vsub.s32 0, %v5873_v4 }
 0x1f7   :  { %v2122_v48 = vpop.f32.mrf.mxu1  ;;  %v2228_v26 = vpack.c.bf16 %v2192_v44, %v2190_v24  ;;  %v1930_v19 = vadd.f32 %v1929_v62, %v5867_v40  ;;  %v2121_v28 = vadd.f32 %v2120_v7, %v1928_v30  ;;  %v2193_v35 = vmax.f32 %v2119_v51, 0.0 }
 0x1f8   :  { %v1931_v29 = vpop.f32.mrf.mxu0  ;;  %v5432_v17 = vrot.slane %v2265_v42, %v5874_v9  ;;  %v5436_v31 = vrot.slane %v2265_v42, %v5875_v6 }
 0x1f9   :  { %v2124_v13 = vpop.f32.mrf.mxu1  ;;  %v2123_v25 = vadd.f32 %v2122_v48, %v1930_v19  ;;  %v1932_v58 = vadd.f32 %v1931_v29, %v1739_v49  ;;  %2599 = vmatprep.mubr.bf16.mxu0 %v2228_v26  ;;  %v2194_v61 = vmax.f32 %v2121_v28, 0.0 }
 0x1fa   :  { %v1935_v46 = vpop.f32.mrf.mxu0  ;;  %2600 = vmatmul.mubr.bf16.gmra.mxu0 %v2227_v18 }
 0x1fb   :  { %v2128_v38 = vpop.f32.mrf.mxu1  ;;  %v2195_v5 = vmax.f32 %v2123_v25, 0.0  ;;  %v2125_v53 = vadd.f32 %v2124_v13, %v1932_v58  ;;  %v1936_v34 = vadd.f32 %v1935_v46, %v5869_v45 }
 0x1fc   :  { %v1937_v63 = vpop.f32.mrf.mxu0 }
 0x1fd   :  { %v2130_v47 = vpop.f32.mrf.mxu1  ;;  %v2229_v8 = vpack.c.bf16 %v2195_v5, %v2193_v35  ;;  %v2196_v23 = vmax.f32 %v2125_v53, 0.0  ;;  %v1938_v10 = vadd.f32 %v1937_v63, %v5870_v15  ;;  %v2129_v52 = vadd.f32 %v2128_v38, %v1936_v34 }
 0x1fe   :  { %v1939_v12 = vpop.f32.mrf.mxu0 }
 0x1ff   :  { %v2132_v54 = vpop.f32.mrf.mxu1  ;;  %v2230_v33 = vpack.c.bf16 %v2196_v23, %v2194_v61  ;;  %v1940_v59 = vadd.f32 %v1939_v12, %v5872_v56  ;;  %v2131_v3 = vadd.f32 %v2130_v47, %v1938_v10  ;;  %v2197_v36 = vmax.f32 %v2129_v52, 0.0 }
 0x200   :  { %v1941_v22 = vpop.f32.mrf.mxu0 }
 0x201   :  { %v2133_v0 = vadd.f32 %v2132_v54, %v1940_v59  ;;  %v1942_v39 = vadd.f32 %v1941_v22, %v1749_v2  ;;  %2609 = vmatprep.mubr.bf16.mxu0 %v2230_v33  ;;  %v2134_v14 = vpop.f32.mrf.mxu1  ;;  %v2198_v11 = vmax.f32 %v2131_v3, 0.0 }
 0x202   :  { %2610 = vmatmul.mubr.bf16.gmra.mxu0 %v2229_v8 }
 0x203   :  { %v2199_v55 = vmax.f32 %v2133_v0, 0.0  ;;  %v2135_v57 = vadd.f32 %v2134_v14, %v1942_v39 }
 0x205   :  { %v2231_v41 = vpack.c.bf16 %v2199_v55, %v2197_v36  ;;  %v2200_v1 = vmax.f32 %v2135_v57, 0.0 }
 0x207   :  { %v2232_v21 = vpack.c.bf16 %v2200_v1, %v2198_v11 }
 0x209   :  { %2619 = vmatprep.mubr.bf16.mxu0 %v2232_v21 }
 0x20a   :  { %2620 = vmatmul.mubr.bf16.gmra.mxu0 %v2231_v41 }
 0x252   :  { %v2471_v16 = vpop.f32.mrf.mxu0 }
 0x253   :  { %v2472_v18 = vadd.f32 %v2471_v16, %v5436_v31 }
 0x254   :  { %v2473_v60 = vpop.f32.mrf.mxu0 }
 0x255   :  { %v2474_v7 = vadd.f32 %v2473_v60, %v5432_v17  ;;  %v2630_v49 = vmax.f32 %v2472_v18, 0.0 }
 0x256   :  { %v2475_v20 = vpop.f32.mrf.mxu0 }
 0x257   :  { %v2476_v24 = vadd.f32 %v2475_v20, %v5436_v31  ;;  %v2631_v48 = vmax.f32 %v2474_v7, 0.0 }
 0x258   :  { %v2477_v44 = vpop.f32.mrf.mxu0 }
 0x259   :  { %v2478_v37 = vadd.f32 %v2477_v44, %v5432_v17  ;;  %v2632_v30 = vmax.f32 %v2476_v24, 0.0 }
 0x25a   :  { %v2481_v62 = vpop.f32.mrf.mxu0 }
 0x25b   :  { %v2633_v43 = vmax.f32 %v2478_v37, 0.0  ;;  %v2694_v40 = vpack.c.bf16 %v2632_v30, %v2630_v49  ;;  %v2482_v28 = vadd.f32 %v2481_v62, %v5436_v31 }
 0x25c   :  { %v2483_v26 = vpop.f32.mrf.mxu0 }
 0x25d   :  { %v2695_v51 = vpack.c.bf16 %v2633_v43, %v2631_v48  ;;  %v2484_v29 = vadd.f32 %v2483_v26, %v5432_v17  ;;  %v2634_v35 = vmax.f32 %v2482_v28, 0.0 }
 0x25e   :  { %v2485_v19 = vpop.f32.mrf.mxu0 }
 0x25f   :  { %v2486_v13 = vadd.f32 %v2485_v19, %v5436_v31  ;;  %2893 = vmatprep.mubr.bf16.mxu1 %v2695_v51  ;;  %v2635_v46 = vmax.f32 %v2484_v29, 0.0 }
 0x260   :  { %v2487_v25 = vpop.f32.mrf.mxu0  ;;  %2894 = vmatmul.mubr.bf16.vlgmr.msra.gmra.mxu1 %v2694_v40 }
 0x261   :  { %v2488_v58 = vadd.f32 %v2487_v25, %v5432_v17  ;;  %v2636_v27 = vmax.f32 %v2486_v13, 0.0 }
 0x262   :  { %v2491_v32 = vpop.f32.mrf.mxu0 }
 0x263   :  { %v2637_v38 = vmax.f32 %v2488_v58, 0.0  ;;  %v2696_v45 = vpack.c.bf16 %v2636_v27, %v2634_v35  ;;  %v2492_v61 = vadd.f32 %v2491_v32, %v5436_v31 }
 0x264   :  { %v2493_v5 = vpop.f32.mrf.mxu0 }
 0x265   :  { %v2697_v53 = vpack.c.bf16 %v2637_v38, %v2635_v46  ;;  %v2494_v63 = vadd.f32 %v2493_v5, %v5432_v17  ;;  %v2638_v50 = vmax.f32 %v2492_v61, 0.0 }
 0x266   :  { %v2495_v34 = vpop.f32.mrf.mxu0 }
 0x267   :  { %v2496_v47 = vadd.f32 %v2495_v34, %v5436_v31  ;;  %2901 = vmatprep.mubr.bf16.mxu1 %v2697_v53  ;;  %v2639_v12 = vmax.f32 %v2494_v63, 0.0 }
 0x268   :  { %v2497_v8 = vpop.f32.mrf.mxu0  ;;  %2902 = vmatmul.mubr.bf16.gmra.mxu1 %v2696_v45 }
 0x269   :  { %v2498_v23 = vadd.f32 %v2497_v8, %v5432_v17  ;;  %v2640_v15 = vmax.f32 %v2496_v47, 0.0 }
 0x26a   :  { %v2501_v10 = vpop.f32.mrf.mxu0 }
 0x26b   :  { %v2641_v54 = vmax.f32 %v2498_v23, 0.0  ;;  %v2698_v52 = vpack.c.bf16 %v2640_v15, %v2638_v50  ;;  %v2502_v3 = vadd.f32 %v2501_v10, %v5436_v31 }
 0x26c   :  { %v2503_v2 = vpop.f32.mrf.mxu0 }
 0x26d   :  { %v2699_v33 = vpack.c.bf16 %v2641_v54, %v2639_v12  ;;  %v2504_v59 = vadd.f32 %v2503_v2, %v5432_v17  ;;  %v2642_v11 = vmax.f32 %v2502_v3, 0.0 }
 0x26e   :  { %v2505_v56 = vpop.f32.mrf.mxu0 }
 0x26f   :  { %v2506_v22 = vadd.f32 %v2505_v56, %v5436_v31  ;;  %2909 = vmatprep.mubr.bf16.mxu1 %v2699_v33  ;;  %v2643_v55 = vmax.f32 %v2504_v59, 0.0 }
 0x270   :  { %v2507_v0 = vpop.f32.mrf.mxu0  ;;  %2910 = vmatmul.mubr.bf16.gmra.mxu1 %v2698_v52 }
 0x271   :  { %v2508_v39 = vadd.f32 %v2507_v0, %v5432_v17  ;;  %v2644_v14 = vmax.f32 %v2506_v22, 0.0 }
 0x272   :  { %v2511_v36 = vpop.f32.mrf.mxu0 }
 0x273   :  { %v2645_v57 = vmax.f32 %v2508_v39, 0.0  ;;  %v2700_v21 = vpack.c.bf16 %v2644_v14, %v2642_v11  ;;  %v2512_v9 = vadd.f32 %v2511_v36, %v5436_v31 }
 0x274   :  { %v2513_v41 = vpop.f32.mrf.mxu0 }
 0x275   :  { %v2701_v1 = vpack.c.bf16 %v2645_v57, %v2643_v55  ;;  %v2514_v16 = vadd.f32 %v2513_v41, %v5432_v17  ;;  %v2646_v44 = vmax.f32 %v2512_v9, 0.0 }
 0x276   :  { %v2515_v42 = vpop.f32.mrf.mxu0 }
 0x277   :  { %v2516_v4 = vadd.f32 %v2515_v42, %v5436_v31  ;;  %2917 = vmatprep.mubr.bf16.mxu1 %v2701_v1  ;;  %v2647_v24 = vmax.f32 %v2514_v16, 0.0 }
 0x278   :  { %v2517_v6 = vpop.f32.mrf.mxu0  ;;  %2918 = vmatmul.mubr.bf16.gmra.mxu1 %v2700_v21 }
 0x279   :  { %v2518_v60 = vadd.f32 %v2517_v6, %v5432_v17  ;;  %v2648_v20 = vmax.f32 %v2516_v4, 0.0 }
 0x27a   :  { %v2521_v7 = vpop.f32.mrf.mxu0 }
 0x27b   :  { %v2649_v18 = vmax.f32 %v2518_v60, 0.0  ;;  %v2702_v62 = vpack.c.bf16 %v2648_v20, %v2646_v44  ;;  %v2522_v26 = vadd.f32 %v2521_v7, %v5436_v31 }
 0x27c   :  { %v2523_v37 = vpop.f32.mrf.mxu0 }
 0x27d   :  { %v2703_v30 = vpack.c.bf16 %v2649_v18, %v2647_v24  ;;  %v2524_v43 = vadd.f32 %v2523_v37, %v5432_v17  ;;  %v2650_v25 = vmax.f32 %v2522_v26, 0.0 }
 0x27e   :  { %v2525_v48 = vpop.f32.mrf.mxu0 }
 0x27f   :  { %v2526_v49 = vadd.f32 %v2525_v48, %v5436_v31  ;;  %2925 = vmatprep.mubr.bf16.mxu1 %v2703_v30  ;;  %v2651_v13 = vmax.f32 %v2524_v43, 0.0 }
 0x280   :  { %v2527_v51 = vpop.f32.mrf.mxu0  ;;  %2926 = vmatmul.mubr.bf16.gmra.mxu1 %v2702_v62 }
 0x281   :  { %v2528_v40 = vadd.f32 %v2527_v51, %v5432_v17  ;;  %v2652_v19 = vmax.f32 %v2526_v49, 0.0 }
 0x282   :  { %v2531_v29 = vpop.f32.mrf.mxu0 }
 0x283   :  { %v2653_v28 = vmax.f32 %v2528_v40, 0.0  ;;  %v2704_v32 = vpack.c.bf16 %v2652_v19, %v2650_v25  ;;  %v2532_v5 = vadd.f32 %v2531_v29, %v5436_v31 }
 0x284   :  { %v2533_v58 = vpop.f32.mrf.mxu0 }
 0x285   :  { %v2705_v27 = vpack.c.bf16 %v2653_v28, %v2651_v13  ;;  %v2534_v38 = vadd.f32 %v2533_v58, %v5432_v17  ;;  %v2654_v8 = vmax.f32 %v2532_v5, 0.0 }
 0x286   :  { %v2535_v46 = vpop.f32.mrf.mxu0 }
 0x287   :  { %v2536_v35 = vadd.f32 %v2535_v46, %v5436_v31  ;;  %2933 = vmatprep.mubr.bf16.mxu1 %v2705_v27  ;;  %v2655_v47 = vmax.f32 %v2534_v38, 0.0 }
 0x288   :  { %v2537_v53 = vpop.f32.mrf.mxu0  ;;  %2934 = vmatmul.mubr.bf16.gmra.mxu1 %v2704_v32 }
 0x289   :  { %v2538_v45 = vadd.f32 %v2537_v53, %v5432_v17  ;;  %v2656_v34 = vmax.f32 %v2536_v35, 0.0 }
 0x28a   :  { %v2541_v63 = vpop.f32.mrf.mxu0 }
 0x28b   :  { %v2657_v61 = vmax.f32 %v2538_v45, 0.0  ;;  %v2706_v10 = vpack.c.bf16 %v2656_v34, %v2654_v8  ;;  %v2542_v2 = vadd.f32 %v2541_v63, %v5436_v31 }
 0x28c   :  { %v2543_v23 = vpop.f32.mrf.mxu0 }
 0x28d   :  { %v2707_v15 = vpack.c.bf16 %v2657_v61, %v2655_v47  ;;  %v2544_v54 = vadd.f32 %v2543_v23, %v5432_v17  ;;  %v2658_v0 = vmax.f32 %v2542_v2, 0.0 }
 0x28e   :  { %v2545_v12 = vpop.f32.mrf.mxu0 }
 0x28f   :  { %v2546_v50 = vadd.f32 %v2545_v12, %v5436_v31  ;;  %2941 = vmatprep.mubr.bf16.mxu1 %v2707_v15  ;;  %v2659_v22 = vmax.f32 %v2544_v54, 0.0 }
 0x290   :  { %v2547_v33 = vpop.f32.mrf.mxu0  ;;  %2942 = vmatmul.mubr.bf16.gmra.mxu1 %v2706_v10 }
 0x291   :  { %v2548_v52 = vadd.f32 %v2547_v33, %v5432_v17  ;;  %v2660_v56 = vmax.f32 %v2546_v50, 0.0 }
 0x292   :  { %v2551_v59 = vpop.f32.mrf.mxu0 }
 0x293   :  { %v2661_v3 = vmax.f32 %v2548_v52, 0.0  ;;  %v2708_v36 = vpack.c.bf16 %v2660_v56, %v2658_v0  ;;  %v2552_v41 = vadd.f32 %v2551_v59, %v5436_v31 }
 0x294   :  { %v2553_v39 = vpop.f32.mrf.mxu0 }
 0x295   :  { %v2709_v14 = vpack.c.bf16 %v2661_v3, %v2659_v22  ;;  %v2554_v57 = vadd.f32 %v2553_v39, %v5432_v17  ;;  %v2662_v6 = vmax.f32 %v2552_v41, 0.0 }
 0x296   :  { %v2555_v55 = vpop.f32.mrf.mxu0 }
 0x297   :  { %v2556_v11 = vadd.f32 %v2555_v55, %v5436_v31  ;;  %2949 = vmatprep.mubr.bf16.mxu1 %v2709_v14  ;;  %v2663_v4 = vmax.f32 %v2554_v57, 0.0 }
 0x298   :  { %v2557_v1 = vpop.f32.mrf.mxu0  ;;  %2950 = vmatmul.mubr.bf16.gmra.mxu1 %v2708_v36 }
 0x299   :  { %v2558_v21 = vadd.f32 %v2557_v1, %v5432_v17  ;;  %v2664_v42 = vmax.f32 %v2556_v11, 0.0 }
 0x29a   :  { %v2561_v16 = vpop.f32.mrf.mxu0 }
 0x29b   :  { %v2665_v9 = vmax.f32 %v2558_v21, 0.0  ;;  %v2710_v7 = vpack.c.bf16 %v2664_v42, %v2662_v6  ;;  %v2562_v37 = vadd.f32 %v2561_v16, %v5436_v31 }
 0x29c   :  { %v2563_v60 = vpop.f32.mrf.mxu0 }
 0x29d   :  { %v2711_v20 = vpack.c.bf16 %v2665_v9, %v2663_v4  ;;  %v2564_v18 = vadd.f32 %v2563_v60, %v5432_v17  ;;  %v2666_v51 = vmax.f32 %v2562_v37, 0.0 }
 0x29e   :  { %v2565_v24 = vpop.f32.mrf.mxu0 }
 0x29f   :  { %v2566_v44 = vadd.f32 %v2565_v24, %v5436_v31  ;;  %2957 = vmatprep.mubr.bf16.mxu1 %v2711_v20  ;;  %v2667_v49 = vmax.f32 %v2564_v18, 0.0 }
 0x2a0   :  { %v2567_v30 = vpop.f32.mrf.mxu0  ;;  %2958 = vmatmul.mubr.bf16.gmra.mxu1 %v2710_v7 }
 0x2a1   :  { %v2568_v62 = vadd.f32 %v2567_v30, %v5432_v17  ;;  %v2668_v48 = vmax.f32 %v2566_v44, 0.0 }
 0x2a2   :  { %v2571_v43 = vpop.f32.mrf.mxu0 }
 0x2a3   :  { %v2669_v26 = vmax.f32 %v2568_v62, 0.0  ;;  %v2712_v29 = vpack.c.bf16 %v2668_v48, %v2666_v51  ;;  %v2572_v58 = vadd.f32 %v2571_v43, %v5436_v31 }
 0x2a4   :  { %v2573_v40 = vpop.f32.mrf.mxu0 }
 0x2a5   :  { %v2713_v19 = vpack.c.bf16 %v2669_v26, %v2667_v49  ;;  %v2574_v28 = vadd.f32 %v2573_v40, %v5432_v17  ;;  %v2670_v53 = vmax.f32 %v2572_v58, 0.0 }
 0x2a6   :  { %v2575_v13 = vpop.f32.mrf.mxu0 }
 0x2a7   :  { %v2576_v25 = vadd.f32 %v2575_v13, %v5436_v31  ;;  %2965 = vmatprep.mubr.bf16.mxu1 %v2713_v19  ;;  %v2671_v35 = vmax.f32 %v2574_v28, 0.0 }
 0x2a8   :  { %v2577_v27 = vpop.f32.mrf.mxu0  ;;  %2966 = vmatmul.mubr.bf16.gmra.mxu1 %v2712_v29 }
 0x2a9   :  { %v2578_v32 = vadd.f32 %v2577_v27, %v5432_v17  ;;  %v2672_v46 = vmax.f32 %v2576_v25, 0.0 }
 0x2aa   :  { %v2581_v38 = vpop.f32.mrf.mxu0 }
 0x2ab   :  { %v2673_v5 = vmax.f32 %v2578_v32, 0.0  ;;  %v2714_v63 = vpack.c.bf16 %v2672_v46, %v2670_v53  ;;  %v2582_v23 = vadd.f32 %v2581_v38, %v5436_v31 }
 0x2ac   :  { %v2583_v45 = vpop.f32.mrf.mxu0 }
 0x2ad   :  { %v2715_v34 = vpack.c.bf16 %v2673_v5, %v2671_v35  ;;  %v2584_v61 = vadd.f32 %v2583_v45, %v5432_v17  ;;  %v2674_v33 = vmax.f32 %v2582_v23, 0.0 }
 0x2ae   :  { %v2585_v47 = vpop.f32.mrf.mxu0 }
 0x2af   :  { %v2586_v8 = vadd.f32 %v2585_v47, %v5436_v31  ;;  %2973 = vmatprep.mubr.bf16.mxu1 %v2715_v34  ;;  %v2675_v50 = vmax.f32 %v2584_v61, 0.0 }
 0x2b0   :  { %v2587_v15 = vpop.f32.mrf.mxu0  ;;  %2974 = vmatmul.mubr.bf16.gmra.mxu1 %v2714_v63 }
 0x2b1   :  { %v2588_v10 = vadd.f32 %v2587_v15, %v5432_v17  ;;  %v2676_v12 = vmax.f32 %v2586_v8, 0.0 }
 0x2b2   :  { %v2591_v54 = vpop.f32.mrf.mxu0 }
 0x2b3   :  { %v2677_v2 = vmax.f32 %v2588_v10, 0.0  ;;  %v2716_v59 = vpack.c.bf16 %v2676_v12, %v2674_v33  ;;  %v2592_v39 = vadd.f32 %v2591_v54, %v5436_v31 }
 0x2b4   :  { %v2593_v52 = vpop.f32.mrf.mxu0 }
 0x2b5   :  { %v2717_v56 = vpack.c.bf16 %v2677_v2, %v2675_v50  ;;  %v2594_v3 = vadd.f32 %v2593_v52, %v5432_v17  ;;  %v2678_v1 = vmax.f32 %v2592_v39, 0.0  ;;  %v5505_v50 = vld [vmem:[%s5804_s6] ss:$0 sm:$0xff]  ;;  %s4271_s6 = smov [#allocation2]  }
 0x2b6   :  { %v2595_v22 = vpop.f32.mrf.mxu0  ;;  %s3347_s19 = sshll.u32 %s4271_s6, 4  ;;  %s3348_s19 = int_to_ptr.vmem [resolvable:$true] %s3347_s19 }
 0x2b7   :  { %v2596_v0 = vadd.f32 %v2595_v22, %v5436_v31  ;;  %2981 = vmatprep.mubr.bf16.mxu1 %v2717_v56  ;;  %v2679_v11 = vmax.f32 %v2594_v3, 0.0  ;;  %s4248_s20 = scalar_lea.vmem %s3348_s19, 4096  ;;  %p4253_p1 = scmp.lt.s32.totalorder %s3348_s19, %s3348_s19 }
 0x2b8   :  { %v2597_v14 = vpop.f32.mrf.mxu0  ;;  %2982 = vmatmul.mubr.bf16.gmra.mxu1 %v2716_v59  ;;  %p4249_p0 = scmp.ne.s32.totalorder %s3348_s19, %s4248_s20  ;;  %p4254_p2 = scmp.lt.s32.totalorder %s4248_s20, %s4248_s20 }
 0x2b9   :  { %v2598_v36 = vadd.f32 %v2597_v14, %v5432_v17  ;;  %v2680_v55 = vmax.f32 %v2596_v0, 0.0 }
 0x2ba   :  { %v2601_v57 = vpop.f32.mrf.mxu0  ;;  %p4255_p3 = por %p4254_p2, %p4253_p1 }
 0x2bb   :  { %v2681_v41 = vmax.f32 %v2598_v36, 0.0  ;;  %v2718_v16 = vpack.c.bf16 %v2680_v55, %v2678_v1  ;;  %v2602_v60 = vadd.f32 %v2601_v57, %v5436_v31 }
 0x2bc   :  { %v2603_v21 = vpop.f32.mrf.mxu0  ;;  %p4256_p4 = pnand %p4255_p3, %p4249_p0 }
 0x2bd   :  { %v2719_v42 = vpack.c.bf16 %v2681_v41, %v2679_v11  ;;  %v2604_v9 = vadd.f32 %v2603_v21, %v5432_v17  ;;  %v2682_v30 = vmax.f32 %v2602_v60, 0.0 }
 0x2be   :  { %v2605_v4 = vpop.f32.mrf.mxu0 }
 0x2bf   :  { %v2606_v6 = vadd.f32 %v2605_v4, %v5436_v31  ;;  %2989 = vmatprep.mubr.bf16.mxu1 %v2719_v42  ;;  %v2683_v44 = vmax.f32 %v2604_v9, 0.0 }
 0x2c0   :  { %v2607_v20 = vpop.f32.mrf.mxu0  ;;  %2990 = vmatmul.mubr.bf16.gmra.mxu1 %v2718_v16 }
 0x2c1   :  { %v2608_v7 = vadd.f32 %v2607_v20, %v5432_v17  ;;  %v2684_v24 = vmax.f32 %v2606_v6, 0.0 }
 0x2c2   :  { %v2611_v18 = vpop.f32.mrf.mxu0 }
 0x2c3   :  { %v2685_v37 = vmax.f32 %v2608_v7, 0.0  ;;  %v2720_v43 = vpack.c.bf16 %v2684_v24, %v2682_v30  ;;  %v2612_v40 = vadd.f32 %v2611_v18, %v5436_v31 }
 0x2c4   :  { %v2613_v62 = vpop.f32.mrf.mxu0 }
 0x2c5   :  { %v2721_v48 = vpack.c.bf16 %v2685_v37, %v2683_v44  ;;  %v2614_v26 = vadd.f32 %v2613_v62, %v5432_v17  ;;  %v2686_v27 = vmax.f32 %v2612_v40, 0.0 }
 0x2c6   :  { %v2615_v49 = vpop.f32.mrf.mxu0 }
 0x2c7   :  { %v2616_v51 = vadd.f32 %v2615_v49, %v5436_v31  ;;  %2997 = vmatprep.mubr.bf16.mxu1 %v2721_v48  ;;  %v2687_v25 = vmax.f32 %v2614_v26, 0.0 }
 0x2c8   :  { %v2617_v19 = vpop.f32.mrf.mxu0  ;;  %2998 = vmatmul.mubr.bf16.gmra.mxu1 %v2720_v43 }
 0x2c9   :  { %v2618_v29 = vadd.f32 %v2617_v19, %v5432_v17  ;;  %v2688_v13 = vmax.f32 %v2616_v51, 0.0 }
 0x2ca   :  { %v2621_v28 = vpop.f32.mrf.mxu0 }
 0x2cb   :  { %v2689_v58 = vmax.f32 %v2618_v29, 0.0  ;;  %v2722_v38 = vpack.c.bf16 %v2688_v13, %v2686_v27  ;;  %v2622_v45 = vadd.f32 %v2621_v28, %v5436_v31 }
 0x2cc   :  { %v2623_v32 = vpop.f32.mrf.mxu0 }
 0x2cd   :  { %v2723_v46 = vpack.c.bf16 %v2689_v58, %v2687_v25  ;;  %v2624_v5 = vadd.f32 %v2623_v32, %v5432_v17  ;;  %v2690_v23 = vmax.f32 %v2622_v45, 0.0 }
 0x2ce   :  { %v2625_v35 = vpop.f32.mrf.mxu0 }
 0x2cf   :  { %v2626_v53 = vadd.f32 %v2625_v35, %v5436_v31  ;;  %3005 = vmatprep.mubr.bf16.mxu1 %v2723_v46  ;;  %v2691_v61 = vmax.f32 %v2624_v5, 0.0 }
 0x2d0   :  { %v2627_v34 = vpop.f32.mrf.mxu0  ;;  %3006 = vmatmul.mubr.bf16.gmra.mxu1 %v2722_v38 }
 0x2d1   :  { %v2628_v63 = vadd.f32 %v2627_v34, %v5432_v17  ;;  %v2692_v47 = vmax.f32 %v2626_v53, 0.0 }
 0x2d3   :  { %v2693_v8 = vmax.f32 %v2628_v63, 0.0  ;;  %v2724_v10 = vpack.c.bf16 %v2692_v47, %v2690_v23 }
 0x2d5   :  { %v2725_v15 = vpack.c.bf16 %v2693_v8, %v2691_v61 }
 0x2d7   :  { %3013 = vmatprep.mubr.bf16.mxu1 %v2725_v15 }
 0x2d8   :  { %3014 = vmatmul.mubr.bf16.gmra.mxu1 %v2724_v10 }
 0x320   :  { %v3649_v12 = vpop.f32.mrf.mxu1 }
 0x322   :  { %v3650_v54 = vpop.f32.mrf.mxu1 }
 0x323   :  { %v3651_v31 = vadd.f32 %v3650_v54, %v3649_v12 }
 0x324   :  { %v3652_v2 = vpop.f32.mrf.mxu1 }
 0x325   :  { %v5508_v33 = vadd.f32 %v3651_v31, %v5505_v50 }
 0x326   :  { %v3653_v17 = vpop.f32.mrf.mxu1 }
 0x327   :  { %v3654_v52 = vadd.f32 %v3653_v17, %v3652_v2  ;;  %3022 = vmax.xlane.f32.xlu0 %v5508_v33 }
 0x328   :  { %v3655_v56 = vpop.f32.mrf.mxu1 }
 0x329   :  { %v5512_v59 = vadd.f32 %v3654_v52, %v5505_v50 }
 0x32a   :  { %v3656_v22 = vpop.f32.mrf.mxu1 }
 0x32b   :  { %v3657_v3 = vadd.f32 %v3656_v22, %v3655_v56  ;;  %3024 = vmax.xlane.f32.xlu0 %v5512_v59 }
 0x32c   :  { %v3658_v0 = vpop.f32.mrf.mxu1 }
 0x32d   :  { %v5516_v39 = vadd.f32 %v3657_v3, %v5505_v50 }
 0x32e   :  { %v3659_v14 = vpop.f32.mrf.mxu1 }
 0x32f   :  { %v3660_v36 = vadd.f32 %v3659_v14, %v3658_v0  ;;  %3026 = vmax.xlane.f32.xlu1 %v5516_v39 }
 0x330   :  { %v3661_v55 = vpop.f32.mrf.mxu1 }
 0x331   :  { %v5520_v57 = vadd.f32 %v3660_v36, %v5505_v50 }
 0x332   :  { %v3662_v11 = vpop.f32.mrf.mxu1 }
 0x333   :  { %v3663_v41 = vadd.f32 %v3662_v11, %v3661_v55  ;;  %3028 = vmax.xlane.f32.xlu1 %v5520_v57 }
 0x334   :  { %v3664_v1 = vpop.f32.mrf.mxu1 }
 0x335   :  { %v5524_v21 = vadd.f32 %v3663_v41, %v5505_v50 }
 0x336   :  { %v3665_v42 = vpop.f32.mrf.mxu1 }
 0x337   :  { %v3666_v16 = vadd.f32 %v3665_v42, %v3664_v1  ;;  %3030 = vmax.xlane.f32.xlu0 %v5524_v21 }
 0x338   :  { %v3667_v4 = vpop.f32.mrf.mxu1 }
 0x339   :  { %v5528_v9 = vadd.f32 %v3666_v16, %v5505_v50 }
 0x33a   :  { %v3668_v6 = vpop.f32.mrf.mxu1 }
 0x33b   :  { %v3669_v60 = vadd.f32 %v3668_v6, %v3667_v4  ;;  %3032 = vmax.xlane.f32.xlu1 %v5528_v9 }
 0x33c   :  { %v3670_v20 = vpop.f32.mrf.mxu1 }
 0x33d   :  { %v5532_v7 = vadd.f32 %v3669_v60, %v5505_v50 }
 0x33e   :  { %v3671_v24 = vpop.f32.mrf.mxu1 }
 0x33f   :  { %v3672_v18 = vadd.f32 %v3671_v24, %v3670_v20  ;;  %3034 = vmax.xlane.f32.xlu0 %v5532_v7 }
 0x340   :  { %v3673_v44 = vpop.f32.mrf.mxu1 }
 0x341   :  { %v5536_v37 = vadd.f32 %v3672_v18, %v5505_v50 }
 0x342   :  { %v3674_v30 = vpop.f32.mrf.mxu1 }
 0x343   :  { %v3675_v62 = vadd.f32 %v3674_v30, %v3673_v44  ;;  %3036 = vmax.xlane.f32.xlu1 %v5536_v37 }
 0x344   :  { %v3676_v48 = vpop.f32.mrf.mxu1 }
 0x345   :  { %v5540_v43 = vadd.f32 %v3675_v62, %v5505_v50 }
 0x346   :  { %v3677_v49 = vpop.f32.mrf.mxu1 }
 0x347   :  { %v3678_v26 = vadd.f32 %v3677_v49, %v3676_v48  ;;  %3038 = vmax.xlane.f32.xlu0 %v5540_v43 }
 0x348   :  { %v3679_v51 = vpop.f32.mrf.mxu1 }
 0x349   :  { %v5544_v40 = vadd.f32 %v3678_v26, %v5505_v50 }
 0x34a   :  { %v3680_v19 = vpop.f32.mrf.mxu1 }
 0x34b   :  { %v3681_v29 = vadd.f32 %v3680_v19, %v3679_v51  ;;  %3040 = vmax.xlane.f32.xlu1 %v5544_v40 }
 0x34c   :  { %v3682_v13 = vpop.f32.mrf.mxu1 }
 0x34d   :  { %v5548_v28 = vadd.f32 %v3681_v29, %v5505_v50 }
 0x34e   :  { %v3683_v25 = vpop.f32.mrf.mxu1 }
 0x34f   :  { %v3684_v58 = vadd.f32 %v3683_v25, %v3682_v13  ;;  %3042 = vmax.xlane.f32.xlu0 %v5548_v28 }
 0x350   :  { %v3685_v27 = vpop.f32.mrf.mxu1 }
 0x351   :  { %v5552_v32 = vadd.f32 %v3684_v58, %v5505_v50 }
 0x352   :  { %v3686_v46 = vpop.f32.mrf.mxu1 }
 0x353   :  { %v3687_v38 = vadd.f32 %v3686_v46, %v3685_v27  ;;  %3044 = vmax.xlane.f32.xlu1 %v5552_v32 }
 0x354   :  { %v3688_v35 = vpop.f32.mrf.mxu1 }
 0x355   :  { %v5556_v5 = vadd.f32 %v3687_v38, %v5505_v50 }
 0x356   :  { %v3689_v53 = vpop.f32.mrf.mxu1 }
 0x357   :  { %v3690_v45 = vadd.f32 %v3689_v53, %v3688_v35  ;;  %3046 = vmax.xlane.f32.xlu0 %v5556_v5 }
 0x358   :  { %v3691_v34 = vpop.f32.mrf.mxu1 }
 0x359   :  { %v5560_v63 = vadd.f32 %v3690_v45, %v5505_v50 }
 0x35a   :  { %v3692_v47 = vpop.f32.mrf.mxu1 }
 0x35b   :  { %v3693_v61 = vadd.f32 %v3692_v47, %v3691_v34  ;;  %3048 = vmax.xlane.f32.xlu1 %v5560_v63 }
 0x35c   :  { %v3694_v8 = vpop.f32.mrf.mxu1 }
 0x35d   :  { %v5564_v23 = vadd.f32 %v3693_v61, %v5505_v50 }
 0x35e   :  { %v3695_v15 = vpop.f32.mrf.mxu1 }
 0x35f   :  { %v3696_v10 = vadd.f32 %v3695_v15, %v3694_v8  ;;  %3050 = vmax.xlane.f32.xlu0 %v5564_v23 }
 0x360   :  { %v3697_v12 = vpop.f32.mrf.mxu1 }
 0x361   :  { %v5568_v54 = vadd.f32 %v3696_v10, %v5505_v50 }
 0x362   :  { %v3698_v31 = vpop.f32.mrf.mxu1 }
 0x363   :  { %v3699_v2 = vadd.f32 %v3698_v31, %v3697_v12  ;;  %3052 = vmax.xlane.f32.xlu1 %v5568_v54 }
 0x364   :  { %v3700_v17 = vpop.f32.mrf.mxu1 }
 0x365   :  { %v5572_v52 = vadd.f32 %v3699_v2, %v5505_v50 }
 0x366   :  { %v3701_v56 = vpop.f32.mrf.mxu1 }
 0x367   :  { %v3702_v22 = vadd.f32 %v3701_v56, %v3700_v17  ;;  %3054 = vmax.xlane.f32.xlu0 %v5572_v52 }
 0x368   :  { %v3703_v3 = vpop.f32.mrf.mxu1 }
 0x369   :  { %v5576_v0 = vadd.f32 %v3702_v22, %v5505_v50 }
 0x36a   :  { %v3704_v14 = vpop.f32.mrf.mxu1 }
 0x36b   :  { %v3705_v36 = vadd.f32 %v3704_v14, %v3703_v3  ;;  %3056 = vmax.xlane.f32.xlu1 %v5576_v0 }
 0x36c   :  { %v3706_v55 = vpop.f32.mrf.mxu1 }
 0x36d   :  { %v5580_v11 = vadd.f32 %v3705_v36, %v5505_v50 }
 0x36e   :  { %v3707_v41 = vpop.f32.mrf.mxu1 }
 0x36f   :  { %v3708_v1 = vadd.f32 %v3707_v41, %v3706_v55  ;;  %3058 = vmax.xlane.f32.xlu0 %v5580_v11 }
 0x370   :  { %v3709_v42 = vpop.f32.mrf.mxu1 }
 0x371   :  { %v5584_v16 = vadd.f32 %v3708_v1, %v5505_v50 }
 0x372   :  { %v3710_v4 = vpop.f32.mrf.mxu1 }
 0x373   :  { %v3711_v6 = vadd.f32 %v3710_v4, %v3709_v42  ;;  %3060 = vmax.xlane.f32.xlu1 %v5584_v16 }
 0x374   :  { %v3712_v60 = vpop.f32.mrf.mxu1 }
 0x375   :  { %v5588_v20 = vadd.f32 %v3711_v6, %v5505_v50 }
 0x376   :  { %v3713_v24 = vpop.f32.mrf.mxu1 }
 0x377   :  { %v3714_v18 = vadd.f32 %v3713_v24, %v3712_v60  ;;  %3062 = vmax.xlane.f32.xlu0 %v5588_v20 }
 0x378   :  { %v3715_v44 = vpop.f32.mrf.mxu1 }
 0x379   :  { %v5592_v30 = vadd.f32 %v3714_v18, %v5505_v50 }
 0x37a   :  { %v3716_v62 = vpop.f32.mrf.mxu1 }
 0x37b   :  { %v3717_v48 = vadd.f32 %v3716_v62, %v3715_v44  ;;  %3064 = vmax.xlane.f32.xlu1 %v5592_v30 }
 0x37c   :  { %v3718_v49 = vpop.f32.mrf.mxu1 }
 0x37d   :  { %v5596_v26 = vadd.f32 %v3717_v48, %v5505_v50 }
 0x37e   :  { %v3719_v51 = vpop.f32.mrf.mxu1 }
 0x37f   :  { %v3720_v19 = vadd.f32 %v3719_v51, %v3718_v49  ;;  %3066 = vmax.xlane.f32.xlu0 %v5596_v26 }
 0x380   :  { %v3721_v29 = vpop.f32.mrf.mxu1 }
 0x381   :  { %v5600_v13 = vadd.f32 %v3720_v19, %v5505_v50 }
 0x382   :  { %v3722_v25 = vpop.f32.mrf.mxu1 }
 0x383   :  { %v3723_v58 = vadd.f32 %v3722_v25, %v3721_v29  ;;  %3068 = vmax.xlane.f32.xlu1 %v5600_v13 }
 0x384   :  { %v3724_v27 = vpop.f32.mrf.mxu1 }
 0x385   :  { %v5604_v46 = vadd.f32 %v3723_v58, %v5505_v50 }
 0x386   :  { %v3725_v38 = vpop.f32.mrf.mxu1 }
 0x387   :  { %v3726_v35 = vadd.f32 %v3725_v38, %v3724_v27  ;;  %3070 = vmax.xlane.f32.xlu0 %v5604_v46 }
 0x388   :  { %v3727_v53 = vpop.f32.mrf.mxu1 }
 0x389   :  { %v5608_v45 = vadd.f32 %v3726_v35, %v5505_v50 }
 0x38a   :  { %v3728_v34 = vpop.f32.mrf.mxu1 }
 0x38b   :  { %v3729_v47 = vadd.f32 %v3728_v34, %v3727_v53  ;;  %3072 = vmax.xlane.f32.xlu1 %v5608_v45 }
 0x38c   :  { %v3730_v61 = vpop.f32.mrf.mxu1 }
 0x38d   :  { %v5612_v8 = vadd.f32 %v3729_v47, %v5505_v50 }
 0x38e   :  { %v3731_v15 = vpop.f32.mrf.mxu1 }
 0x38f   :  { %v3732_v10 = vadd.f32 %v3731_v15, %v3730_v61  ;;  %3074 = vmax.xlane.f32.xlu0 %v5612_v8 }
 0x390   :  { %v3733_v12 = vpop.f32.mrf.mxu1 }
 0x391   :  { %v5616_v31 = vadd.f32 %v3732_v10, %v5505_v50 }
 0x392   :  { %v3734_v2 = vpop.f32.mrf.mxu1 }
 0x393   :  { %v3735_v17 = vadd.f32 %v3734_v2, %v3733_v12  ;;  %3076 = vmax.xlane.f32.xlu1 %v5616_v31 }
 0x394   :  { %v3736_v56 = vpop.f32.mrf.mxu1 }
 0x395   :  { %v5620_v22 = vadd.f32 %v3735_v17, %v5505_v50 }
 0x396   :  { %v3737_v3 = vpop.f32.mrf.mxu1 }
 0x397   :  { %v3738_v14 = vadd.f32 %v3737_v3, %v3736_v56  ;;  %3078 = vmax.xlane.f32.xlu0 %v5620_v22 }
 0x398   :  { %v3739_v36 = vpop.f32.mrf.mxu1 }
 0x399   :  { %v5624_v55 = vadd.f32 %v3738_v14, %v5505_v50 }
 0x39a   :  { %v3740_v41 = vpop.f32.mrf.mxu1 }
 0x39b   :  { %v3741_v1 = vadd.f32 %v3740_v41, %v3739_v36  ;;  %3080 = vmax.xlane.f32.xlu1 %v5624_v55 }
 0x39c   :  { %v3742_v42 = vpop.f32.mrf.mxu1 }
 0x39d   :  { %v5628_v4 = vadd.f32 %v3741_v1, %v5505_v50 }
 0x39e   :  { %v3743_v6 = vpop.f32.mrf.mxu1 }
 0x39f   :  { %v3744_v60 = vadd.f32 %v3743_v6, %v3742_v42  ;;  %3082 = vmax.xlane.f32.xlu0 %v5628_v4 }
 0x3a1   :  { %v5632_v24 = vadd.f32 %v3744_v60, %v5505_v50 }
 0x3a3   :  { %3084 = vmax.xlane.f32.xlu1 %v5632_v24 }
 0x3b0   :  { %v3023_v18 = vpop.xlane.xlu0 %3022 }
 0x3b1   :  { %v3086_v44 = vsub.f32 %v5508_v33, %v3023_v18 }
 0x3b3   :  { %v3118_v62 = vmul.f32 1.442695, %v3086_v44 }
 0x3b4   :  { %v3025_v48 = vpop.xlane.xlu0 %3024 }
 0x3b5   :  { %4120 = vpow2.f32 %v3118_v62  ;;  %v3087_v49 = vsub.f32 %v5512_v59, %v3025_v48 }
 0x3b7   :  { %v3120_v51 = vmul.f32 1.442695, %v3087_v49 }
 0x3b8   :  { %v3027_v19 = vpop.xlane.xlu1 %3026 }
 0x3b9   :  { %4122 = vpow2.f32 %v3120_v51  ;;  %v3088_v29 = vsub.f32 %v5516_v39, %v3027_v19 }
 0x3bb   :  { %v3122_v25 = vmul.f32 1.442695, %v3088_v29 }
 0x3bc   :  { %v3029_v58 = vpop.xlane.xlu1 %3028 }
 0x3bd   :  { %4124 = vpow2.f32 %v3122_v25  ;;  %v3089_v50 = vsub.f32 %v5520_v57, %v3029_v58 }
 0x3bf   :  { %v3124_v27 = vmul.f32 1.442695, %v3089_v50 }
 0x3c0   :  { %v3031_v38 = vpop.xlane.xlu0 %3030 }
 0x3c1   :  { %4126 = vpow2.f32 %v3124_v27  ;;  %v3090_v33 = vsub.f32 %v5524_v21, %v3031_v38 }
 0x3c2   :  { %v5640_v35 = vpop.eup %4120 }
 0x3c3   :  { %v3126_v53 = vmul.f32 1.442695, %v3090_v33  ;;  %3182 = vadd.xlane.f32.xlu0 %v5640_v35 }
 0x3c4   :  { %v3033_v59 = vpop.xlane.xlu1 %3032 }
 0x3c5   :  { %4128 = vpow2.f32 %v3126_v53  ;;  %v3091_v34 = vsub.f32 %v5528_v9, %v3033_v59 }
 0x3c6   :  { %v5644_v39 = vpop.eup %4122 }
 0x3c7   :  { %v3128_v47 = vmul.f32 1.442695, %v3091_v34  ;;  %3184 = vadd.xlane.f32.xlu1 %v5644_v39 }
 0x3c8   :  { %v3035_v57 = vpop.xlane.xlu0 %3034 }
 0x3c9   :  { %4130 = vpow2.f32 %v3128_v47  ;;  %v3092_v61 = vsub.f32 %v5532_v7, %v3035_v57 }
 0x3ca   :  { %v5648_v15 = vpop.eup %4124 }
 0x3cb   :  { %v3130_v21 = vmul.f32 1.442695, %v3092_v61  ;;  %3186 = vadd.xlane.f32.xlu0 %v5648_v15 }
 0x3cc   :  { %v3037_v10 = vpop.xlane.xlu1 %3036 }
 0x3cd   :  { %4132 = vpow2.f32 %v3130_v21  ;;  %v3093_v12 = vsub.f32 %v5536_v37, %v3037_v10 }
 0x3ce   :  { %v5652_v2 = vpop.eup %4126 }
 0x3cf   :  { %v3132_v9 = vmul.f32 1.442695, %v3093_v12  ;;  %3188 = vadd.xlane.f32.xlu1 %v5652_v2 }
 0x3d0   :  { %v3039_v17 = vpop.xlane.xlu0 %3038 }
 0x3d1   :  { %4134 = vpow2.f32 %v3132_v9  ;;  %v3094_v56 = vsub.f32 %v5540_v43, %v3039_v17 }
 0x3d2   :  { %v5656_v3 = vpop.eup %4128 }
 0x3d3   :  { %v3134_v7 = vmul.f32 1.442695, %v3094_v56  ;;  %3190 = vadd.xlane.f32.xlu0 %v5656_v3 }
 0x3d4   :  { %v3041_v14 = vpop.xlane.xlu1 %3040 }
 0x3d5   :  { %4136 = vpow2.f32 %v3134_v7  ;;  %v3095_v36 = vsub.f32 %v5544_v40, %v3041_v14 }
 0x3d6   :  { %v5660_v41 = vpop.eup %4130 }
 0x3d7   :  { %v3136_v37 = vmul.f32 1.442695, %v3095_v36  ;;  %3192 = vadd.xlane.f32.xlu1 %v5660_v41 }
 0x3d8   :  { %v3043_v1 = vpop.xlane.xlu0 %3042 }
 0x3d9   :  { %4138 = vpow2.f32 %v3136_v37  ;;  %v3096_v42 = vsub.f32 %v5548_v28, %v3043_v1 }
 0x3da   :  { %v5664_v6 = vpop.eup %4132 }
 0x3db   :  { %v3138_v43 = vmul.f32 1.442695, %v3096_v42  ;;  %3194 = vadd.xlane.f32.xlu0 %v5664_v6 }
 0x3dc   :  { %v3045_v60 = vpop.xlane.xlu1 %3044 }
 0x3dd   :  { %4140 = vpow2.f32 %v3138_v43  ;;  %v3097_v18 = vsub.f32 %v5552_v32, %v3045_v60 }
 0x3de   :  { %v5668_v44 = vpop.eup %4134 }
 0x3df   :  { %v3140_v40 = vmul.f32 1.442695, %v3097_v18  ;;  %3196 = vadd.xlane.f32.xlu1 %v5668_v44 }
 0x3e0   :  { %v3047_v62 = vpop.xlane.xlu0 %3046 }
 0x3e1   :  { %4142 = vpow2.f32 %v3140_v40  ;;  %v3098_v48 = vsub.f32 %v5556_v5, %v3047_v62 }
 0x3e2   :  { %v5672_v49 = vpop.eup %4136 }
 0x3e3   :  { %v3142_v28 = vmul.f32 1.442695, %v3098_v48  ;;  %3198 = vadd.xlane.f32.xlu0 %v5672_v49 }
 0x3e4   :  { %v3049_v51 = vpop.xlane.xlu1 %3048 }
 0x3e5   :  { %4144 = vpow2.f32 %v3142_v28  ;;  %v3099_v19 = vsub.f32 %v5560_v63, %v3049_v51 }
 0x3e6   :  { %v5676_v29 = vpop.eup %4138 }
 0x3e7   :  { %v3144_v32 = vmul.f32 1.442695, %v3099_v19  ;;  %3200 = vadd.xlane.f32.xlu1 %v5676_v29 }
 0x3e8   :  { %v3051_v25 = vpop.xlane.xlu0 %3050 }
 0x3e9   :  { %4146 = vpow2.f32 %v3144_v32  ;;  %v3100_v58 = vsub.f32 %v5564_v23, %v3051_v25 }
 0x3ea   :  { %v5680_v50 = vpop.eup %4140 }
 0x3eb   :  { %v3146_v5 = vmul.f32 1.442695, %v3100_v58  ;;  %3202 = vadd.xlane.f32.xlu0 %v5680_v50 }
 0x3ec   :  { %v3053_v27 = vpop.xlane.xlu1 %3052 }
 0x3ed   :  { %4148 = vpow2.f32 %v3146_v5  ;;  %v3101_v38 = vsub.f32 %v5568_v54, %v3053_v27 }
 0x3ee   :  { %v5684_v33 = vpop.eup %4142 }
 0x3ef   :  { %v3148_v63 = vmul.f32 1.442695, %v3101_v38  ;;  %3204 = vadd.xlane.f32.xlu1 %v5684_v33 }
 0x3f0   :  { %v3055_v53 = vpop.xlane.xlu0 %3054 }
 0x3f1   :  { %4150 = vpow2.f32 %v3148_v63  ;;  %v3102_v59 = vsub.f32 %v5572_v52, %v3055_v53 }
 0x3f2   :  { %v5688_v34 = vpop.eup %4144 }
 0x3f3   :  { %v3150_v23 = vmul.f32 1.442695, %v3102_v59  ;;  %3206 = vadd.xlane.f32.xlu0 %v5688_v34 }
 0x3f4   :  { %v3057_v47 = vpop.xlane.xlu1 %3056 }
 0x3f5   :  { %4152 = vpow2.f32 %v3150_v23  ;;  %v3103_v57 = vsub.f32 %v5576_v0, %v3057_v47 }
 0x3f6   :  { %v5692_v61 = vpop.eup %4146 }
 0x3f7   :  { %v3152_v54 = vmul.f32 1.442695, %v3103_v57  ;;  %3208 = vadd.xlane.f32.xlu1 %v5692_v61 }
 0x3f8   :  { %v3059_v21 = vpop.xlane.xlu0 %3058 }
 0x3f9   :  { %4154 = vpow2.f32 %v3152_v54  ;;  %v3104_v10 = vsub.f32 %v5580_v11, %v3059_v21 }
 0x3fa   :  { %v5696_v12 = vpop.eup %4148 }
 0x3fb   :  { %v3154_v52 = vmul.f32 1.442695, %v3104_v10  ;;  %3210 = vadd.xlane.f32.xlu0 %v5696_v12 }
 0x3fc   :  { %v3061_v9 = vpop.xlane.xlu1 %3060 }
 0x3fd   :  { %4156 = vpow2.f32 %v3154_v52  ;;  %v3105_v17 = vsub.f32 %v5584_v16, %v3061_v9 }
 0x3fe   :  { %v5700_v56 = vpop.eup %4150 }
 0x3ff   :  { %v3156_v0 = vmul.f32 1.442695, %v3105_v17  ;;  %3212 = vadd.xlane.f32.xlu1 %v5700_v56 }
 0x400   :  { %v3063_v7 = vpop.xlane.xlu0 %3062 }
 0x401   :  { %4158 = vpow2.f32 %v3156_v0  ;;  %v3106_v14 = vsub.f32 %v5588_v20, %v3063_v7 }
 0x402   :  { %v5704_v36 = vpop.eup %4152 }
 0x403   :  { %v3158_v11 = vmul.f32 1.442695, %v3106_v14  ;;  %3214 = vadd.xlane.f32.xlu0 %v5704_v36 }
 0x404   :  { %v3065_v37 = vpop.xlane.xlu1 %3064 }
 0x405   :  { %4160 = vpow2.f32 %v3158_v11  ;;  %v3107_v1 = vsub.f32 %v5592_v30, %v3065_v37 }
 0x406   :  { %v5708_v42 = vpop.eup %4154 }
 0x407   :  { %v3160_v16 = vmul.f32 1.442695, %v3107_v1  ;;  %3216 = vadd.xlane.f32.xlu1 %v5708_v42 }
 0x408   :  { %v3067_v43 = vpop.xlane.xlu0 %3066 }
 0x409   :  { %4162 = vpow2.f32 %v3160_v16  ;;  %v3108_v60 = vsub.f32 %v5596_v26, %v3067_v43 }
 0x40a   :  { %v5712_v18 = vpop.eup %4156 }
 0x40b   :  { %v3162_v20 = vmul.f32 1.442695, %v3108_v60  ;;  %3218 = vadd.xlane.f32.xlu0 %v5712_v18 }
 0x40c   :  { %v3069_v40 = vpop.xlane.xlu1 %3068 }
 0x40d   :  { %4164 = vpow2.f32 %v3162_v20  ;;  %v3109_v62 = vsub.f32 %v5600_v13, %v3069_v40 }
 0x40e   :  { %v5716_v48 = vpop.eup %4158 }
 0x40f   :  { %v3164_v30 = vmul.f32 1.442695, %v3109_v62  ;;  %3220 = vadd.xlane.f32.xlu1 %v5716_v48 }
 0x410   :  { %v3071_v28 = vpop.xlane.xlu0 %3070 }
 0x411   :  { %4166 = vpow2.f32 %v3164_v30  ;;  %v3110_v51 = vsub.f32 %v5604_v46, %v3071_v28 }
 0x412   :  { %v5720_v19 = vpop.eup %4160 }
 0x413   :  { %v3166_v26 = vmul.f32 1.442695, %v3110_v51  ;;  %3222 = vadd.xlane.f32.xlu0 %v5720_v19 }
 0x414   :  { %v3073_v32 = vpop.xlane.xlu1 %3072 }
 0x415   :  { %4168 = vpow2.f32 %v3166_v26  ;;  %v3111_v25 = vsub.f32 %v5608_v45, %v3073_v32 }
 0x416   :  { %v5724_v58 = vpop.eup %4162 }
 0x417   :  { %v3168_v13 = vmul.f32 1.442695, %v3111_v25  ;;  %3224 = vadd.xlane.f32.xlu1 %v5724_v58 }
 0x418   :  { %v3075_v5 = vpop.xlane.xlu0 %3074 }
 0x419   :  { %4170 = vpow2.f32 %v3168_v13  ;;  %v3112_v27 = vsub.f32 %v5612_v8, %v3075_v5 }
 0x41a   :  { %v5728_v38 = vpop.eup %4164 }
 0x41b   :  { %v3170_v46 = vmul.f32 1.442695, %v3112_v27  ;;  %3226 = vadd.xlane.f32.xlu0 %v5728_v38 }
 0x41c   :  { %v3077_v63 = vpop.xlane.xlu1 %3076 }
 0x41d   :  { %4172 = vpow2.f32 %v3170_v46  ;;  %v3113_v53 = vsub.f32 %v5616_v31, %v3077_v63 }
 0x41e   :  { %v5732_v59 = vpop.eup %4166 }
 0x41f   :  { %v3172_v45 = vmul.f32 1.442695, %v3113_v53  ;;  %3228 = vadd.xlane.f32.xlu1 %v5732_v59 }
 0x420   :  { %v3079_v23 = vpop.xlane.xlu0 %3078 }
 0x421   :  { %4174 = vpow2.f32 %v3172_v45  ;;  %v3114_v47 = vsub.f32 %v5620_v22, %v3079_v23 }
 0x422   :  { %v5736_v57 = vpop.eup %4168 }
 0x423   :  { %v3174_v8 = vmul.f32 1.442695, %v3114_v47  ;;  %3230 = vadd.xlane.f32.xlu0 %v5736_v57 }
 0x424   :  { %v3081_v54 = vpop.xlane.xlu1 %3080 }
 0x425   :  { %4176 = vpow2.f32 %v3174_v8  ;;  %v3115_v21 = vsub.f32 %v5624_v55, %v3081_v54 }
 0x426   :  { %v5740_v10 = vpop.eup %4170 }
 0x427   :  { %v3176_v31 = vmul.f32 1.442695, %v3115_v21  ;;  %3232 = vadd.xlane.f32.xlu1 %v5740_v10 }
 0x428   :  { %v3083_v52 = vpop.xlane.xlu0 %3082 }
 0x429   :  { %4178 = vpow2.f32 %v3176_v31  ;;  %v3116_v9 = vsub.f32 %v5628_v4, %v3083_v52 }
 0x42a   :  { %v5744_v17 = vpop.eup %4172 }
 0x42b   :  { %v3178_v22 = vmul.f32 1.442695, %v3116_v9  ;;  %3234 = vadd.xlane.f32.xlu0 %v5744_v17 }
 0x42c   :  { %v3085_v0 = vpop.xlane.xlu1 %3084 }
 0x42d   :  { %4180 = vpow2.f32 %v3178_v22  ;;  %v3117_v7 = vsub.f32 %v5632_v24, %v3085_v0 }
 0x42e   :  { %v5748_v14 = vpop.eup %4174 }
 0x42f   :  { %v3180_v55 = vmul.f32 1.442695, %v3117_v7  ;;  %3236 = vadd.xlane.f32.xlu1 %v5748_v14 }
 0x431   :  { %4182 = vpow2.f32 %v3180_v55 }
 0x432   :  { %v5751_v11 = vpop.eup %4176 }
 0x433   :  { %3238 = vadd.xlane.f32.xlu0 %v5751_v11 }
 0x436   :  { %v5754_v4 = vpop.eup %4178 }
 0x437   :  { %3240 = vadd.xlane.f32.xlu1 %v5754_v4 }
 0x43a   :  { %v5757_v37 = vpop.eup %4180 }
 0x43b   :  { %3242 = vadd.xlane.f32.xlu0 %v5757_v37 }
 0x43e   :  { %v5760_v1 = vpop.eup %4182 }
 0x43f   :  { %3244 = vadd.xlane.f32.xlu1 %v5760_v1 }
 0x44c   :  { %v3183_v24 = vpop.xlane.xlu0 %3182 }
 0x44d   :  { %4184 = vrcp.f32 %v3183_v24 }
 0x450   :  { %v3185_v16 = vpop.xlane.xlu1 %3184 }
 0x451   :  { %4186 = vrcp.f32 %v3185_v16 }
 0x454   :  { %v3187_v43 = vpop.xlane.xlu0 %3186 }
 0x455   :  { %4188 = vrcp.f32 %v3187_v43 }
 0x458   :  { %v3189_v60 = vpop.xlane.xlu1 %3188 }
 0x459   :  { %4190 = vrcp.f32 %v3189_v60 }
 0x45a   :  { %v4185_v20 = vpop.eup %4184 }
 0x45b   :  { %v3278_v40 = vmul.f32 %v4185_v20, %v5640_v35 }
 0x45c   :  { %v3191_v62 = vpop.xlane.xlu0 %3190 }
 0x45d   :  { %3310 = vst [vmem:[#allocation2] sm:$0xff] %v3278_v40  ;;  %4192 = vrcp.f32 %v3191_v62 }
 0x45e   :  { %v4187_v30 = vpop.eup %4186 }
 0x45f   :  { %v3279_v28 = vmul.f32 %v4187_v30, %v5644_v39 }
 0x460   :  { %v3193_v51 = vpop.xlane.xlu1 %3192 }
 0x461   :  { %3311 = vst [vmem:[#allocation2 + $0x8] sm:$0xff] %v3279_v28  ;;  %4194 = vrcp.f32 %v3193_v51 }
 0x462   :  { %v4189_v26 = vpop.eup %4188 }
 0x463   :  { %v3280_v32 = vmul.f32 %v4189_v26, %v5648_v15 }
 0x464   :  { %v3195_v25 = vpop.xlane.xlu0 %3194 }
 0x465   :  { %3312 = vst [vmem:[#allocation2 + $0x10] sm:$0xff] %v3280_v32  ;;  %4196 = vrcp.f32 %v3195_v25 }
 0x466   :  { %v4191_v13 = vpop.eup %4190 }
 0x467   :  { %v3281_v5 = vmul.f32 %v4191_v13, %v5652_v2 }
 0x468   :  { %v3197_v27 = vpop.xlane.xlu1 %3196 }
 0x469   :  { %3313 = vst [vmem:[#allocation2 + $0x18] sm:$0xff] %v3281_v5  ;;  %4198 = vrcp.f32 %v3197_v27 }
 0x46a   :  { %v4193_v35 = vpop.eup %4192 }
 0x46b   :  { %v3282_v46 = vmul.f32 %v4193_v35, %v5656_v3 }
 0x46c   :  { %v3199_v63 = vpop.xlane.xlu0 %3198 }
 0x46d   :  { %3314 = vst [vmem:[#allocation2 + $0x20] sm:$0xff] %v3282_v46  ;;  %4200 = vrcp.f32 %v3199_v63 }
 0x46e   :  { %v4195_v39 = vpop.eup %4194 }
 0x46f   :  { %v3283_v53 = vmul.f32 %v4195_v39, %v5660_v41 }
 0x470   :  { %v3201_v45 = vpop.xlane.xlu1 %3200 }
 0x471   :  { %3315 = vst [vmem:[#allocation2 + $0x28] sm:$0xff] %v3283_v53  ;;  %4202 = vrcp.f32 %v3201_v45 }
 0x472   :  { %v4197_v15 = vpop.eup %4196 }
 0x473   :  { %v3284_v23 = vmul.f32 %v4197_v15, %v5664_v6 }
 0x474   :  { %v3203_v47 = vpop.xlane.xlu0 %3202 }
 0x475   :  { %3316 = vst [vmem:[#allocation2 + $0x30] sm:$0xff] %v3284_v23  ;;  %4204 = vrcp.f32 %v3203_v47 }
 0x476   :  { %v4199_v2 = vpop.eup %4198 }
 0x477   :  { %v3285_v8 = vmul.f32 %v4199_v2, %v5668_v44 }
 0x478   :  { %v3205_v54 = vpop.xlane.xlu1 %3204 }
 0x479   :  { %3317 = vst [vmem:[#allocation2 + $0x38] sm:$0xff] %v3285_v8  ;;  %4206 = vrcp.f32 %v3205_v54 }
 0x47a   :  { %v4201_v3 = vpop.eup %4200 }
 0x47b   :  { %v3286_v21 = vmul.f32 %v4201_v3, %v5672_v49 }
 0x47c   :  { %v3207_v31 = vpop.xlane.xlu0 %3206 }
 0x47d   :  { %3318 = vst [vmem:[#allocation2 + $0x40] sm:$0xff] %v3286_v21  ;;  %4208 = vrcp.f32 %v3207_v31 }
 0x47e   :  { %v4203_v41 = vpop.eup %4202 }
 0x47f   :  { %v3287_v52 = vmul.f32 %v4203_v41, %v5676_v29 }
 0x480   :  { %v3209_v9 = vpop.xlane.xlu1 %3208 }
 0x481   :  { %3319 = vst [vmem:[#allocation2 + $0x48] sm:$0xff] %v3287_v52  ;;  %4210 = vrcp.f32 %v3209_v9 }
 0x482   :  { %v4205_v6 = vpop.eup %4204 }
 0x483   :  { %v3288_v22 = vmul.f32 %v4205_v6, %v5680_v50 }
 0x484   :  { %v3211_v0 = vpop.xlane.xlu0 %3210 }
 0x485   :  { %3320 = vst [vmem:[#allocation2 + $0x50] sm:$0xff] %v3288_v22  ;;  %4212 = vrcp.f32 %v3211_v0 }
 0x486   :  { %v4207_v44 = vpop.eup %4206 }
 0x487   :  { %v3289_v7 = vmul.f32 %v4207_v44, %v5684_v33 }
 0x488   :  { %v3213_v55 = vpop.xlane.xlu1 %3212 }
 0x489   :  { %3321 = vst [vmem:[#allocation2 + $0x58] sm:$0xff] %v3289_v7  ;;  %4214 = vrcp.f32 %v3213_v55 }
 0x48a   :  { %v4209_v49 = vpop.eup %4208 }
 0x48b   :  { %v3290_v24 = vmul.f32 %v4209_v49, %v5688_v34 }
 0x48c   :  { %v3215_v16 = vpop.xlane.xlu0 %3214 }
 0x48d   :  { %3322 = vst [vmem:[#allocation2 + $0x60] sm:$0xff] %v3290_v24  ;;  %4216 = vrcp.f32 %v3215_v16 }
 0x48e   :  { %v4211_v29 = vpop.eup %4210 }
 0x48f   :  { %v3291_v43 = vmul.f32 %v4211_v29, %v5692_v61 }
 0x490   :  { %v3217_v60 = vpop.xlane.xlu1 %3216 }
 0x491   :  { %3323 = vst [vmem:[#allocation2 + $0x68] sm:$0xff] %v3291_v43  ;;  %4218 = vrcp.f32 %v3217_v60 }
 0x492   :  { %v4213_v50 = vpop.eup %4212 }
 0x493   :  { %v3292_v20 = vmul.f32 %v4213_v50, %v5696_v12 }
 0x494   :  { %v3219_v40 = vpop.xlane.xlu0 %3218 }
 0x495   :  { %3324 = vst [vmem:[#allocation2 + $0x70] sm:$0xff] %v3292_v20  ;;  %4220 = vrcp.f32 %v3219_v40 }
 0x496   :  { %v4215_v33 = vpop.eup %4214 }
 0x497   :  { %v3293_v62 = vmul.f32 %v4215_v33, %v5700_v56 }
 0x498   :  { %v3221_v30 = vpop.xlane.xlu1 %3220 }
 0x499   :  { %3325 = vst [vmem:[#allocation2 + $0x78] sm:$0xff] %v3293_v62  ;;  %4222 = vrcp.f32 %v3221_v30 }
 0x49a   :  { %v4217_v34 = vpop.eup %4216 }
 0x49b   :  { %v3294_v28 = vmul.f32 %v4217_v34, %v5704_v36 }
 0x49c   :  { %v3223_v51 = vpop.xlane.xlu0 %3222 }
 0x49d   :  { %3326 = vst [vmem:[#allocation2 + $0x80] sm:$0xff] %v3294_v28  ;;  %4224 = vrcp.f32 %v3223_v51 }
 0x49e   :  { %v4219_v61 = vpop.eup %4218 }
 0x49f   :  { %v3295_v26 = vmul.f32 %v4219_v61, %v5708_v42 }
 0x4a0   :  { %v3225_v32 = vpop.xlane.xlu1 %3224 }
 0x4a1   :  { %3327 = vst [vmem:[#allocation2 + $0x88] sm:$0xff] %v3295_v26  ;;  %4226 = vrcp.f32 %v3225_v32 }
 0x4a2   :  { %v4221_v12 = vpop.eup %4220 }
 0x4a3   :  { %v3296_v25 = vmul.f32 %v4221_v12, %v5712_v18 }
 0x4a4   :  { %v3227_v13 = vpop.xlane.xlu0 %3226 }
 0x4a5   :  { %3328 = vst [vmem:[#allocation2 + $0x90] sm:$0xff] %v3296_v25  ;;  %4228 = vrcp.f32 %v3227_v13 }
 0x4a6   :  { %v4223_v56 = vpop.eup %4222 }
 0x4a7   :  { %v3297_v5 = vmul.f32 %v4223_v56, %v5716_v48 }
 0x4a8   :  { %v3229_v27 = vpop.xlane.xlu1 %3228 }
 0x4a9   :  { %3329 = vst [vmem:[#allocation2 + $0x98] sm:$0xff] %v3297_v5  ;;  %4230 = vrcp.f32 %v3229_v27 }
 0x4aa   :  { %v4225_v36 = vpop.eup %4224 }
 0x4ab   :  { %v3298_v35 = vmul.f32 %v4225_v36, %v5720_v19 }
 0x4ac   :  { %v3231_v46 = vpop.xlane.xlu0 %3230 }
 0x4ad   :  { %3330 = vst [vmem:[#allocation2 + $0xa0] sm:$0xff] %v3298_v35  ;;  %4232 = vrcp.f32 %v3231_v46 }
 0x4ae   :  { %v4227_v42 = vpop.eup %4226 }
 0x4af   :  { %v3299_v63 = vmul.f32 %v4227_v42, %v5724_v58 }
 0x4b0   :  { %v3233_v39 = vpop.xlane.xlu1 %3232 }
 0x4b1   :  { %3331 = vst [vmem:[#allocation2 + $0xa8] sm:$0xff] %v3299_v63  ;;  %4234 = vrcp.f32 %v3233_v39 }
 0x4b2   :  { %v4229_v18 = vpop.eup %4228 }
 0x4b3   :  { %v3300_v53 = vmul.f32 %v4229_v18, %v5728_v38 }
 0x4b4   :  { %v3235_v45 = vpop.xlane.xlu0 %3234 }
 0x4b5   :  { %3332 = vst [vmem:[#allocation2 + $0xb0] sm:$0xff] %v3300_v53  ;;  %4236 = vrcp.f32 %v3235_v45 }
 0x4b6   :  { %v4231_v48 = vpop.eup %4230 }
 0x4b7   :  { %v3301_v15 = vmul.f32 %v4231_v48, %v5732_v59 }
 0x4b8   :  { %v3237_v23 = vpop.xlane.xlu1 %3236 }
 0x4b9   :  { %3333 = vst [vmem:[#allocation2 + $0xb8] sm:$0xff] %v3301_v15  ;;  %4238 = vrcp.f32 %v3237_v23 }
 0x4ba   :  { %v4233_v19 = vpop.eup %4232 }
 0x4bb   :  { %v3302_v47 = vmul.f32 %v4233_v19, %v5736_v57 }
 0x4bc   :  { %v3239_v2 = vpop.xlane.xlu0 %3238 }
 0x4bd   :  { %3334 = vst [vmem:[#allocation2 + $0xc0] sm:$0xff] %v3302_v47  ;;  %4240 = vrcp.f32 %v3239_v2 }
 0x4be   :  { %v4235_v58 = vpop.eup %4234 }
 0x4bf   :  { %v3303_v8 = vmul.f32 %v4235_v58, %v5740_v10 }
 0x4c0   :  { %v3241_v54 = vpop.xlane.xlu1 %3240 }
 0x4c1   :  { %3335 = vst [vmem:[#allocation2 + $0xc8] sm:$0xff] %v3303_v8  ;;  %4242 = vrcp.f32 %v3241_v54 }
 0x4c2   :  { %v4237_v38 = vpop.eup %4236 }
 0x4c3   :  { %v3304_v3 = vmul.f32 %v4237_v38, %v5744_v17 }
 0x4c4   :  { %v3243_v21 = vpop.xlane.xlu0 %3242 }
 0x4c5   :  { %3336 = vst [vmem:[#allocation2 + $0xd0] sm:$0xff] %v3304_v3  ;;  %4244 = vrcp.f32 %v3243_v21 }
 0x4c6   :  { %v4239_v59 = vpop.eup %4238 }
 0x4c7   :  { %v3305_v31 = vmul.f32 %v4239_v59, %v5748_v14 }
 0x4c8   :  { %v3245_v41 = vpop.xlane.xlu1 %3244 }
 0x4c9   :  { %3337 = vst [vmem:[#allocation2 + $0xd8] sm:$0xff] %v3305_v31  ;;  %4246 = vrcp.f32 %v3245_v41 }
 0x4ca   :  { %v4241_v57 = vpop.eup %4240 }
 0x4cb   :  { %v3306_v52 = vmul.f32 %v4241_v57, %v5751_v11 }
 0x4cd   :  { %3338 = vst [vmem:[#allocation2 + $0xe0] sm:$0xff] %v3306_v52 }
 0x4ce   :  { %v4243_v10 = vpop.eup %4242 }
 0x4cf   :  { %v3307_v9 = vmul.f32 %v4243_v10, %v5754_v4 }
 0x4d1   :  { %3339 = vst [vmem:[#allocation2 + $0xe8] sm:$0xff] %v3307_v9 }
 0x4d2   :  { %v4245_v6 = vpop.eup %4244 }
 0x4d3   :  { %v3308_v17 = vmul.f32 %v4245_v6, %v5757_v37 }
 0x4d5   :  { %3340 = vst [vmem:[#allocation2 + $0xf0] sm:$0xff] %v3308_v17 }
 0x4d6   :  { %v4247_v22 = vpop.eup %4246 }
 0x4d7   :  { %v3309_v14 = vmul.f32 %v4247_v22, %v5760_v1 }
 0x4d9   :  { %3341 = vst [vmem:[#allocation2 + $0xf8] sm:$0xff] %v3309_v14 }
 0x4da   :  { %4259 = shalt.err (!%p4256_p4)
}
 0x4db   :  { %s4272_s1 = smov 128   ;;  %s4273_s21 = smov 8  }
 0x4dc   :  { %3353 = dma.vmem_to_hbm [thread:$0]  %s3348_s19, 4096, %s5805_s7, [#allocation3], %s4272_s1, %s4272_s1, %s4273_s21  }
 0x4dd   :  { %4268 = dma.done.wait [#allocation3], 4096  }
 0x4de   :  { %4269 = vsyncadd [#allocation3], 4294963200 }
 0x4df   :  { %3357 = vsyncpa [#allocation3], 1 }

</bundles_post_ra>
